<compile_context>
chip_gen: v7x
topology: tpu7x:2x2x1
jax: 0.10.0
libtpu: 0.0.40
codegen_flags: <defaults>
</compile_context>

<pallas_src>
import jax
import jax.numpy as jnp
from jax import lax
from jax.experimental import pallas as pl
from jax.experimental.pallas import tpu as pltpu


def _round_up(x, m):
    return -(-x // m) * m


def _make_kernel(hid, c_out, tile_rows, strip_rows, lanes):
    assert tile_rows % strip_rows == 0
    n_strips = tile_rows // strip_rows

    def kernel(x_ref, w1_ref, b1_ref, w2_ref, b2_ref, o_ref):
        # x_ref : (TR, L)          VMEM lane-dense input slab tile
        # w1/b1 : (HID,)           SMEM scalars
        # w2    : (HID*C_out,)     SMEM scalars, row-major (k, c)
        # b2    : (C_out,)         SMEM scalars
        # o_ref : (C_out, TR, L)   VMEM channel-major lane-dense output tile

        # Hoist every scalar weight read out of the strip loop (stay in sregs).
        w1_s = [w1_ref[k] for k in range(hid)]
        b1_s = [b1_ref[k] for k in range(hid)]
        w2_s = [[w2_ref[k * c_out + c] for c in range(c_out)] for k in range(hid)]
        b2_s = [b2_ref[c] for c in range(c_out)]

        @pl.loop(0, n_strips)
        def _(s):
            r0 = pl.multiple_of(s * strip_rows, strip_rows)
            xs = x_ref[pl.ds(r0, strip_rows), :].astype(jnp.float32)

            accs = [jnp.full((strip_rows, lanes), b2_s[c], dtype=jnp.float32)
                    for c in range(c_out)]

            # Unrolled per-hidden-unit VPU loop (MXU is useless at C_in=1).
            for k in range(hid):
                h = jnp.maximum(xs * w1_s[k] + b1_s[k], 0.0)
                for c in range(c_out):
                    accs[c] = accs[c] + h * w2_s[k][c]

            # CrossTrussWrapper: every output channel scaled by the input field.
            for c in range(c_out):
                o_ref[c, pl.ds(r0, strip_rows), :] = (accs[c] * xs).astype(o_ref.dtype)

    return kernel


def cross_truss_forward(x_bhwc, w1, b1, w2, b2, *,
                        lanes=512, tile_rows=512, strip_rows=16):
    """x_bhwc: (B, H, W, 1). Returns (B, H, W, C_out)."""
    B, H, W, C_in = x_bhwc.shape
    assert C_in == 1, "CrossTrussWrapper channel-scaling assumes C_in == 1"
    HID, C_out = w2.shape
    assert w1.shape == (C_in, HID)
    assert tile_rows % strip_rows == 0 and strip_rows % 8 == 0

    rows = B * H * W
    L = lanes
    r_needed = -(-rows // L)                         # ceil(rows / L)
    TR = min(tile_rows, _round_up(r_needed, strip_rows))
    R = _round_up(r_needed, TR)
    padded = R * L

    # Lane-dense input slab (tail padding is sliced back off below; padded
    # elements are 0 and produce 0 output, so no NaN hazards).
    x_lin = x_bhwc.reshape(rows)
    x_slab = jnp.pad(x_lin, (0, padded - rows)).reshape(R, L)

    # Flatten the tiny parameter tensors so they sit compactly in SMEM.
    w1_flat = w1.reshape(HID).astype(jnp.float32)
    b1_flat = b1.reshape(HID).astype(jnp.float32)
    w2_flat = w2.reshape(HID * C_out).astype(jnp.float32)
    b2_flat = b2.reshape(C_out).astype(jnp.float32)

    grid = (R // TR,)
    out_slab = pl.pallas_call(
        _make_kernel(HID, C_out, TR, strip_rows, L),
        out_shape=jax.ShapeDtypeStruct((C_out, R, L), x_bhwc.dtype),
        grid=grid,
        in_specs=[
            pl.BlockSpec((TR, L), lambda i: (i, 0)),
            pl.BlockSpec(memory_space=pltpu.MemorySpace.SMEM),   # w1
            pl.BlockSpec(memory_space=pltpu.MemorySpace.SMEM),   # b1
            pl.BlockSpec(memory_space=pltpu.MemorySpace.SMEM),   # w2
            pl.BlockSpec(memory_space=pltpu.MemorySpace.SMEM),   # b2
        ],
        out_specs=pl.BlockSpec((C_out, TR, L), lambda i: (0, i, 0)),
        compiler_params=pltpu.CompilerParams(
            dimension_semantics=("parallel",),
        ),
    )(x_slab, w1_flat, b1_flat, w2_flat, b2_flat)

    # Back to (B, H, W, C_out) in plain JAX (layout plumbing outside the kernel).
    out_flat = out_slab.reshape(C_out, R * L)[:, :rows]     # (C_out, rows)
    return out_flat.T.reshape(B, H, W, C_out)


def _reference(x_bhwc, w1, b1, w2, b2):
    """Pure-JAX reference mirroring the PyTorch module semantics."""
    B, H, W, C_in = x_bhwc.shape
    x = x_bhwc.reshape(-1, C_in).astype(jnp.float32)
    h = jnp.maximum(
        jnp.dot(x, w1, precision=lax.Precision.HIGHEST) + b1, 0.0)
    y = jnp.dot(h, w2, precision=lax.Precision.HIGHEST) + b2
    y = y.reshape(B, H, W, -1)
    # for i in range(C_out): y[..., [i]] *= input_batch   (C_in == 1 broadcast)
    y = y * x_bhwc.astype(jnp.float32)
    return y.astype(x_bhwc.dtype)


if __name__ == "__main__":
    key = jax.random.PRNGKey(0)
    k_x, k_w1, k_b1, k_w2, k_b2 = jax.random.split(key, 5)

    B, H, W = 2, 16, 16
    C_in, HID, C_out = 1, 32, 2

    x = jax.random.normal(k_x, (B, H, W, C_in), dtype=jnp.float32)

    # Deterministic synthetic parameters for the wrapped per-pixel MLP.
    w1 = 0.1 * jax.random.normal(k_w1, (C_in, HID), dtype=jnp.float32)
    b1 = 0.1 * jax.random.normal(k_b1, (1, HID), dtype=jnp.float32)
    w2 = 0.1 * jax.random.normal(k_w2, (HID, C_out), dtype=jnp.float32)
    b2 = 0.1 * jax.random.normal(k_b2, (1, C_out), dtype=jnp.float32)

    out = cross_truss_forward(x, w1, b1, w2, b2)
    out = jax.block_until_ready(out)

    ref = _reference(x, w1, b1, w2, b2)
    assert out.shape == (B, H, W, C_out)
    assert jnp.allclose(out, ref, atol=1e-5, rtol=1e-5), "mismatch vs reference"

    # TODO(synk): the PyTorch wrapper's __getattr__ redirection is Python-level
    # attribute plumbing with no kernel-side equivalent.
    print("KERNEL_OK")
</pallas_src>

<mosaic_0001>
module attributes {stable_mosaic.version = 11 : i64} {
  func.func @kernel(%arg0: i32, %arg1: memref<16x512xf32, #tpu.memory_space<vmem>>, %arg2: memref<32xf32, #tpu.memory_space<smem>>, %arg3: memref<32xf32, #tpu.memory_space<smem>>, %arg4: memref<64xf32, #tpu.memory_space<smem>>, %arg5: memref<2xf32, #tpu.memory_space<smem>>, %arg6: memref<2x16x512xf32, #tpu.memory_space<vmem>>) attributes {dimension_semantics = [#tpu.dimension_semantics<parallel>], iteration_bounds = array<i64: 1>, scalar_prefetch = 0 : i64, scratch_operands = 0 : i64, tpu.core_type = #tpu.core_type<tc>, window_params = [{transform_indices = @transform_0, window_bounds = array<i64: 16, 512>}, {transform_indices = @transform_1, window_bounds = array<i64: 32>}, {transform_indices = @transform_2, window_bounds = array<i64: 32>}, {transform_indices = @transform_3, window_bounds = array<i64: 64>}, {transform_indices = @transform_4, window_bounds = array<i64: 2>}, {transform_indices = @transform_5, window_bounds = array<i64: 2, 16, 512>}]} {
    %c0 = arith.constant 0 : index
    %0 = memref.load %arg2[%c0] : memref<32xf32, #tpu.memory_space<smem>>
    %c1 = arith.constant 1 : index
    %1 = memref.load %arg2[%c1] : memref<32xf32, #tpu.memory_space<smem>>
    %c2 = arith.constant 2 : index
    %2 = memref.load %arg2[%c2] : memref<32xf32, #tpu.memory_space<smem>>
    %c3 = arith.constant 3 : index
    %3 = memref.load %arg2[%c3] : memref<32xf32, #tpu.memory_space<smem>>
    %c4 = arith.constant 4 : index
    %4 = memref.load %arg2[%c4] : memref<32xf32, #tpu.memory_space<smem>>
    %c5 = arith.constant 5 : index
    %5 = memref.load %arg2[%c5] : memref<32xf32, #tpu.memory_space<smem>>
    %c6 = arith.constant 6 : index
    %6 = memref.load %arg2[%c6] : memref<32xf32, #tpu.memory_space<smem>>
    %c7 = arith.constant 7 : index
    %7 = memref.load %arg2[%c7] : memref<32xf32, #tpu.memory_space<smem>>
    %c8 = arith.constant 8 : index
    %8 = memref.load %arg2[%c8] : memref<32xf32, #tpu.memory_space<smem>>
    %c9 = arith.constant 9 : index
    %9 = memref.load %arg2[%c9] : memref<32xf32, #tpu.memory_space<smem>>
    %c10 = arith.constant 10 : index
    %10 = memref.load %arg2[%c10] : memref<32xf32, #tpu.memory_space<smem>>
    %c11 = arith.constant 11 : index
    %11 = memref.load %arg2[%c11] : memref<32xf32, #tpu.memory_space<smem>>
    %c12 = arith.constant 12 : index
    %12 = memref.load %arg2[%c12] : memref<32xf32, #tpu.memory_space<smem>>
    %c13 = arith.constant 13 : index
    %13 = memref.load %arg2[%c13] : memref<32xf32, #tpu.memory_space<smem>>
    %c14 = arith.constant 14 : index
    %14 = memref.load %arg2[%c14] : memref<32xf32, #tpu.memory_space<smem>>
    %c15 = arith.constant 15 : index
    %15 = memref.load %arg2[%c15] : memref<32xf32, #tpu.memory_space<smem>>
    %c16 = arith.constant 16 : index
    %16 = memref.load %arg2[%c16] : memref<32xf32, #tpu.memory_space<smem>>
    %c17 = arith.constant 17 : index
    %17 = memref.load %arg2[%c17] : memref<32xf32, #tpu.memory_space<smem>>
    %c18 = arith.constant 18 : index
    %18 = memref.load %arg2[%c18] : memref<32xf32, #tpu.memory_space<smem>>
    %c19 = arith.constant 19 : index
    %19 = memref.load %arg2[%c19] : memref<32xf32, #tpu.memory_space<smem>>
    %c20 = arith.constant 20 : index
    %20 = memref.load %arg2[%c20] : memref<32xf32, #tpu.memory_space<smem>>
    %c21 = arith.constant 21 : index
    %21 = memref.load %arg2[%c21] : memref<32xf32, #tpu.memory_space<smem>>
    %c22 = arith.constant 22 : index
    %22 = memref.load %arg2[%c22] : memref<32xf32, #tpu.memory_space<smem>>
    %c23 = arith.constant 23 : index
    %23 = memref.load %arg2[%c23] : memref<32xf32, #tpu.memory_space<smem>>
    %c24 = arith.constant 24 : index
    %24 = memref.load %arg2[%c24] : memref<32xf32, #tpu.memory_space<smem>>
    %c25 = arith.constant 25 : index
    %25 = memref.load %arg2[%c25] : memref<32xf32, #tpu.memory_space<smem>>
    %c26 = arith.constant 26 : index
    %26 = memref.load %arg2[%c26] : memref<32xf32, #tpu.memory_space<smem>>
    %c27 = arith.constant 27 : index
    %27 = memref.load %arg2[%c27] : memref<32xf32, #tpu.memory_space<smem>>
    %c28 = arith.constant 28 : index
    %28 = memref.load %arg2[%c28] : memref<32xf32, #tpu.memory_space<smem>>
    %c29 = arith.constant 29 : index
    %29 = memref.load %arg2[%c29] : memref<32xf32, #tpu.memory_space<smem>>
    %c30 = arith.constant 30 : index
    %30 = memref.load %arg2[%c30] : memref<32xf32, #tpu.memory_space<smem>>
    %c31 = arith.constant 31 : index
    %31 = memref.load %arg2[%c31] : memref<32xf32, #tpu.memory_space<smem>>
    %c0_0 = arith.constant 0 : index
    %32 = memref.load %arg3[%c0_0] : memref<32xf32, #tpu.memory_space<smem>>
    %c1_1 = arith.constant 1 : index
    %33 = memref.load %arg3[%c1_1] : memref<32xf32, #tpu.memory_space<smem>>
    %c2_2 = arith.constant 2 : index
    %34 = memref.load %arg3[%c2_2] : memref<32xf32, #tpu.memory_space<smem>>
    %c3_3 = arith.constant 3 : index
    %35 = memref.load %arg3[%c3_3] : memref<32xf32, #tpu.memory_space<smem>>
    %c4_4 = arith.constant 4 : index
    %36 = memref.load %arg3[%c4_4] : memref<32xf32, #tpu.memory_space<smem>>
    %c5_5 = arith.constant 5 : index
    %37 = memref.load %arg3[%c5_5] : memref<32xf32, #tpu.memory_space<smem>>
    %c6_6 = arith.constant 6 : index
    %38 = memref.load %arg3[%c6_6] : memref<32xf32, #tpu.memory_space<smem>>
    %c7_7 = arith.constant 7 : index
    %39 = memref.load %arg3[%c7_7] : memref<32xf32, #tpu.memory_space<smem>>
    %c8_8 = arith.constant 8 : index
    %40 = memref.load %arg3[%c8_8] : memref<32xf32, #tpu.memory_space<smem>>
    %c9_9 = arith.constant 9 : index
    %41 = memref.load %arg3[%c9_9] : memref<32xf32, #tpu.memory_space<smem>>
    %c10_10 = arith.constant 10 : index
    %42 = memref.load %arg3[%c10_10] : memref<32xf32, #tpu.memory_space<smem>>
    %c11_11 = arith.constant 11 : index
    %43 = memref.load %arg3[%c11_11] : memref<32xf32, #tpu.memory_space<smem>>
    %c12_12 = arith.constant 12 : index
    %44 = memref.load %arg3[%c12_12] : memref<32xf32, #tpu.memory_space<smem>>
    %c13_13 = arith.constant 13 : index
    %45 = memref.load %arg3[%c13_13] : memref<32xf32, #tpu.memory_space<smem>>
    %c14_14 = arith.constant 14 : index
    %46 = memref.load %arg3[%c14_14] : memref<32xf32, #tpu.memory_space<smem>>
    %c15_15 = arith.constant 15 : index
    %47 = memref.load %arg3[%c15_15] : memref<32xf32, #tpu.memory_space<smem>>
    %c16_16 = arith.constant 16 : index
    %48 = memref.load %arg3[%c16_16] : memref<32xf32, #tpu.memory_space<smem>>
    %c17_17 = arith.constant 17 : index
    %49 = memref.load %arg3[%c17_17] : memref<32xf32, #tpu.memory_space<smem>>
    %c18_18 = arith.constant 18 : index
    %50 = memref.load %arg3[%c18_18] : memref<32xf32, #tpu.memory_space<smem>>
    %c19_19 = arith.constant 19 : index
    %51 = memref.load %arg3[%c19_19] : memref<32xf32, #tpu.memory_space<smem>>
    %c20_20 = arith.constant 20 : index
    %52 = memref.load %arg3[%c20_20] : memref<32xf32, #tpu.memory_space<smem>>
    %c21_21 = arith.constant 21 : index
    %53 = memref.load %arg3[%c21_21] : memref<32xf32, #tpu.memory_space<smem>>
    %c22_22 = arith.constant 22 : index
    %54 = memref.load %arg3[%c22_22] : memref<32xf32, #tpu.memory_space<smem>>
    %c23_23 = arith.constant 23 : index
    %55 = memref.load %arg3[%c23_23] : memref<32xf32, #tpu.memory_space<smem>>
    %c24_24 = arith.constant 24 : index
    %56 = memref.load %arg3[%c24_24] : memref<32xf32, #tpu.memory_space<smem>>
    %c25_25 = arith.constant 25 : index
    %57 = memref.load %arg3[%c25_25] : memref<32xf32, #tpu.memory_space<smem>>
    %c26_26 = arith.constant 26 : index
    %58 = memref.load %arg3[%c26_26] : memref<32xf32, #tpu.memory_space<smem>>
    %c27_27 = arith.constant 27 : index
    %59 = memref.load %arg3[%c27_27] : memref<32xf32, #tpu.memory_space<smem>>
    %c28_28 = arith.constant 28 : index
    %60 = memref.load %arg3[%c28_28] : memref<32xf32, #tpu.memory_space<smem>>
    %c29_29 = arith.constant 29 : index
    %61 = memref.load %arg3[%c29_29] : memref<32xf32, #tpu.memory_space<smem>>
    %c30_30 = arith.constant 30 : index
    %62 = memref.load %arg3[%c30_30] : memref<32xf32, #tpu.memory_space<smem>>
    %c31_31 = arith.constant 31 : index
    %63 = memref.load %arg3[%c31_31] : memref<32xf32, #tpu.memory_space<smem>>
    %c0_32 = arith.constant 0 : index
    %64 = memref.load %arg4[%c0_32] : memref<64xf32, #tpu.memory_space<smem>>
    %c1_33 = arith.constant 1 : index
    %65 = memref.load %arg4[%c1_33] : memref<64xf32, #tpu.memory_space<smem>>
    %c2_34 = arith.constant 2 : index
    %66 = memref.load %arg4[%c2_34] : memref<64xf32, #tpu.memory_space<smem>>
    %c3_35 = arith.constant 3 : index
    %67 = memref.load %arg4[%c3_35] : memref<64xf32, #tpu.memory_space<smem>>
    %c4_36 = arith.constant 4 : index
    %68 = memref.load %arg4[%c4_36] : memref<64xf32, #tpu.memory_space<smem>>
    %c5_37 = arith.constant 5 : index
    %69 = memref.load %arg4[%c5_37] : memref<64xf32, #tpu.memory_space<smem>>
    %c6_38 = arith.constant 6 : index
    %70 = memref.load %arg4[%c6_38] : memref<64xf32, #tpu.memory_space<smem>>
    %c7_39 = arith.constant 7 : index
    %71 = memref.load %arg4[%c7_39] : memref<64xf32, #tpu.memory_space<smem>>
    %c8_40 = arith.constant 8 : index
    %72 = memref.load %arg4[%c8_40] : memref<64xf32, #tpu.memory_space<smem>>
    %c9_41 = arith.constant 9 : index
    %73 = memref.load %arg4[%c9_41] : memref<64xf32, #tpu.memory_space<smem>>
    %c10_42 = arith.constant 10 : index
    %74 = memref.load %arg4[%c10_42] : memref<64xf32, #tpu.memory_space<smem>>
    %c11_43 = arith.constant 11 : index
    %75 = memref.load %arg4[%c11_43] : memref<64xf32, #tpu.memory_space<smem>>
    %c12_44 = arith.constant 12 : index
    %76 = memref.load %arg4[%c12_44] : memref<64xf32, #tpu.memory_space<smem>>
    %c13_45 = arith.constant 13 : index
    %77 = memref.load %arg4[%c13_45] : memref<64xf32, #tpu.memory_space<smem>>
    %c14_46 = arith.constant 14 : index
    %78 = memref.load %arg4[%c14_46] : memref<64xf32, #tpu.memory_space<smem>>
    %c15_47 = arith.constant 15 : index
    %79 = memref.load %arg4[%c15_47] : memref<64xf32, #tpu.memory_space<smem>>
    %c16_48 = arith.constant 16 : index
    %80 = memref.load %arg4[%c16_48] : memref<64xf32, #tpu.memory_space<smem>>
    %c17_49 = arith.constant 17 : index
    %81 = memref.load %arg4[%c17_49] : memref<64xf32, #tpu.memory_space<smem>>
    %c18_50 = arith.constant 18 : index
    %82 = memref.load %arg4[%c18_50] : memref<64xf32, #tpu.memory_space<smem>>
    %c19_51 = arith.constant 19 : index
    %83 = memref.load %arg4[%c19_51] : memref<64xf32, #tpu.memory_space<smem>>
    %c20_52 = arith.constant 20 : index
    %84 = memref.load %arg4[%c20_52] : memref<64xf32, #tpu.memory_space<smem>>
    %c21_53 = arith.constant 21 : index
    %85 = memref.load %arg4[%c21_53] : memref<64xf32, #tpu.memory_space<smem>>
    %c22_54 = arith.constant 22 : index
    %86 = memref.load %arg4[%c22_54] : memref<64xf32, #tpu.memory_space<smem>>
    %c23_55 = arith.constant 23 : index
    %87 = memref.load %arg4[%c23_55] : memref<64xf32, #tpu.memory_space<smem>>
    %c24_56 = arith.constant 24 : index
    %88 = memref.load %arg4[%c24_56] : memref<64xf32, #tpu.memory_space<smem>>
    %c25_57 = arith.constant 25 : index
    %89 = memref.load %arg4[%c25_57] : memref<64xf32, #tpu.memory_space<smem>>
    %c26_58 = arith.constant 26 : index
    %90 = memref.load %arg4[%c26_58] : memref<64xf32, #tpu.memory_space<smem>>
    %c27_59 = arith.constant 27 : index
    %91 = memref.load %arg4[%c27_59] : memref<64xf32, #tpu.memory_space<smem>>
    %c28_60 = arith.constant 28 : index
    %92 = memref.load %arg4[%c28_60] : memref<64xf32, #tpu.memory_space<smem>>
    %c29_61 = arith.constant 29 : index
    %93 = memref.load %arg4[%c29_61] : memref<64xf32, #tpu.memory_space<smem>>
    %c30_62 = arith.constant 30 : index
    %94 = memref.load %arg4[%c30_62] : memref<64xf32, #tpu.memory_space<smem>>
    %c31_63 = arith.constant 31 : index
    %95 = memref.load %arg4[%c31_63] : memref<64xf32, #tpu.memory_space<smem>>
    %c32 = arith.constant 32 : index
    %96 = memref.load %arg4[%c32] : memref<64xf32, #tpu.memory_space<smem>>
    %c33 = arith.constant 33 : index
    %97 = memref.load %arg4[%c33] : memref<64xf32, #tpu.memory_space<smem>>
    %c34 = arith.constant 34 : index
    %98 = memref.load %arg4[%c34] : memref<64xf32, #tpu.memory_space<smem>>
    %c35 = arith.constant 35 : index
    %99 = memref.load %arg4[%c35] : memref<64xf32, #tpu.memory_space<smem>>
    %c36 = arith.constant 36 : index
    %100 = memref.load %arg4[%c36] : memref<64xf32, #tpu.memory_space<smem>>
    %c37 = arith.constant 37 : index
    %101 = memref.load %arg4[%c37] : memref<64xf32, #tpu.memory_space<smem>>
    %c38 = arith.constant 38 : index
    %102 = memref.load %arg4[%c38] : memref<64xf32, #tpu.memory_space<smem>>
    %c39 = arith.constant 39 : index
    %103 = memref.load %arg4[%c39] : memref<64xf32, #tpu.memory_space<smem>>
    %c40 = arith.constant 40 : index
    %104 = memref.load %arg4[%c40] : memref<64xf32, #tpu.memory_space<smem>>
    %c41 = arith.constant 41 : index
    %105 = memref.load %arg4[%c41] : memref<64xf32, #tpu.memory_space<smem>>
    %c42 = arith.constant 42 : index
    %106 = memref.load %arg4[%c42] : memref<64xf32, #tpu.memory_space<smem>>
    %c43 = arith.constant 43 : index
    %107 = memref.load %arg4[%c43] : memref<64xf32, #tpu.memory_space<smem>>
    %c44 = arith.constant 44 : index
    %108 = memref.load %arg4[%c44] : memref<64xf32, #tpu.memory_space<smem>>
    %c45 = arith.constant 45 : index
    %109 = memref.load %arg4[%c45] : memref<64xf32, #tpu.memory_space<smem>>
    %c46 = arith.constant 46 : index
    %110 = memref.load %arg4[%c46] : memref<64xf32, #tpu.memory_space<smem>>
    %c47 = arith.constant 47 : index
    %111 = memref.load %arg4[%c47] : memref<64xf32, #tpu.memory_space<smem>>
    %c48 = arith.constant 48 : index
    %112 = memref.load %arg4[%c48] : memref<64xf32, #tpu.memory_space<smem>>
    %c49 = arith.constant 49 : index
    %113 = memref.load %arg4[%c49] : memref<64xf32, #tpu.memory_space<smem>>
    %c50 = arith.constant 50 : index
    %114 = memref.load %arg4[%c50] : memref<64xf32, #tpu.memory_space<smem>>
    %c51 = arith.constant 51 : index
    %115 = memref.load %arg4[%c51] : memref<64xf32, #tpu.memory_space<smem>>
    %c52 = arith.constant 52 : index
    %116 = memref.load %arg4[%c52] : memref<64xf32, #tpu.memory_space<smem>>
    %c53 = arith.constant 53 : index
    %117 = memref.load %arg4[%c53] : memref<64xf32, #tpu.memory_space<smem>>
    %c54 = arith.constant 54 : index
    %118 = memref.load %arg4[%c54] : memref<64xf32, #tpu.memory_space<smem>>
    %c55 = arith.constant 55 : index
    %119 = memref.load %arg4[%c55] : memref<64xf32, #tpu.memory_space<smem>>
    %c56 = arith.constant 56 : index
    %120 = memref.load %arg4[%c56] : memref<64xf32, #tpu.memory_space<smem>>
    %c57 = arith.constant 57 : index
    %121 = memref.load %arg4[%c57] : memref<64xf32, #tpu.memory_space<smem>>
    %c58 = arith.constant 58 : index
    %122 = memref.load %arg4[%c58] : memref<64xf32, #tpu.memory_space<smem>>
    %c59 = arith.constant 59 : index
    %123 = memref.load %arg4[%c59] : memref<64xf32, #tpu.memory_space<smem>>
    %c60 = arith.constant 60 : index
    %124 = memref.load %arg4[%c60] : memref<64xf32, #tpu.memory_space<smem>>
    %c61 = arith.constant 61 : index
    %125 = memref.load %arg4[%c61] : memref<64xf32, #tpu.memory_space<smem>>
    %c62 = arith.constant 62 : index
    %126 = memref.load %arg4[%c62] : memref<64xf32, #tpu.memory_space<smem>>
    %c63 = arith.constant 63 : index
    %127 = memref.load %arg4[%c63] : memref<64xf32, #tpu.memory_space<smem>>
    %c0_64 = arith.constant 0 : index
    %128 = memref.load %arg5[%c0_64] : memref<2xf32, #tpu.memory_space<smem>>
    %c1_65 = arith.constant 1 : index
    %129 = memref.load %arg5[%c1_65] : memref<2xf32, #tpu.memory_space<smem>>
    %c0_i32 = arith.constant 0 : i32
    %c1_i32 = arith.constant 1 : i32
    %130 = arith.muli %c0_i32, %c1_i32 : i32
    %c0_i32_66 = arith.constant 0 : i32
    %131 = arith.addi %c0_i32_66, %130 : i32
    %c16_i32 = arith.constant 16 : i32
    %132 = arith.muli %131, %c16_i32 : i32
    %133 = tpu.assume_multiple %132, 16 : i32
    %134 = arith.index_cast %133 : i32 to index
    %c0_67 = arith.constant 0 : index
    %135 = vector.load %arg1[%134, %c0_67] : memref<16x512xf32, #tpu.memory_space<vmem>>, vector<16x512xf32>
    %136 = vector.broadcast %128 : f32 to vector<16x512xf32>
    %137 = vector.broadcast %129 : f32 to vector<16x512xf32>
    %138 = vector.broadcast %0 : f32 to vector<16x512xf32>
    %139 = arith.mulf %135, %138 : vector<16x512xf32>
    %140 = vector.broadcast %32 : f32 to vector<16x512xf32>
    %141 = arith.addf %139, %140 : vector<16x512xf32>
    %cst = arith.constant 0.000000e+00 : f32
    %142 = vector.broadcast %cst : f32 to vector<16x512xf32>
    %143 = arith.maximumf %141, %142 : vector<16x512xf32>
    %144 = vector.broadcast %64 : f32 to vector<16x512xf32>
    %145 = arith.mulf %143, %144 : vector<16x512xf32>
    %146 = arith.addf %136, %145 : vector<16x512xf32>
    %147 = vector.broadcast %65 : f32 to vector<16x512xf32>
    %148 = arith.mulf %143, %147 : vector<16x512xf32>
    %149 = arith.addf %137, %148 : vector<16x512xf32>
    %150 = vector.broadcast %1 : f32 to vector<16x512xf32>
    %151 = arith.mulf %135, %150 : vector<16x512xf32>
    %152 = vector.broadcast %33 : f32 to vector<16x512xf32>
    %153 = arith.addf %151, %152 : vector<16x512xf32>
    %cst_68 = arith.constant 0.000000e+00 : f32
    %154 = vector.broadcast %cst_68 : f32 to vector<16x512xf32>
    %155 = arith.maximumf %153, %154 : vector<16x512xf32>
    %156 = vector.broadcast %66 : f32 to vector<16x512xf32>
    %157 = arith.mulf %155, %156 : vector<16x512xf32>
    %158 = arith.addf %146, %157 : vector<16x512xf32>
    %159 = vector.broadcast %67 : f32 to vector<16x512xf32>
    %160 = arith.mulf %155, %159 : vector<16x512xf32>
    %161 = arith.addf %149, %160 : vector<16x512xf32>
    %162 = vector.broadcast %2 : f32 to vector<16x512xf32>
    %163 = arith.mulf %135, %162 : vector<16x512xf32>
    %164 = vector.broadcast %34 : f32 to vector<16x512xf32>
    %165 = arith.addf %163, %164 : vector<16x512xf32>
    %cst_69 = arith.constant 0.000000e+00 : f32
    %166 = vector.broadcast %cst_69 : f32 to vector<16x512xf32>
    %167 = arith.maximumf %165, %166 : vector<16x512xf32>
    %168 = vector.broadcast %68 : f32 to vector<16x512xf32>
    %169 = arith.mulf %167, %168 : vector<16x512xf32>
    %170 = arith.addf %158, %169 : vector<16x512xf32>
    %171 = vector.broadcast %69 : f32 to vector<16x512xf32>
    %172 = arith.mulf %167, %171 : vector<16x512xf32>
    %173 = arith.addf %161, %172 : vector<16x512xf32>
    %174 = vector.broadcast %3 : f32 to vector<16x512xf32>
    %175 = arith.mulf %135, %174 : vector<16x512xf32>
    %176 = vector.broadcast %35 : f32 to vector<16x512xf32>
    %177 = arith.addf %175, %176 : vector<16x512xf32>
    %cst_70 = arith.constant 0.000000e+00 : f32
    %178 = vector.broadcast %cst_70 : f32 to vector<16x512xf32>
    %179 = arith.maximumf %177, %178 : vector<16x512xf32>
    %180 = vector.broadcast %70 : f32 to vector<16x512xf32>
    %181 = arith.mulf %179, %180 : vector<16x512xf32>
    %182 = arith.addf %170, %181 : vector<16x512xf32>
    %183 = vector.broadcast %71 : f32 to vector<16x512xf32>
    %184 = arith.mulf %179, %183 : vector<16x512xf32>
    %185 = arith.addf %173, %184 : vector<16x512xf32>
    %186 = vector.broadcast %4 : f32 to vector<16x512xf32>
    %187 = arith.mulf %135, %186 : vector<16x512xf32>
    %188 = vector.broadcast %36 : f32 to vector<16x512xf32>
    %189 = arith.addf %187, %188 : vector<16x512xf32>
    %cst_71 = arith.constant 0.000000e+00 : f32
    %190 = vector.broadcast %cst_71 : f32 to vector<16x512xf32>
    %191 = arith.maximumf %189, %190 : vector<16x512xf32>
    %192 = vector.broadcast %72 : f32 to vector<16x512xf32>
    %193 = arith.mulf %191, %192 : vector<16x512xf32>
    %194 = arith.addf %182, %193 : vector<16x512xf32>
    %195 = vector.broadcast %73 : f32 to vector<16x512xf32>
    %196 = arith.mulf %191, %195 : vector<16x512xf32>
    %197 = arith.addf %185, %196 : vector<16x512xf32>
    %198 = vector.broadcast %5 : f32 to vector<16x512xf32>
    %199 = arith.mulf %135, %198 : vector<16x512xf32>
    %200 = vector.broadcast %37 : f32 to vector<16x512xf32>
    %201 = arith.addf %199, %200 : vector<16x512xf32>
    %cst_72 = arith.constant 0.000000e+00 : f32
    %202 = vector.broadcast %cst_72 : f32 to vector<16x512xf32>
    %203 = arith.maximumf %201, %202 : vector<16x512xf32>
    %204 = vector.broadcast %74 : f32 to vector<16x512xf32>
    %205 = arith.mulf %203, %204 : vector<16x512xf32>
    %206 = arith.addf %194, %205 : vector<16x512xf32>
    %207 = vector.broadcast %75 : f32 to vector<16x512xf32>
    %208 = arith.mulf %203, %207 : vector<16x512xf32>
    %209 = arith.addf %197, %208 : vector<16x512xf32>
    %210 = vector.broadcast %6 : f32 to vector<16x512xf32>
    %211 = arith.mulf %135, %210 : vector<16x512xf32>
    %212 = vector.broadcast %38 : f32 to vector<16x512xf32>
    %213 = arith.addf %211, %212 : vector<16x512xf32>
    %cst_73 = arith.constant 0.000000e+00 : f32
    %214 = vector.broadcast %cst_73 : f32 to vector<16x512xf32>
    %215 = arith.maximumf %213, %214 : vector<16x512xf32>
    %216 = vector.broadcast %76 : f32 to vector<16x512xf32>
    %217 = arith.mulf %215, %216 : vector<16x512xf32>
    %218 = arith.addf %206, %217 : vector<16x512xf32>
    %219 = vector.broadcast %77 : f32 to vector<16x512xf32>
    %220 = arith.mulf %215, %219 : vector<16x512xf32>
    %221 = arith.addf %209, %220 : vector<16x512xf32>
    %222 = vector.broadcast %7 : f32 to vector<16x512xf32>
    %223 = arith.mulf %135, %222 : vector<16x512xf32>
    %224 = vector.broadcast %39 : f32 to vector<16x512xf32>
    %225 = arith.addf %223, %224 : vector<16x512xf32>
    %cst_74 = arith.constant 0.000000e+00 : f32
    %226 = vector.broadcast %cst_74 : f32 to vector<16x512xf32>
    %227 = arith.maximumf %225, %226 : vector<16x512xf32>
    %228 = vector.broadcast %78 : f32 to vector<16x512xf32>
    %229 = arith.mulf %227, %228 : vector<16x512xf32>
    %230 = arith.addf %218, %229 : vector<16x512xf32>
    %231 = vector.broadcast %79 : f32 to vector<16x512xf32>
    %232 = arith.mulf %227, %231 : vector<16x512xf32>
    %233 = arith.addf %221, %232 : vector<16x512xf32>
    %234 = vector.broadcast %8 : f32 to vector<16x512xf32>
    %235 = arith.mulf %135, %234 : vector<16x512xf32>
    %236 = vector.broadcast %40 : f32 to vector<16x512xf32>
    %237 = arith.addf %235, %236 : vector<16x512xf32>
    %cst_75 = arith.constant 0.000000e+00 : f32
    %238 = vector.broadcast %cst_75 : f32 to vector<16x512xf32>
    %239 = arith.maximumf %237, %238 : vector<16x512xf32>
    %240 = vector.broadcast %80 : f32 to vector<16x512xf32>
    %241 = arith.mulf %239, %240 : vector<16x512xf32>
    %242 = arith.addf %230, %241 : vector<16x512xf32>
    %243 = vector.broadcast %81 : f32 to vector<16x512xf32>
    %244 = arith.mulf %239, %243 : vector<16x512xf32>
    %245 = arith.addf %233, %244 : vector<16x512xf32>
    %246 = vector.broadcast %9 : f32 to vector<16x512xf32>
    %247 = arith.mulf %135, %246 : vector<16x512xf32>
    %248 = vector.broadcast %41 : f32 to vector<16x512xf32>
    %249 = arith.addf %247, %248 : vector<16x512xf32>
    %cst_76 = arith.constant 0.000000e+00 : f32
    %250 = vector.broadcast %cst_76 : f32 to vector<16x512xf32>
    %251 = arith.maximumf %249, %250 : vector<16x512xf32>
    %252 = vector.broadcast %82 : f32 to vector<16x512xf32>
    %253 = arith.mulf %251, %252 : vector<16x512xf32>
    %254 = arith.addf %242, %253 : vector<16x512xf32>
    %255 = vector.broadcast %83 : f32 to vector<16x512xf32>
    %256 = arith.mulf %251, %255 : vector<16x512xf32>
    %257 = arith.addf %245, %256 : vector<16x512xf32>
    %258 = vector.broadcast %10 : f32 to vector<16x512xf32>
    %259 = arith.mulf %135, %258 : vector<16x512xf32>
    %260 = vector.broadcast %42 : f32 to vector<16x512xf32>
    %261 = arith.addf %259, %260 : vector<16x512xf32>
    %cst_77 = arith.constant 0.000000e+00 : f32
    %262 = vector.broadcast %cst_77 : f32 to vector<16x512xf32>
    %263 = arith.maximumf %261, %262 : vector<16x512xf32>
    %264 = vector.broadcast %84 : f32 to vector<16x512xf32>
    %265 = arith.mulf %263, %264 : vector<16x512xf32>
    %266 = arith.addf %254, %265 : vector<16x512xf32>
    %267 = vector.broadcast %85 : f32 to vector<16x512xf32>
    %268 = arith.mulf %263, %267 : vector<16x512xf32>
    %269 = arith.addf %257, %268 : vector<16x512xf32>
    %270 = vector.broadcast %11 : f32 to vector<16x512xf32>
    %271 = arith.mulf %135, %270 : vector<16x512xf32>
    %272 = vector.broadcast %43 : f32 to vector<16x512xf32>
    %273 = arith.addf %271, %272 : vector<16x512xf32>
    %cst_78 = arith.constant 0.000000e+00 : f32
    %274 = vector.broadcast %cst_78 : f32 to vector<16x512xf32>
    %275 = arith.maximumf %273, %274 : vector<16x512xf32>
    %276 = vector.broadcast %86 : f32 to vector<16x512xf32>
    %277 = arith.mulf %275, %276 : vector<16x512xf32>
    %278 = arith.addf %266, %277 : vector<16x512xf32>
    %279 = vector.broadcast %87 : f32 to vector<16x512xf32>
    %280 = arith.mulf %275, %279 : vector<16x512xf32>
    %281 = arith.addf %269, %280 : vector<16x512xf32>
    %282 = vector.broadcast %12 : f32 to vector<16x512xf32>
    %283 = arith.mulf %135, %282 : vector<16x512xf32>
    %284 = vector.broadcast %44 : f32 to vector<16x512xf32>
    %285 = arith.addf %283, %284 : vector<16x512xf32>
    %cst_79 = arith.constant 0.000000e+00 : f32
    %286 = vector.broadcast %cst_79 : f32 to vector<16x512xf32>
    %287 = arith.maximumf %285, %286 : vector<16x512xf32>
    %288 = vector.broadcast %88 : f32 to vector<16x512xf32>
    %289 = arith.mulf %287, %288 : vector<16x512xf32>
    %290 = arith.addf %278, %289 : vector<16x512xf32>
    %291 = vector.broadcast %89 : f32 to vector<16x512xf32>
    %292 = arith.mulf %287, %291 : vector<16x512xf32>
    %293 = arith.addf %281, %292 : vector<16x512xf32>
    %294 = vector.broadcast %13 : f32 to vector<16x512xf32>
    %295 = arith.mulf %135, %294 : vector<16x512xf32>
    %296 = vector.broadcast %45 : f32 to vector<16x512xf32>
    %297 = arith.addf %295, %296 : vector<16x512xf32>
    %cst_80 = arith.constant 0.000000e+00 : f32
    %298 = vector.broadcast %cst_80 : f32 to vector<16x512xf32>
    %299 = arith.maximumf %297, %298 : vector<16x512xf32>
    %300 = vector.broadcast %90 : f32 to vector<16x512xf32>
    %301 = arith.mulf %299, %300 : vector<16x512xf32>
    %302 = arith.addf %290, %301 : vector<16x512xf32>
    %303 = vector.broadcast %91 : f32 to vector<16x512xf32>
    %304 = arith.mulf %299, %303 : vector<16x512xf32>
    %305 = arith.addf %293, %304 : vector<16x512xf32>
    %306 = vector.broadcast %14 : f32 to vector<16x512xf32>
    %307 = arith.mulf %135, %306 : vector<16x512xf32>
    %308 = vector.broadcast %46 : f32 to vector<16x512xf32>
    %309 = arith.addf %307, %308 : vector<16x512xf32>
    %cst_81 = arith.constant 0.000000e+00 : f32
    %310 = vector.broadcast %cst_81 : f32 to vector<16x512xf32>
    %311 = arith.maximumf %309, %310 : vector<16x512xf32>
    %312 = vector.broadcast %92 : f32 to vector<16x512xf32>
    %313 = arith.mulf %311, %312 : vector<16x512xf32>
    %314 = arith.addf %302, %313 : vector<16x512xf32>
    %315 = vector.broadcast %93 : f32 to vector<16x512xf32>
    %316 = arith.mulf %311, %315 : vector<16x512xf32>
    %317 = arith.addf %305, %316 : vector<16x512xf32>
    %318 = vector.broadcast %15 : f32 to vector<16x512xf32>
    %319 = arith.mulf %135, %318 : vector<16x512xf32>
    %320 = vector.broadcast %47 : f32 to vector<16x512xf32>
    %321 = arith.addf %319, %320 : vector<16x512xf32>
    %cst_82 = arith.constant 0.000000e+00 : f32
    %322 = vector.broadcast %cst_82 : f32 to vector<16x512xf32>
    %323 = arith.maximumf %321, %322 : vector<16x512xf32>
    %324 = vector.broadcast %94 : f32 to vector<16x512xf32>
    %325 = arith.mulf %323, %324 : vector<16x512xf32>
    %326 = arith.addf %314, %325 : vector<16x512xf32>
    %327 = vector.broadcast %95 : f32 to vector<16x512xf32>
    %328 = arith.mulf %323, %327 : vector<16x512xf32>
    %329 = arith.addf %317, %328 : vector<16x512xf32>
    %330 = vector.broadcast %16 : f32 to vector<16x512xf32>
    %331 = arith.mulf %135, %330 : vector<16x512xf32>
    %332 = vector.broadcast %48 : f32 to vector<16x512xf32>
    %333 = arith.addf %331, %332 : vector<16x512xf32>
    %cst_83 = arith.constant 0.000000e+00 : f32
    %334 = vector.broadcast %cst_83 : f32 to vector<16x512xf32>
    %335 = arith.maximumf %333, %334 : vector<16x512xf32>
    %336 = vector.broadcast %96 : f32 to vector<16x512xf32>
    %337 = arith.mulf %335, %336 : vector<16x512xf32>
    %338 = arith.addf %326, %337 : vector<16x512xf32>
    %339 = vector.broadcast %97 : f32 to vector<16x512xf32>
    %340 = arith.mulf %335, %339 : vector<16x512xf32>
    %341 = arith.addf %329, %340 : vector<16x512xf32>
    %342 = vector.broadcast %17 : f32 to vector<16x512xf32>
    %343 = arith.mulf %135, %342 : vector<16x512xf32>
    %344 = vector.broadcast %49 : f32 to vector<16x512xf32>
    %345 = arith.addf %343, %344 : vector<16x512xf32>
    %cst_84 = arith.constant 0.000000e+00 : f32
    %346 = vector.broadcast %cst_84 : f32 to vector<16x512xf32>
    %347 = arith.maximumf %345, %346 : vector<16x512xf32>
    %348 = vector.broadcast %98 : f32 to vector<16x512xf32>
    %349 = arith.mulf %347, %348 : vector<16x512xf32>
    %350 = arith.addf %338, %349 : vector<16x512xf32>
    %351 = vector.broadcast %99 : f32 to vector<16x512xf32>
    %352 = arith.mulf %347, %351 : vector<16x512xf32>
    %353 = arith.addf %341, %352 : vector<16x512xf32>
    %354 = vector.broadcast %18 : f32 to vector<16x512xf32>
    %355 = arith.mulf %135, %354 : vector<16x512xf32>
    %356 = vector.broadcast %50 : f32 to vector<16x512xf32>
    %357 = arith.addf %355, %356 : vector<16x512xf32>
    %cst_85 = arith.constant 0.000000e+00 : f32
    %358 = vector.broadcast %cst_85 : f32 to vector<16x512xf32>
    %359 = arith.maximumf %357, %358 : vector<16x512xf32>
    %360 = vector.broadcast %100 : f32 to vector<16x512xf32>
    %361 = arith.mulf %359, %360 : vector<16x512xf32>
    %362 = arith.addf %350, %361 : vector<16x512xf32>
    %363 = vector.broadcast %101 : f32 to vector<16x512xf32>
    %364 = arith.mulf %359, %363 : vector<16x512xf32>
    %365 = arith.addf %353, %364 : vector<16x512xf32>
    %366 = vector.broadcast %19 : f32 to vector<16x512xf32>
    %367 = arith.mulf %135, %366 : vector<16x512xf32>
    %368 = vector.broadcast %51 : f32 to vector<16x512xf32>
    %369 = arith.addf %367, %368 : vector<16x512xf32>
    %cst_86 = arith.constant 0.000000e+00 : f32
    %370 = vector.broadcast %cst_86 : f32 to vector<16x512xf32>
    %371 = arith.maximumf %369, %370 : vector<16x512xf32>
    %372 = vector.broadcast %102 : f32 to vector<16x512xf32>
    %373 = arith.mulf %371, %372 : vector<16x512xf32>
    %374 = arith.addf %362, %373 : vector<16x512xf32>
    %375 = vector.broadcast %103 : f32 to vector<16x512xf32>
    %376 = arith.mulf %371, %375 : vector<16x512xf32>
    %377 = arith.addf %365, %376 : vector<16x512xf32>
    %378 = vector.broadcast %20 : f32 to vector<16x512xf32>
    %379 = arith.mulf %135, %378 : vector<16x512xf32>
    %380 = vector.broadcast %52 : f32 to vector<16x512xf32>
    %381 = arith.addf %379, %380 : vector<16x512xf32>
    %cst_87 = arith.constant 0.000000e+00 : f32
    %382 = vector.broadcast %cst_87 : f32 to vector<16x512xf32>
    %383 = arith.maximumf %381, %382 : vector<16x512xf32>
    %384 = vector.broadcast %104 : f32 to vector<16x512xf32>
    %385 = arith.mulf %383, %384 : vector<16x512xf32>
    %386 = arith.addf %374, %385 : vector<16x512xf32>
    %387 = vector.broadcast %105 : f32 to vector<16x512xf32>
    %388 = arith.mulf %383, %387 : vector<16x512xf32>
    %389 = arith.addf %377, %388 : vector<16x512xf32>
    %390 = vector.broadcast %21 : f32 to vector<16x512xf32>
    %391 = arith.mulf %135, %390 : vector<16x512xf32>
    %392 = vector.broadcast %53 : f32 to vector<16x512xf32>
    %393 = arith.addf %391, %392 : vector<16x512xf32>
    %cst_88 = arith.constant 0.000000e+00 : f32
    %394 = vector.broadcast %cst_88 : f32 to vector<16x512xf32>
    %395 = arith.maximumf %393, %394 : vector<16x512xf32>
    %396 = vector.broadcast %106 : f32 to vector<16x512xf32>
    %397 = arith.mulf %395, %396 : vector<16x512xf32>
    %398 = arith.addf %386, %397 : vector<16x512xf32>
    %399 = vector.broadcast %107 : f32 to vector<16x512xf32>
    %400 = arith.mulf %395, %399 : vector<16x512xf32>
    %401 = arith.addf %389, %400 : vector<16x512xf32>
    %402 = vector.broadcast %22 : f32 to vector<16x512xf32>
    %403 = arith.mulf %135, %402 : vector<16x512xf32>
    %404 = vector.broadcast %54 : f32 to vector<16x512xf32>
    %405 = arith.addf %403, %404 : vector<16x512xf32>
    %cst_89 = arith.constant 0.000000e+00 : f32
    %406 = vector.broadcast %cst_89 : f32 to vector<16x512xf32>
    %407 = arith.maximumf %405, %406 : vector<16x512xf32>
    %408 = vector.broadcast %108 : f32 to vector<16x512xf32>
    %409 = arith.mulf %407, %408 : vector<16x512xf32>
    %410 = arith.addf %398, %409 : vector<16x512xf32>
    %411 = vector.broadcast %109 : f32 to vector<16x512xf32>
    %412 = arith.mulf %407, %411 : vector<16x512xf32>
    %413 = arith.addf %401, %412 : vector<16x512xf32>
    %414 = vector.broadcast %23 : f32 to vector<16x512xf32>
    %415 = arith.mulf %135, %414 : vector<16x512xf32>
    %416 = vector.broadcast %55 : f32 to vector<16x512xf32>
    %417 = arith.addf %415, %416 : vector<16x512xf32>
    %cst_90 = arith.constant 0.000000e+00 : f32
    %418 = vector.broadcast %cst_90 : f32 to vector<16x512xf32>
    %419 = arith.maximumf %417, %418 : vector<16x512xf32>
    %420 = vector.broadcast %110 : f32 to vector<16x512xf32>
    %421 = arith.mulf %419, %420 : vector<16x512xf32>
    %422 = arith.addf %410, %421 : vector<16x512xf32>
    %423 = vector.broadcast %111 : f32 to vector<16x512xf32>
    %424 = arith.mulf %419, %423 : vector<16x512xf32>
    %425 = arith.addf %413, %424 : vector<16x512xf32>
    %426 = vector.broadcast %24 : f32 to vector<16x512xf32>
    %427 = arith.mulf %135, %426 : vector<16x512xf32>
    %428 = vector.broadcast %56 : f32 to vector<16x512xf32>
    %429 = arith.addf %427, %428 : vector<16x512xf32>
    %cst_91 = arith.constant 0.000000e+00 : f32
    %430 = vector.broadcast %cst_91 : f32 to vector<16x512xf32>
    %431 = arith.maximumf %429, %430 : vector<16x512xf32>
    %432 = vector.broadcast %112 : f32 to vector<16x512xf32>
    %433 = arith.mulf %431, %432 : vector<16x512xf32>
    %434 = arith.addf %422, %433 : vector<16x512xf32>
    %435 = vector.broadcast %113 : f32 to vector<16x512xf32>
    %436 = arith.mulf %431, %435 : vector<16x512xf32>
    %437 = arith.addf %425, %436 : vector<16x512xf32>
    %438 = vector.broadcast %25 : f32 to vector<16x512xf32>
    %439 = arith.mulf %135, %438 : vector<16x512xf32>
    %440 = vector.broadcast %57 : f32 to vector<16x512xf32>
    %441 = arith.addf %439, %440 : vector<16x512xf32>
    %cst_92 = arith.constant 0.000000e+00 : f32
    %442 = vector.broadcast %cst_92 : f32 to vector<16x512xf32>
    %443 = arith.maximumf %441, %442 : vector<16x512xf32>
    %444 = vector.broadcast %114 : f32 to vector<16x512xf32>
    %445 = arith.mulf %443, %444 : vector<16x512xf32>
    %446 = arith.addf %434, %445 : vector<16x512xf32>
    %447 = vector.broadcast %115 : f32 to vector<16x512xf32>
    %448 = arith.mulf %443, %447 : vector<16x512xf32>
    %449 = arith.addf %437, %448 : vector<16x512xf32>
    %450 = vector.broadcast %26 : f32 to vector<16x512xf32>
    %451 = arith.mulf %135, %450 : vector<16x512xf32>
    %452 = vector.broadcast %58 : f32 to vector<16x512xf32>
    %453 = arith.addf %451, %452 : vector<16x512xf32>
    %cst_93 = arith.constant 0.000000e+00 : f32
    %454 = vector.broadcast %cst_93 : f32 to vector<16x512xf32>
    %455 = arith.maximumf %453, %454 : vector<16x512xf32>
    %456 = vector.broadcast %116 : f32 to vector<16x512xf32>
    %457 = arith.mulf %455, %456 : vector<16x512xf32>
    %458 = arith.addf %446, %457 : vector<16x512xf32>
    %459 = vector.broadcast %117 : f32 to vector<16x512xf32>
    %460 = arith.mulf %455, %459 : vector<16x512xf32>
    %461 = arith.addf %449, %460 : vector<16x512xf32>
    %462 = vector.broadcast %27 : f32 to vector<16x512xf32>
    %463 = arith.mulf %135, %462 : vector<16x512xf32>
    %464 = vector.broadcast %59 : f32 to vector<16x512xf32>
    %465 = arith.addf %463, %464 : vector<16x512xf32>
    %cst_94 = arith.constant 0.000000e+00 : f32
    %466 = vector.broadcast %cst_94 : f32 to vector<16x512xf32>
    %467 = arith.maximumf %465, %466 : vector<16x512xf32>
    %468 = vector.broadcast %118 : f32 to vector<16x512xf32>
    %469 = arith.mulf %467, %468 : vector<16x512xf32>
    %470 = arith.addf %458, %469 : vector<16x512xf32>
    %471 = vector.broadcast %119 : f32 to vector<16x512xf32>
    %472 = arith.mulf %467, %471 : vector<16x512xf32>
    %473 = arith.addf %461, %472 : vector<16x512xf32>
    %474 = vector.broadcast %28 : f32 to vector<16x512xf32>
    %475 = arith.mulf %135, %474 : vector<16x512xf32>
    %476 = vector.broadcast %60 : f32 to vector<16x512xf32>
    %477 = arith.addf %475, %476 : vector<16x512xf32>
    %cst_95 = arith.constant 0.000000e+00 : f32
    %478 = vector.broadcast %cst_95 : f32 to vector<16x512xf32>
    %479 = arith.maximumf %477, %478 : vector<16x512xf32>
    %480 = vector.broadcast %120 : f32 to vector<16x512xf32>
    %481 = arith.mulf %479, %480 : vector<16x512xf32>
    %482 = arith.addf %470, %481 : vector<16x512xf32>
    %483 = vector.broadcast %121 : f32 to vector<16x512xf32>
    %484 = arith.mulf %479, %483 : vector<16x512xf32>
    %485 = arith.addf %473, %484 : vector<16x512xf32>
    %486 = vector.broadcast %29 : f32 to vector<16x512xf32>
    %487 = arith.mulf %135, %486 : vector<16x512xf32>
    %488 = vector.broadcast %61 : f32 to vector<16x512xf32>
    %489 = arith.addf %487, %488 : vector<16x512xf32>
    %cst_96 = arith.constant 0.000000e+00 : f32
    %490 = vector.broadcast %cst_96 : f32 to vector<16x512xf32>
    %491 = arith.maximumf %489, %490 : vector<16x512xf32>
    %492 = vector.broadcast %122 : f32 to vector<16x512xf32>
    %493 = arith.mulf %491, %492 : vector<16x512xf32>
    %494 = arith.addf %482, %493 : vector<16x512xf32>
    %495 = vector.broadcast %123 : f32 to vector<16x512xf32>
    %496 = arith.mulf %491, %495 : vector<16x512xf32>
    %497 = arith.addf %485, %496 : vector<16x512xf32>
    %498 = vector.broadcast %30 : f32 to vector<16x512xf32>
    %499 = arith.mulf %135, %498 : vector<16x512xf32>
    %500 = vector.broadcast %62 : f32 to vector<16x512xf32>
    %501 = arith.addf %499, %500 : vector<16x512xf32>
    %cst_97 = arith.constant 0.000000e+00 : f32
    %502 = vector.broadcast %cst_97 : f32 to vector<16x512xf32>
    %503 = arith.maximumf %501, %502 : vector<16x512xf32>
    %504 = vector.broadcast %124 : f32 to vector<16x512xf32>
    %505 = arith.mulf %503, %504 : vector<16x512xf32>
    %506 = arith.addf %494, %505 : vector<16x512xf32>
    %507 = vector.broadcast %125 : f32 to vector<16x512xf32>
    %508 = arith.mulf %503, %507 : vector<16x512xf32>
    %509 = arith.addf %497, %508 : vector<16x512xf32>
    %510 = vector.broadcast %31 : f32 to vector<16x512xf32>
    %511 = arith.mulf %135, %510 : vector<16x512xf32>
    %512 = vector.broadcast %63 : f32 to vector<16x512xf32>
    %513 = arith.addf %511, %512 : vector<16x512xf32>
    %cst_98 = arith.constant 0.000000e+00 : f32
    %514 = vector.broadcast %cst_98 : f32 to vector<16x512xf32>
    %515 = arith.maximumf %513, %514 : vector<16x512xf32>
    %516 = vector.broadcast %126 : f32 to vector<16x512xf32>
    %517 = arith.mulf %515, %516 : vector<16x512xf32>
    %518 = arith.addf %506, %517 : vector<16x512xf32>
    %519 = vector.broadcast %127 : f32 to vector<16x512xf32>
    %520 = arith.mulf %515, %519 : vector<16x512xf32>
    %521 = arith.addf %509, %520 : vector<16x512xf32>
    %522 = arith.mulf %518, %135 : vector<16x512xf32>
    %c0_99 = arith.constant 0 : index
    %523 = arith.index_cast %133 : i32 to index
    %c0_100 = arith.constant 0 : index
    %524 = vector.load %arg6[%c0_99, %523, %c0_100] : memref<2x16x512xf32, #tpu.memory_space<vmem>>, vector<1x16x512xf32>
    %525 = vector.shape_cast %524 : vector<1x16x512xf32> to vector<16x512xf32>
    %526 = vector.shape_cast %522 : vector<16x512xf32> to vector<1x16x512xf32>
    tpu.vector_store %arg6[%c0_99, %523, %c0_100], %526 {strides = array<i32>} : memref<2x16x512xf32, #tpu.memory_space<vmem>>, vector<1x16x512xf32>,
    %527 = arith.mulf %521, %135 : vector<16x512xf32>
    %c1_101 = arith.constant 1 : index
    %528 = arith.index_cast %133 : i32 to index
    %c0_102 = arith.constant 0 : index
    %529 = vector.load %arg6[%c1_101, %528, %c0_102] : memref<2x16x512xf32, #tpu.memory_space<vmem>>, vector<1x16x512xf32>
    %530 = vector.shape_cast %529 : vector<1x16x512xf32> to vector<16x512xf32>
    %531 = vector.shape_cast %527 : vector<16x512xf32> to vector<1x16x512xf32>
    tpu.vector_store %arg6[%c1_101, %528, %c0_102], %531 {strides = array<i32>} : memref<2x16x512xf32, #tpu.memory_space<vmem>>, vector<1x16x512xf32>,
    %c1_i32_103 = arith.constant 1 : i32
    return
  }
  func.func @transform_0(%arg0: i32) -> (i32, i32) {
    %c0_i32 = arith.constant 0 : i32
    %c0_i32_0 = arith.constant 0 : i32
    return %arg0, %c0_i32 : i32, i32
  }
  func.func @transform_1(%arg0: i32) -> i32 {
    %c0_i32 = arith.constant 0 : i32
    %c0_i32_0 = arith.constant 0 : i32
    return %c0_i32 : i32
  }
  func.func @transform_2(%arg0: i32) -> i32 {
    %c0_i32 = arith.constant 0 : i32
    %c0_i32_0 = arith.constant 0 : i32
    return %c0_i32 : i32
  }
  func.func @transform_3(%arg0: i32) -> i32 {
    %c0_i32 = arith.constant 0 : i32
    %c0_i32_0 = arith.constant 0 : i32
    return %c0_i32 : i32
  }
  func.func @transform_4(%arg0: i32) -> i32 {
    %c0_i32 = arith.constant 0 : i32
    %c0_i32_0 = arith.constant 0 : i32
    return %c0_i32 : i32
  }
  func.func @transform_5(%arg0: i32) -> (i32, i32, i32) {
    %c0_i32 = arith.constant 0 : i32
    %c0_i32_0 = arith.constant 0 : i32
    %c0_i32_1 = arith.constant 0 : i32
    return %c0_i32, %arg0, %c0_i32_0 : i32, i32, i32
  }
}

</mosaic_0001>

<bundles_post_ra>
// kernel: tpu_custom_call.1
= control target key start
LH: loop header
LB: loop body
LE: loop exit
PB: predicated region body
PF: predicated region fallthrough
CT: control target
= control target key end

     0   :  { %10 = vsyncpa [#allocation3], 0  ;;  %s5056_s0 = inlined_call_operand.hbm [shape: f32[16,512], index: 0, kind: input, shape index: {}]   ;;  %s5057_s1 = inlined_call_operand.vmem [shape: f32[32], index: 1, kind: input, shape index: {}]   ;;  %s5058_s2 = inlined_call_operand.vmem [shape: f32[32], index: 2, kind: input, shape index: {}]   ;;  %s5059_s3 = inlined_call_operand.vmem [shape: f32[64], index: 3, kind: input, shape index: {}]   ;;  %s5060_s4 = inlined_call_operand.vmem [shape: f32[2], index: 4, kind: input, shape index: {}]   ;;  %s5061_s5 = inlined_call_operand.hbm [shape: f32[2,16,512], index: 5, kind: output, shape index: {}]  }
   0x1   :  { %11 = vsyncpa [#allocation5], 0 }
   0x2   :  { %12 = vsyncpa [#allocation8], 0 }
   0x3   :  { %13 = vsyncpa [#allocation11], 0  ;;  %s43_s20 = sshll.u32 %s5058_s2, 4  ;;  %s44_s20 = int_to_ptr.vmem [resolvable:$true] %s43_s20 }
   0x4   :  { %14 = vsyncpa [#allocation4], 0  ;;  %s2368_s21 = scalar_lea.vmem %s44_s20, 16  ;;  %p2373_p1 = scmp.lt.s32.totalorder %s44_s20, %s44_s20 }
   0x5   :  { %p2369_p0 = scmp.ne.s32.totalorder %s44_s20, %s2368_s21  ;;  %p2374_p2 = scmp.lt.s32.totalorder %s2368_s21, %s2368_s21 }
   0x7   :  { %p2375_p3 = por %p2374_p2, %p2373_p1 }
   0x9   :  { %p2376_p4 = pnand %p2375_p3, %p2369_p0 }
   0xb   :  { %2379 = shalt.err (!%p2376_p4)
}
   0xc   :  { %s2470_s22 = smov [#allocation7]   ;;  %s2471_s23 = smov [#allocation2]  }
   0xd   :  { %46 = dma.vmem_to_smem %s44_s20, 16, %s2470_s22, [#allocation8]  }
   0xe   :  { %s20_s24 = sshll.u32 %s2471_s23, 4  ;;  %s2380_s27 = scalar_lea.hbm %s5056_s0, 1024  ;;  %s21_s24 = int_to_ptr.vmem [resolvable:$true] %s20_s24 }
   0xf   :  { %p2381_p5 = scmp.ne.s32.totalorder %s5056_s0, %s2380_s27  ;;  %p2384_p6 = scmp.lt.u32.totalorder %s2380_s27, %s5056_s0 }
  0x11   :  { %p2386_p7 = pnand %p2384_p6, %p2381_p5 }
  0x13   :  { %2389 = shalt.err (!%p2386_p7)
}
  0x14   :  { %s2390_s6 = scalar_lea.vmem %s21_s24, 1024  ;;  %p2395_p9 = scmp.lt.s32.totalorder %s21_s24, %s21_s24 }
  0x15   :  { %p2391_p8 = scmp.ne.s32.totalorder %s21_s24, %s2390_s6  ;;  %p2396_p10 = scmp.lt.s32.totalorder %s2390_s6, %s2390_s6 }
  0x17   :  { %p2397_p11 = por %p2396_p10, %p2395_p9 }
  0x19   :  { %p2398_p12 = pnand %p2397_p11, %p2391_p8 }
  0x1b   :  { %2401 = shalt.err (!%p2398_p12)
}
  0x1c   :  { %s2472_s7 = smov 512   ;;  %s2473_s8 = smov 32  }
  0x1d   :  { %26 = dma.hbm_to_vmem [thread:$0]  %s5056_s0, 1024, %s21_s24, [#allocation3], %s2472_s7, %s2472_s7, %s2473_s8  }
  0x1e   :  { %s33_s13 = sshll.u32 %s5057_s1, 4  ;;  %s53_s16 = sshll.u32 %s5059_s3, 4  ;;  %s34_s13 = int_to_ptr.vmem [resolvable:$true] %s33_s13  ;;  %s54_s16 = int_to_ptr.vmem [resolvable:$true] %s53_s16 }
  0x1f   :  { %s2402_s17 = scalar_lea.vmem %s34_s13, 16  ;;  %p2407_p0 = scmp.lt.s32.totalorder %s34_s13, %s34_s13 }
  0x20   :  { %p2403_p13 = scmp.ne.s32.totalorder %s34_s13, %s2402_s17  ;;  %p2408_p1 = scmp.lt.s32.totalorder %s2402_s17, %s2402_s17 }
  0x22   :  { %p2409_p2 = por %p2408_p1, %p2407_p0 }
  0x24   :  { %p2410_p3 = pnand %p2409_p2, %p2403_p13 }
  0x26   :  { %2413 = shalt.err (!%p2410_p3)
}
  0x27   :  { %s2474_s18 = smov [#allocation6]   ;;  %s2414_s0 = scalar_lea.vmem %s54_s16, 16 }
  0x28   :  { %36 = dma.vmem_to_smem %s34_s13, 16, %s2474_s18, [#allocation5]  }
  0x29   :  { %p2415_p4 = scmp.ne.s32.totalorder %s54_s16, %s2414_s0  ;;  %p2419_p5 = scmp.lt.s32.totalorder %s54_s16, %s54_s16 }
  0x2a   :  { %p2420_p6 = scmp.lt.s32.totalorder %s2414_s0, %s2414_s0 }
  0x2c   :  { %p2421_p7 = por %p2420_p6, %p2419_p5 }
  0x2e   :  { %p2422_p8 = pnand %p2421_p7, %p2415_p4 }
  0x30   :  { %2425 = shalt.err (!%p2422_p8)
}
  0x31   :  { %s2475_s1 = smov [#allocation9]   ;;  %s63_s20 = sshll.u32 %s5060_s4, 4  ;;  %s64_s20 = int_to_ptr.vmem [resolvable:$true] %s63_s20 }
  0x32   :  { %56 = dma.vmem_to_smem %s54_s16, 16, %s2475_s1, [#allocation8]  }
  0x33   :  { %s2426_s21 = scalar_lea.vmem %s64_s20, 16  ;;  %p2431_p10 = scmp.lt.s32.totalorder %s64_s20, %s64_s20 }
  0x34   :  { %p2427_p9 = scmp.ne.s32.totalorder %s64_s20, %s2426_s21  ;;  %p2432_p11 = scmp.lt.s32.totalorder %s2426_s21, %s2426_s21 }
  0x36   :  { %p2433_p12 = por %p2432_p11, %p2431_p10 }
  0x38   :  { %p2434_p13 = pnand %p2433_p12, %p2427_p9 }
  0x3a   :  { %2437 = shalt.err (!%p2434_p13)
}
  0x3b   :  { %s2476_s22 = smov [#allocation10]  }
  0x3c   :  { %66 = dma.vmem_to_smem %s64_s20, 16, %s2476_s22, [#allocation11]  }
  0x3d   :  { %2460 = dma.done.wait [#allocation3], 1024  }
  0x3e   :  { %2461 = vsyncadd [#allocation3], 4294966272 }
  0x3f   :  { %2462 = dma.done.wait [#allocation5], 16  }
  0x40   :  { %2463 = vsyncadd [#allocation5], 4294967280 }
  0x41   :  { %2464 = dma.done.wait [#allocation8], 32  }
  0x42   :  { %2465 = vsyncadd [#allocation8], 4294967264 }
  0x43   :  { %2466 = dma.done.wait [#allocation11], 16  }
  0x44   :  { %2467 = vsyncadd [#allocation11], 4294967280 }
  0x45   :  { %82 = sfence }
  0x46   :  { %s83_s4 = sld [smem:[#allocation6]]  ;;  %s2204_s23 = sld [smem:[#allocation6 + $0x1]]  ;;  %v2543_v0 = vld [vmem:[#allocation2] sm:$0xff]  ;;  %v2545_v1 = vld [vmem:[#allocation2 + $0x8] sm:$0xff]  ;;  %v2547_v2 = vld [vmem:[#allocation2 + $0x10] sm:$0xff] }
  0x47   :  { %s2535_s24 = sld [smem:[#allocation6 + $0x2]]  ;;  %s2537_s25 = sld [smem:[#allocation6 + $0x3]]  ;;  %5095 = vst [vmem:[#allocation18_spill] sm:$0xff] %v2543_v0  ;;  %5096 = vst [vmem:[#allocation19_spill] sm:$0xff] %v2545_v1  ;;  %v2549_v3 = vld [vmem:[#allocation2 + $0x18] sm:$0xff]  ;;  %v2551_v4 = vld [vmem:[#allocation2 + $0x20] sm:$0xff] }
  0x48   :  { %s2539_s26 = sld [smem:[#allocation6 + $0x4]]  ;;  %s2541_s27 = sld [smem:[#allocation6 + $0x5]]  ;;  %5097 = vst [vmem:[#allocation20_spill] sm:$0xff] %v2547_v2  ;;  %5098 = vst [vmem:[#allocation21_spill] sm:$0xff] %v2549_v3  ;;  %v2553_v5 = vld [vmem:[#allocation2 + $0x28] sm:$0xff]  ;;  %v2555_v6 = vld [vmem:[#allocation2 + $0x30] sm:$0xff] }
  0x49   :  { %5099 = vst [vmem:[#allocation22_spill] sm:$0xff] %v2551_v4  ;;  %5100 = vst [vmem:[#allocation23_spill] sm:$0xff] %v2553_v5  ;;  %v2557_v7 = vld [vmem:[#allocation2 + $0x38] sm:$0xff]  ;;  %s2607_s28 = sld [smem:[#allocation6 + $0x6]]  ;;  %s2609_s2 = sld [smem:[#allocation6 + $0x7]] }
  0x4a   :  { %5101 = vst [vmem:[#allocation24_spill] sm:$0xff] %v2555_v6  ;;  %5102 = vst [vmem:[#allocation25_spill] sm:$0xff] %v2557_v7  ;;  %s2615_s29 = sld [smem:[#allocation6 + $0x8]]  ;;  %s2617_s30 = sld [smem:[#allocation6 + $0x9]] }
  0x4b   :  { %s115_s6 = sld [smem:[#allocation7]]  ;;  %s2235_s9 = sld [smem:[#allocation7 + $0x1]] }
  0x4c   :  { %v226_v8 = vstv %s83_s4  ;;  %v286_v9 = vstv %s2204_s23  ;;  %s2727_s10 = sld [smem:[#allocation7 + $0x2]]  ;;  %s2729_s11 = sld [smem:[#allocation7 + $0x3]] }
  0x4d   :  { %v2560_v10 = vmul.f32 %v226_v8, %v2543_v0  ;;  %v2563_v11 = vmul.f32 %v226_v8, %v2545_v1  ;;  %v2566_v12 = vmul.f32 %v226_v8, %v2547_v2  ;;  %v2569_v13 = vmul.f32 %v226_v8, %v2549_v3  ;;  %s147_s12 = sld [smem:[#allocation9]]  ;;  %s2266_s13 = sld [smem:[#allocation9 + $0x1]] }
  0x4e   :  { %v2572_v14 = vmul.f32 %v226_v8, %v2551_v4  ;;  %v2575_v15 = vmul.f32 %v226_v8, %v2553_v5  ;;  %v2578_v16 = vmul.f32 %v226_v8, %v2555_v6  ;;  %v2581_v17 = vmul.f32 %v226_v8, %v2557_v7  ;;  %s2847_s14 = sld [smem:[#allocation9 + $0x2]]  ;;  %s2849_s15 = sld [smem:[#allocation9 + $0x3]] }
  0x4f   :  { %v2584_v18 = vmul.f32 %v286_v9, %v2543_v0  ;;  %v2587_v19 = vmul.f32 %v286_v9, %v2545_v1  ;;  %v2590_v20 = vmul.f32 %v286_v9, %v2547_v2  ;;  %v2593_v21 = vmul.f32 %v286_v9, %v2549_v3  ;;  %s2859_s16 = sld [smem:[#allocation9 + $0x4]]  ;;  %s2861_s17 = sld [smem:[#allocation9 + $0x5]] }
  0x50   :  { %v2596_v22 = vmul.f32 %v286_v9, %v2551_v4  ;;  %v2599_v23 = vmul.f32 %v286_v9, %v2553_v5  ;;  %v2602_v24 = vmul.f32 %v286_v9, %v2555_v6  ;;  %v2605_v25 = vmul.f32 %v286_v9, %v2557_v7  ;;  %s2957_s18 = sld [smem:[#allocation9 + $0x6]]  ;;  %s2959_s0 = sld [smem:[#allocation9 + $0x7]] }
  0x51   :  { %v346_v26 = vstv %s2535_s24  ;;  %v406_v27 = vstv %s2537_s25  ;;  %v466_v28 = vstv %s2539_s26  ;;  %v526_v29 = vstv %s2541_s27  ;;  %s3041_s1 = sld [smem:[#allocation7 + $0x4]]  ;;  %s3043_s3 = sld [smem:[#allocation9 + $0x8]] }
  0x52   :  { %v2620_v30 = vmul.f32 %v346_v26, %v2543_v0  ;;  %v2623_v31 = vmul.f32 %v346_v26, %v2545_v1  ;;  %v2626_v32 = vmul.f32 %v346_v26, %v2547_v2  ;;  %v2629_v33 = vmul.f32 %v346_v26, %v2549_v3  ;;  %s3093_s19 = sld [smem:[#allocation7 + $0x5]]  ;;  %s3095_s20 = sld [smem:[#allocation9 + $0x9]] }
  0x53   :  { %v2632_v34 = vmul.f32 %v346_v26, %v2551_v4  ;;  %v2635_v35 = vmul.f32 %v346_v26, %v2553_v5  ;;  %v2638_v36 = vmul.f32 %v346_v26, %v2555_v6  ;;  %v2641_v37 = vmul.f32 %v346_v26, %v2557_v7  ;;  %s211_s21 = sld [smem:[#allocation10]]  ;;  %s2329_s22 = sld [smem:[#allocation10 + $0x1]] }
  0x54   :  { %v2644_v38 = vmul.f32 %v406_v27, %v2543_v0  ;;  %v2647_v39 = vmul.f32 %v406_v27, %v2545_v1  ;;  %v2650_v40 = vmul.f32 %v406_v27, %v2547_v2  ;;  %v2653_v41 = vmul.f32 %v406_v27, %v2549_v3  ;;  %s3275_s4 = sld [smem:[#allocation9 + $0xa]]  ;;  %s3277_s23 = sld [smem:[#allocation9 + $0xb]] }
  0x55   :  { %v2656_v42 = vmul.f32 %v406_v27, %v2551_v4  ;;  %v2659_v43 = vmul.f32 %v406_v27, %v2553_v5  ;;  %v2662_v44 = vmul.f32 %v406_v27, %v2555_v6  ;;  %v2665_v45 = vmul.f32 %v406_v27, %v2557_v7  ;;  %s3311_s24 = sld [smem:[#allocation7 + $0x6]]  ;;  %s3319_s25 = sld [smem:[#allocation9 + $0xc]] }
  0x56   :  { %v2668_v46 = vmul.f32 %v466_v28, %v2543_v0  ;;  %v2671_v47 = vmul.f32 %v466_v28, %v2545_v1  ;;  %v2674_v48 = vmul.f32 %v466_v28, %v2547_v2  ;;  %v2677_v49 = vmul.f32 %v466_v28, %v2549_v3  ;;  %s3321_s26 = sld [smem:[#allocation9 + $0xd]]  ;;  %s3366_s27 = sld [smem:[#allocation7 + $0x7]] }
  0x57   :  { %v2680_v50 = vmul.f32 %v466_v28, %v2551_v4  ;;  %v2683_v51 = vmul.f32 %v466_v28, %v2553_v5  ;;  %v2686_v52 = vmul.f32 %v466_v28, %v2555_v6  ;;  %v2689_v53 = vmul.f32 %v466_v28, %v2557_v7 }
  0x58   :  { %v2692_v54 = vmul.f32 %v526_v29, %v2543_v0  ;;  %v2695_v55 = vmul.f32 %v526_v29, %v2545_v1  ;;  %v2698_v56 = vmul.f32 %v526_v29, %v2547_v2  ;;  %v2701_v57 = vmul.f32 %v526_v29, %v2549_v3 }
  0x59   :  { %v2704_v58 = vmul.f32 %v526_v29, %v2551_v4  ;;  %v2707_v59 = vmul.f32 %v526_v29, %v2553_v5  ;;  %v2710_v60 = vmul.f32 %v526_v29, %v2555_v6  ;;  %v2713_v61 = vmul.f32 %v526_v29, %v2557_v7 }
  0x5a   :  { %v2716_v62 = vstv %s2607_s28  ;;  %v2719_v63 = vstv %s2609_s2  ;;  %v2722_v8 = vstv %s2615_s29  ;;  %v2725_v9 = vstv %s2617_s30  ;;  %s3384_s28 = sld [smem:[#allocation9 + $0xe]]  ;;  %s3386_s2 = sld [smem:[#allocation9 + $0xf]] }
  0x5b   :  { %5103 = vst [vmem:[#allocation26_spill] sm:$0xff] %v2716_v62  ;;  %5104 = vst [vmem:[#allocation27_spill] sm:$0xff] %v2719_v63  ;;  %v2733_v26 = vmul.f32 %v2716_v62, %v2543_v0  ;;  %v2737_v27 = vmul.f32 %v2716_v62, %v2545_v1  ;;  %v2741_v28 = vmul.f32 %v2716_v62, %v2547_v2  ;;  %s3409_s29 = sld [smem:[#allocation7 + $0x8]] }
  0x5c   :  { %5105 = vst [vmem:[#allocation28_spill] sm:$0xff] %v2722_v8  ;;  %5106 = vst [vmem:[#allocation29_spill] sm:$0xff] %v2725_v9  ;;  %v2745_v29 = vmul.f32 %v2716_v62, %v2549_v3  ;;  %v235_v9 = vstv %s115_s6  ;;  %v295_v8 = vstv %s2235_s9  ;;  %v2749_v63 = vmul.f32 %v2716_v62, %v2551_v4  ;;  %s3411_s30 = sld [smem:[#allocation9 + $0x10]]  ;;  %s3479_s6 = sld [smem:[#allocation9 + $0x11]] }
  0x5d   :  { %5107 = vst [vmem:[#allocation30_spill] sm:$0xff] %v2733_v26  ;;  %5108 = vst [vmem:[#allocation31_spill] sm:$0xff] %v2737_v27  ;;  %v2753_v26 = vmul.f32 %v2716_v62, %v2553_v5  ;;  %v2756_v1 = vadd.f32 %v235_v9, %v2560_v10  ;;  %v2759_v2 = vadd.f32 %v235_v9, %v2563_v11  ;;  %v355_v11 = vstv %s2727_s10  ;;  %s3481_s9 = sld [smem:[#allocation7 + $0x9]]  ;;  %s3483_s10 = sld [smem:[#allocation9 + $0x12]] }
  0x5e   :  { %5109 = vst [vmem:[#allocation32_spill] sm:$0xff] %v2741_v28  ;;  %5110 = vst [vmem:[#allocation33_spill] sm:$0xff] %v2745_v29  ;;  %v2762_v28 = vadd.f32 %v235_v9, %v2566_v12  ;;  %v2765_v3 = vadd.f32 %v235_v9, %v2569_v13  ;;  %v2768_v29 = vadd.f32 %v235_v9, %v2572_v14 }
  0x5f   :  { %5111 = vst [vmem:[#allocation34_spill] sm:$0xff] %v2749_v63  ;;  %5112 = vst [vmem:[#allocation35_spill] sm:$0xff] %v2753_v26  ;;  %v2771_v4 = vadd.f32 %v235_v9, %v2575_v15  ;;  %v2774_v5 = vadd.f32 %v235_v9, %v2578_v16  ;;  %v2777_v10 = vadd.f32 %v235_v9, %v2581_v17  ;;  %v5113_v9 = vmax.f32 %v2756_v1, 0.0 }
  0x60   :  { %v2782_v26 = vadd.f32 %v295_v8, %v2584_v18  ;;  %v2785_v13 = vadd.f32 %v295_v8, %v2587_v19  ;;  %v2790_v16 = vadd.f32 %v295_v8, %v2590_v20  ;;  %v2793_v17 = vadd.f32 %v295_v8, %v2593_v21 }
  0x61   :  { %v2798_v12 = vadd.f32 %v295_v8, %v2596_v22  ;;  %v2801_v19 = vadd.f32 %v295_v8, %v2599_v23  ;;  %v2806_v20 = vadd.f32 %v295_v8, %v2602_v24  ;;  %v2809_v21 = vadd.f32 %v295_v8, %v2605_v25 }
  0x62   :  { %v415_v22 = vstv %s2729_s11  ;;  %v2818_v14 = vadd.f32 %v355_v11, %v2620_v30  ;;  %v2821_v15 = vadd.f32 %v355_v11, %v2623_v31  ;;  %v2826_v8 = vadd.f32 %v355_v11, %v2626_v32  ;;  %s3485_s11 = sld [smem:[#allocation9 + $0x13]] }
  0x63   :  { %v2829_v18 = vadd.f32 %v355_v11, %v2629_v33  ;;  %v2834_v63 = vadd.f32 %v355_v11, %v2632_v34  ;;  %v2837_v31 = vadd.f32 %v355_v11, %v2635_v35  ;;  %v2840_v25 = vadd.f32 %v355_v11, %v2638_v36 }
  0x64   :  { %v2843_v32 = vadd.f32 %v355_v11, %v2641_v37  ;;  %v2854_v35 = vadd.f32 %v415_v22, %v2644_v38  ;;  %v2857_v36 = vadd.f32 %v415_v22, %v2647_v39  ;;  %v2866_v24 = vadd.f32 %v415_v22, %v2650_v40 }
  0x65   :  { %v2869_v34 = vadd.f32 %v415_v22, %v2653_v41  ;;  %v2874_v39 = vadd.f32 %v415_v22, %v2656_v42  ;;  %v2877_v33 = vadd.f32 %v415_v22, %v2659_v43  ;;  %v2880_v37 = vadd.f32 %v415_v22, %v2662_v44 }
  0x66   :  { %v2883_v11 = vadd.f32 %v415_v22, %v2665_v45  ;;  %v252_v23 = vstv %s147_s12  ;;  %v269_v38 = vstv %s2266_s13  ;;  %v5114_v44 = vmax.f32 %v2759_v2, 0.0  ;;  %s3543_s12 = sld [smem:[#allocation6 + $0xa]] }
  0x67   :  { %v2891_v43 = vmul.f32 %v252_v23, %v5113_v9  ;;  %v5115_v45 = vmax.f32 %v2762_v28, 0.0  ;;  %v5116_v41 = vmax.f32 %v2765_v3, 0.0  ;;  %v5118_v42 = vmax.f32 %v2768_v29, 0.0  ;;  %s3545_s13 = sld [smem:[#allocation7 + $0xa]] }
  0x68   :  { %v2895_v27 = vmul.f32 %v252_v23, %v5114_v44  ;;  %v5120_v40 = vmax.f32 %v2771_v4, 0.0  ;;  %v5122_v44 = vmax.f32 %v2774_v5, 0.0 }
  0x69   :  { %v2899_v22 = vmul.f32 %v252_v23, %v5115_v45  ;;  %v2903_v30 = vmul.f32 %v252_v23, %v5116_v41  ;;  %v2907_v9 = vmul.f32 %v252_v23, %v5118_v42  ;;  %v5124_v45 = vmax.f32 %v2777_v10, 0.0 }
  0x6a   :  { %v2911_v0 = vmul.f32 %v252_v23, %v5120_v40  ;;  %v2915_v7 = vmul.f32 %v252_v23, %v5122_v44  ;;  %v5125_v41 = vmax.f32 %v2756_v1, 0.0  ;;  %v5131_v1 = vmax.f32 %v2771_v4, 0.0 }
  0x6b   :  { %5117 = vst [vmem:[#allocation36_spill] sm:$0xff] %v2903_v30  ;;  %5119 = vst [vmem:[#allocation37_spill] sm:$0xff] %v2907_v9  ;;  %v2919_v62 = vmul.f32 %v252_v23, %v5124_v45  ;;  %v5126_v30 = vmax.f32 %v2759_v2, 0.0  ;;  %v5127_v9 = vmax.f32 %v2762_v28, 0.0  ;;  %v5132_v2 = vmax.f32 %v2774_v5, 0.0 }
  0x6c   :  { %5121 = vst [vmem:[#allocation38_spill] sm:$0xff] %v2911_v0  ;;  %5123 = vst [vmem:[#allocation39_spill] sm:$0xff] %v2915_v7  ;;  %v2923_v6 = vmul.f32 %v269_v38, %v5125_v41  ;;  %v5128_v0 = vmax.f32 %v2765_v3, 0.0  ;;  %v5130_v7 = vmax.f32 %v2768_v29, 0.0  ;;  %v2943_v45 = vmul.f32 %v269_v38, %v5131_v1 }
  0x6d   :  { %v2927_v42 = vmul.f32 %v269_v38, %v5126_v30  ;;  %v2931_v40 = vmul.f32 %v269_v38, %v5127_v9  ;;  %v2947_v30 = vmul.f32 %v269_v38, %v5132_v2  ;;  %v5134_v28 = vmax.f32 %v2777_v10, 0.0 }
  0x6e   :  { %v2935_v44 = vmul.f32 %v269_v38, %v5128_v0  ;;  %v2939_v23 = vmul.f32 %v269_v38, %v5130_v7  ;;  %v312_v41 = vstv %s2847_s14  ;;  %v329_v3 = vstv %s2849_s15  ;;  %s3547_s14 = sld [smem:[#allocation9 + $0x14]]  ;;  %s3549_s15 = sld [smem:[#allocation9 + $0x15]] }
  0x6f   :  { %5133 = vst [vmem:[#allocation41_spill] sm:$0xff] %v2947_v30  ;;  %v2951_v9 = vmul.f32 %v269_v38, %v5134_v28  ;;  %v372_v0 = vstv %s2859_s16  ;;  %v5136_v4 = vmax.f32 %v2782_v26, 0.0  ;;  %v5138_v5 = vmax.f32 %v2785_v13, 0.0  ;;  %s3603_s16 = sld [smem:[#allocation6 + $0xb]] }
  0x70   :  { %5129 = vst [vmem:[#allocation40_spill] sm:$0xff] %v2935_v44  ;;  %v389_v44 = vstv %s2861_s17  ;;  %v5140_v10 = vmax.f32 %v2790_v16, 0.0  ;;  %v5142_v1 = vmax.f32 %v2793_v17, 0.0  ;;  %v5144_v28 = vmax.f32 %v2798_v12, 0.0  ;;  %s3605_s17 = sld [smem:[#allocation7 + $0xb]] }
  0x71   :  { %5135 = vst [vmem:[#allocation42_spill] sm:$0xff] %v2951_v9  ;;  %v2963_v7 = vmul.f32 %v312_v41, %v5136_v4  ;;  %v2967_v29 = vmul.f32 %v312_v41, %v5138_v5  ;;  %v5146_v30 = vmax.f32 %v2801_v19, 0.0 }
  0x72   :  { %v2971_v38 = vmul.f32 %v312_v41, %v5140_v10  ;;  %v2975_v2 = vmul.f32 %v312_v41, %v5142_v1  ;;  %v2979_v9 = vmul.f32 %v312_v41, %v5144_v28 }
  0x73   :  { %5137 = vst [vmem:[#allocation43_spill] sm:$0xff] %v2963_v7  ;;  %5139 = vst [vmem:[#allocation44_spill] sm:$0xff] %v2967_v29  ;;  %v2983_v4 = vmul.f32 %v312_v41, %v5146_v30  ;;  %v5148_v7 = vmax.f32 %v2806_v20, 0.0  ;;  %v5150_v29 = vmax.f32 %v2809_v21, 0.0 }
  0x74   :  { %5141 = vst [vmem:[#allocation45_spill] sm:$0xff] %v2971_v38  ;;  %5143 = vst [vmem:[#allocation46_spill] sm:$0xff] %v2975_v2  ;;  %v5151_v38 = vmax.f32 %v2782_v26, 0.0  ;;  %v5152_v2 = vmax.f32 %v2785_v13, 0.0  ;;  %v5156_v26 = vmax.f32 %v2801_v19, 0.0  ;;  %v5157_v13 = vmax.f32 %v2806_v20, 0.0 }
  0x75   :  { %5145 = vst [vmem:[#allocation47_spill] sm:$0xff] %v2979_v9  ;;  %5147 = vst [vmem:[#allocation48_spill] sm:$0xff] %v2983_v4  ;;  %v2987_v5 = vmul.f32 %v312_v41, %v5148_v7  ;;  %v2991_v10 = vmul.f32 %v312_v41, %v5150_v29  ;;  %v5153_v9 = vmax.f32 %v2790_v16, 0.0  ;;  %v5154_v4 = vmax.f32 %v2793_v17, 0.0 }
  0x76   :  { %v2995_v1 = vmul.f32 %v329_v3, %v5151_v38  ;;  %v2999_v28 = vmul.f32 %v329_v3, %v5152_v2  ;;  %v3015_v29 = vmul.f32 %v329_v3, %v5156_v26  ;;  %v3019_v38 = vmul.f32 %v329_v3, %v5157_v13 }
  0x77   :  { %5149 = vst [vmem:[#allocation49_spill] sm:$0xff] %v2987_v5  ;;  %v3003_v30 = vmul.f32 %v329_v3, %v5153_v9  ;;  %v3007_v7 = vmul.f32 %v329_v3, %v5154_v4  ;;  %v5155_v5 = vmax.f32 %v2798_v12, 0.0  ;;  %v5158_v16 = vmax.f32 %v2809_v21, 0.0 }
  0x78   :  { %v5159_v17 = vmax.f32 %v2818_v14, 0.0  ;;  %v5160_v12 = vmax.f32 %v2821_v15, 0.0  ;;  %v5162_v19 = vmax.f32 %v2826_v8, 0.0  ;;  %v5164_v20 = vmax.f32 %v2829_v18, 0.0 }
  0x79   :  { %v3011_v41 = vmul.f32 %v329_v3, %v5155_v5  ;;  %v3023_v9 = vmul.f32 %v329_v3, %v5158_v16  ;;  %v5166_v21 = vmax.f32 %v2834_v63, 0.0  ;;  %v5168_v13 = vmax.f32 %v2837_v31, 0.0 }
  0x7a   :  { %v3027_v2 = vmul.f32 %v372_v0, %v5159_v17  ;;  %v3031_v4 = vmul.f32 %v372_v0, %v5160_v12  ;;  %v3035_v5 = vmul.f32 %v372_v0, %v5162_v19  ;;  %v3039_v26 = vmul.f32 %v372_v0, %v5164_v20 }
  0x7b   :  { %v3047_v3 = vmul.f32 %v372_v0, %v5166_v21  ;;  %v3051_v16 = vmul.f32 %v372_v0, %v5168_v13  ;;  %v5170_v17 = vmax.f32 %v2840_v25, 0.0  ;;  %v5172_v19 = vmax.f32 %v2843_v32, 0.0 }
  0x7c   :  { %5161 = vst [vmem:[#allocation50_spill] sm:$0xff] %v3031_v4  ;;  %5163 = vst [vmem:[#allocation51_spill] sm:$0xff] %v3035_v5  ;;  %v5174_v21 = vmax.f32 %v2821_v15, 0.0  ;;  %v5175_v13 = vmax.f32 %v2826_v8, 0.0  ;;  %v5176_v4 = vmax.f32 %v2829_v18, 0.0  ;;  %v5179_v15 = vmax.f32 %v2840_v25, 0.0 }
  0x7d   :  { %5165 = vst [vmem:[#allocation52_spill] sm:$0xff] %v3039_v26  ;;  %5167 = vst [vmem:[#allocation53_spill] sm:$0xff] %v3047_v3  ;;  %v3055_v12 = vmul.f32 %v372_v0, %v5170_v17  ;;  %v3059_v20 = vmul.f32 %v372_v0, %v5172_v19  ;;  %v5173_v26 = vmax.f32 %v2818_v14, 0.0  ;;  %v5178_v14 = vmax.f32 %v2837_v31, 0.0 }
  0x7e   :  { %5169 = vst [vmem:[#allocation54_spill] sm:$0xff] %v3051_v16  ;;  %v3067_v3 = vmul.f32 %v389_v44, %v5174_v21  ;;  %v3071_v16 = vmul.f32 %v389_v44, %v5175_v13  ;;  %v3075_v17 = vmul.f32 %v389_v44, %v5176_v4  ;;  %v3087_v19 = vmul.f32 %v389_v44, %v5179_v15 }
  0x7f   :  { %5171 = vst [vmem:[#allocation55_spill] sm:$0xff] %v3055_v12  ;;  %v3063_v5 = vmul.f32 %v389_v44, %v5173_v26  ;;  %v5177_v12 = vmax.f32 %v2834_v63, 0.0  ;;  %v3083_v26 = vmul.f32 %v389_v44, %v5178_v14  ;;  %v5180_v8 = vmax.f32 %v2843_v32, 0.0 }
  0x80   :  { %v428_v63 = vmax.f32 %v2874_v39, 0.0  ;;  %v429_v18 = vmax.f32 %v2877_v33, 0.0  ;;  %v432_v4 = vstv %s2957_s18  ;;  %v449_v31 = vstv %s2959_s0  ;;  %s3607_s18 = sld [smem:[#allocation9 + $0x16]]  ;;  %s3609_s0 = sld [smem:[#allocation9 + $0x17]] }
  0x81   :  { %v3079_v0 = vmul.f32 %v389_v44, %v5177_v12  ;;  %v3091_v21 = vmul.f32 %v389_v44, %v5180_v8  ;;  %v430_v12 = vmax.f32 %v2880_v37, 0.0  ;;  %v431_v25 = vmax.f32 %v2883_v11, 0.0 }
  0x82   :  { %v5182_v13 = vmax.f32 %v2854_v35, 0.0  ;;  %v5184_v32 = vmax.f32 %v2857_v36, 0.0  ;;  %v5186_v15 = vmax.f32 %v2866_v24, 0.0  ;;  %v5188_v33 = vmax.f32 %v2869_v34, 0.0 }
  0x83   :  { %5181 = vst [vmem:[#allocation56_spill] sm:$0xff] %v3091_v21  ;;  %v3119_v37 = vmul.f32 %v432_v4, %v428_v63  ;;  %v3121_v11 = vmul.f32 %v432_v4, %v429_v18  ;;  %v5193_v21 = vmax.f32 %v2857_v36, 0.0  ;;  %v475_v36 = vstv %s3041_s1  ;;  %s3671_s1 = sld [smem:[#allocation6 + $0xc]] }
  0x84   :  { %v3105_v14 = vmul.f32 %v432_v4, %v5182_v13  ;;  %v3109_v44 = vmul.f32 %v432_v4, %v5184_v32  ;;  %v3113_v39 = vmul.f32 %v432_v4, %v5186_v15  ;;  %v3117_v8 = vmul.f32 %v432_v4, %v5188_v33 }
  0x85   :  { %5190 = vst [vmem:[#allocation61_spill] sm:$0xff] %v3119_v37  ;;  %5191 = vst [vmem:[#allocation62_spill] sm:$0xff] %v3121_v11  ;;  %v3123_v13 = vmul.f32 %v432_v4, %v430_v12  ;;  %v5192_v32 = vmax.f32 %v2854_v35, 0.0  ;;  %v3133_v15 = vmul.f32 %v449_v31, %v5193_v21  ;;  %v5195_v37 = vmax.f32 %v2869_v34, 0.0 }
  0x86   :  { %5183 = vst [vmem:[#allocation57_spill] sm:$0xff] %v3105_v14  ;;  %5185 = vst [vmem:[#allocation58_spill] sm:$0xff] %v3109_v44  ;;  %v3125_v14 = vmul.f32 %v432_v4, %v431_v25  ;;  %v3143_v11 = vmul.f32 %v449_v31, %v428_v63  ;;  %v3145_v4 = vmul.f32 %v449_v31, %v429_v18  ;;  %v492_v21 = vstv %s3043_s3  ;;  %s3673_s3 = sld [smem:[#allocation7 + $0xc]] }
  0x87   :  { %5187 = vst [vmem:[#allocation59_spill] sm:$0xff] %v3113_v39  ;;  %5189 = vst [vmem:[#allocation60_spill] sm:$0xff] %v3117_v8  ;;  %v3129_v44 = vmul.f32 %v449_v31, %v5192_v32  ;;  %v5194_v39 = vmax.f32 %v2866_v24, 0.0  ;;  %v3141_v8 = vmul.f32 %v449_v31, %v5195_v37  ;;  %v3147_v35 = vmul.f32 %v449_v31, %v430_v12 }
  0x88   :  { %5197 = vst [vmem:[#allocation64_spill] sm:$0xff] %v3143_v11  ;;  %5198 = vst [vmem:[#allocation65_spill] sm:$0xff] %v3145_v4  ;;  %v3149_v32 = vmul.f32 %v449_v31, %v431_v25  ;;  %v476_v24 = vadd.f32 %v475_v36, %v2668_v46  ;;  %v478_v34 = vadd.f32 %v475_v36, %v2674_v48 }
  0x89   :  { %v3137_v33 = vmul.f32 %v449_v31, %v5194_v39  ;;  %5196 = vst [vmem:[#allocation63_spill] sm:$0xff] %v3141_v8  ;;  %5199 = vst [vmem:[#allocation66_spill] sm:$0xff] %v3147_v35  ;;  %v477_v39 = vadd.f32 %v475_v36, %v2671_v47  ;;  %v479_v37 = vadd.f32 %v475_v36, %v2677_v49  ;;  %v535_v35 = vstv %s3093_s19  ;;  %s3675_s19 = sld [smem:[#allocation9 + $0x18]] }
  0x8a   :  { %5200 = vst [vmem:[#allocation67_spill] sm:$0xff] %v3149_v32  ;;  %v480_v63 = vadd.f32 %v475_v36, %v2680_v50  ;;  %v481_v18 = vadd.f32 %v475_v36, %v2683_v51  ;;  %v482_v4 = vadd.f32 %v475_v36, %v2686_v52  ;;  %v483_v12 = vadd.f32 %v475_v36, %v2689_v53 }
  0x8b   :  { %v484_v31 = vmax.f32 %v476_v24, 0.0  ;;  %v485_v25 = vmax.f32 %v477_v39, 0.0  ;;  %v509_v32 = vstv %s3095_s20  ;;  %v486_v11 = vmax.f32 %v478_v34, 0.0  ;;  %s3677_s20 = sld [smem:[#allocation9 + $0x19]] }
  0x8c   :  { %v487_v46 = vmax.f32 %v479_v37, 0.0  ;;  %v3164_v47 = vadd.f32 %v535_v35, %v2692_v54  ;;  %v3167_v48 = vadd.f32 %v535_v35, %v2695_v55  ;;  %v488_v49 = vmax.f32 %v480_v63, 0.0 }
  0x8d   :  { %v489_v50 = vmax.f32 %v481_v18, 0.0  ;;  %v3169_v8 = vmul.f32 %v492_v21, %v484_v31  ;;  %v3171_v51 = vmul.f32 %v492_v21, %v485_v25  ;;  %v490_v52 = vmax.f32 %v482_v4, 0.0 }
  0x8e   :  { %5201 = vst [vmem:[#allocation68_spill] sm:$0xff] %v3164_v47  ;;  %5202 = vst [vmem:[#allocation69_spill] sm:$0xff] %v3167_v48  ;;  %v491_v53 = vmax.f32 %v483_v12, 0.0  ;;  %v3173_v36 = vmul.f32 %v492_v21, %v486_v11  ;;  %v3175_v24 = vmul.f32 %v492_v21, %v487_v46  ;;  %v3177_v39 = vmul.f32 %v492_v21, %v488_v49  ;;  %v5224_v48 = vld [vmem:[#allocation42_spill] sm:$0xff]  ;;  %v5225_v47 = vld [vmem:[#allocation43_spill] sm:$0xff] }
  0x8f   :  { %v3179_v54 = vmul.f32 %v492_v21, %v489_v50  ;;  %v3181_v55 = vmul.f32 %v509_v32, %v484_v31  ;;  %v3183_v34 = vmul.f32 %v509_v32, %v485_v25  ;;  %v3185_v37 = vmul.f32 %v492_v21, %v490_v52 }
  0x90   :  { %5203 = vst [vmem:[#allocation70_spill] sm:$0xff] %v3173_v36  ;;  %5204 = vst [vmem:[#allocation71_spill] sm:$0xff] %v3175_v24  ;;  %v3187_v63 = vmul.f32 %v492_v21, %v491_v53  ;;  %v3189_v4 = vmul.f32 %v509_v32, %v486_v11  ;;  %v3191_v18 = vmul.f32 %v509_v32, %v487_v46 }
  0x91   :  { %5205 = vst [vmem:[#allocation72_spill] sm:$0xff] %v3177_v39  ;;  %v3193_v12 = vmul.f32 %v509_v32, %v488_v49  ;;  %v3195_v24 = vmul.f32 %v509_v32, %v489_v50  ;;  %v3197_v36 = vmul.f32 %v509_v32, %v490_v52  ;;  %v3199_v39 = vmul.f32 %v509_v32, %v491_v53  ;;  %v5218_v32 = vld [vmem:[#allocation36_spill] sm:$0xff] }
  0x92   :  { %5206 = vst [vmem:[#allocation73_spill] sm:$0xff] %v3189_v4  ;;  %5207 = vst [vmem:[#allocation74_spill] sm:$0xff] %v3191_v18  ;;  %v3202_v31 = vadd.f32 %v535_v35, %v2698_v56  ;;  %v3205_v25 = vadd.f32 %v535_v35, %v2701_v57  ;;  %v3208_v21 = vadd.f32 %v535_v35, %v2704_v58  ;;  %v225_v53 = vstv %s2329_s22  ;;  %v5230_v18 = vld [vmem:[#allocation48_spill] sm:$0xff]  ;;  %v5231_v4 = vld [vmem:[#allocation49_spill] sm:$0xff]  ;;  %s3741_s22 = sld [smem:[#allocation7 + $0xd]] }
  0x93   :  { %5208 = vst [vmem:[#allocation75_spill] sm:$0xff] %v3193_v12  ;;  %5209 = vst [vmem:[#allocation76_spill] sm:$0xff] %v3195_v24  ;;  %v3211_v11 = vadd.f32 %v535_v35, %v2707_v59  ;;  %v3214_v46 = vadd.f32 %v535_v35, %v2710_v60  ;;  %v3217_v49 = vadd.f32 %v535_v35, %v2713_v61  ;;  %v224_v59 = vstv %s211_s21  ;;  %v5228_v24 = vld [vmem:[#allocation46_spill] sm:$0xff]  ;;  %v5229_v12 = vld [vmem:[#allocation47_spill] sm:$0xff]  ;;  %s3739_s21 = sld [smem:[#allocation6 + $0xd]] }
  0x94   :  { %5210 = vst [vmem:[#allocation77_spill] sm:$0xff] %v3197_v36  ;;  %5211 = vst [vmem:[#allocation78_spill] sm:$0xff] %v3199_v39  ;;  %v261_v61 = vadd.f32 %v2891_v43, %v224_v59  ;;  %v262_v35 = vadd.f32 %v2895_v27, %v224_v59  ;;  %v263_v56 = vadd.f32 %v2899_v22, %v224_v59  ;;  %v5226_v36 = vld [vmem:[#allocation44_spill] sm:$0xff] }
  0x95   :  { %5212 = vst [vmem:[#allocation79_spill] sm:$0xff] %v3202_v31  ;;  %5213 = vst [vmem:[#allocation80_spill] sm:$0xff] %v3205_v25  ;;  %v264_v50 = vadd.f32 %v5218_v32, %v224_v59  ;;  %v5219_v31 = vld [vmem:[#allocation37_spill] sm:$0xff]  ;;  %v5220_v25 = vld [vmem:[#allocation38_spill] sm:$0xff]  ;;  %v278_v60 = vadd.f32 %v2923_v6, %v225_v53  ;;  %v279_v39 = vadd.f32 %v2927_v42, %v225_v53 }
  0x96   :  { %5214 = vst [vmem:[#allocation81_spill] sm:$0xff] %v3208_v21  ;;  %5215 = vst [vmem:[#allocation82_spill] sm:$0xff] %v3211_v11  ;;  %v265_v57 = vadd.f32 %v5219_v31, %v224_v59  ;;  %v266_v58 = vadd.f32 %v5220_v25, %v224_v59  ;;  %v5221_v21 = vld [vmem:[#allocation39_spill] sm:$0xff]  ;;  %v268_v11 = vadd.f32 %v2919_v62, %v224_v59 }
  0x97   :  { %5216 = vst [vmem:[#allocation83_spill] sm:$0xff] %v3214_v46  ;;  %5217 = vst [vmem:[#allocation84_spill] sm:$0xff] %v3217_v49  ;;  %v267_v52 = vadd.f32 %v5221_v21, %v224_v59  ;;  %v280_v43 = vadd.f32 %v2931_v40, %v225_v53  ;;  %v5222_v49 = vld [vmem:[#allocation40_spill] sm:$0xff]  ;;  %v282_v22 = vadd.f32 %v2939_v23, %v225_v53  ;;  %v5223_v46 = vld [vmem:[#allocation41_spill] sm:$0xff] }
  0x98   :  { %v281_v27 = vadd.f32 %v5222_v49, %v225_v53  ;;  %v283_v32 = vadd.f32 %v2943_v45, %v225_v53  ;;  %v284_v31 = vadd.f32 %v5223_v46, %v225_v53  ;;  %v285_v25 = vadd.f32 %v5224_v48, %v225_v53  ;;  %v5227_v59 = vld [vmem:[#allocation45_spill] sm:$0xff] }
  0x99   :  { %v321_v21 = vadd.f32 %v5225_v47, %v261_v61  ;;  %v322_v62 = vadd.f32 %v5226_v36, %v262_v35  ;;  %v323_v6 = vadd.f32 %v5227_v59, %v263_v56  ;;  %v324_v42 = vadd.f32 %v5228_v24, %v264_v50  ;;  %v5232_v50 = vld [vmem:[#allocation50_spill] sm:$0xff] }
  0x9a   :  { %v325_v40 = vadd.f32 %v5229_v12, %v265_v57  ;;  %v326_v49 = vadd.f32 %v5230_v18, %v266_v58  ;;  %v327_v23 = vadd.f32 %v5231_v4, %v267_v52  ;;  %v328_v45 = vadd.f32 %v2991_v10, %v268_v11  ;;  %v5233_v11 = vld [vmem:[#allocation51_spill] sm:$0xff]  ;;  %v5234_v57 = vld [vmem:[#allocation52_spill] sm:$0xff]  ;;  %v5236_v58 = vld [vmem:[#allocation54_spill] sm:$0xff] }
  0x9b   :  { %v338_v46 = vadd.f32 %v2995_v1, %v278_v60  ;;  %v339_v48 = vadd.f32 %v2999_v28, %v279_v39  ;;  %v340_v47 = vadd.f32 %v3003_v30, %v280_v43  ;;  %v341_v36 = vadd.f32 %v3007_v7, %v281_v27  ;;  %v5235_v39 = vld [vmem:[#allocation53_spill] sm:$0xff]  ;;  %v5237_v52 = vld [vmem:[#allocation55_spill] sm:$0xff]  ;;  %v5238_v43 = vld [vmem:[#allocation56_spill] sm:$0xff] }
  0x9c   :  { %v342_v56 = vadd.f32 %v3011_v41, %v282_v22  ;;  %v343_v24 = vadd.f32 %v3015_v29, %v283_v32  ;;  %v344_v12 = vadd.f32 %v3019_v38, %v284_v31  ;;  %v345_v18 = vadd.f32 %v3023_v9, %v285_v25  ;;  %v5240_v22 = vld [vmem:[#allocation58_spill] sm:$0xff]  ;;  %v5241_v32 = vld [vmem:[#allocation59_spill] sm:$0xff]  ;;  %v5242_v31 = vld [vmem:[#allocation60_spill] sm:$0xff] }
  0x9d   :  { %v381_v4 = vadd.f32 %v3027_v2, %v321_v21  ;;  %v382_v10 = vadd.f32 %v5232_v50, %v322_v62  ;;  %v383_v1 = vadd.f32 %v5233_v11, %v323_v6  ;;  %v384_v28 = vadd.f32 %v5234_v57, %v324_v42  ;;  %v5243_v25 = vld [vmem:[#allocation61_spill] sm:$0xff]  ;;  %v5244_v21 = vld [vmem:[#allocation62_spill] sm:$0xff] }
  0x9e   :  { %v385_v30 = vadd.f32 %v5235_v39, %v325_v40  ;;  %v386_v7 = vadd.f32 %v5236_v58, %v326_v49  ;;  %v387_v41 = vadd.f32 %v5237_v52, %v327_v23  ;;  %v388_v29 = vadd.f32 %v3059_v20, %v328_v45  ;;  %v5239_v20 = vld [vmem:[#allocation57_spill] sm:$0xff]  ;;  %v5245_v40 = vld [vmem:[#allocation63_spill] sm:$0xff]  ;;  %v5246_v23 = vld [vmem:[#allocation64_spill] sm:$0xff] }
  0x9f   :  { %v398_v38 = vadd.f32 %v3063_v5, %v338_v46  ;;  %v399_v9 = vadd.f32 %v3067_v3, %v339_v48  ;;  %v400_v2 = vadd.f32 %v3071_v16, %v340_v47  ;;  %v401_v53 = vadd.f32 %v3075_v17, %v341_v36  ;;  %v5247_v46 = vld [vmem:[#allocation65_spill] sm:$0xff]  ;;  %v5248_v47 = vld [vmem:[#allocation66_spill] sm:$0xff] }
  0xa0   :  { %v402_v60 = vadd.f32 %v3079_v0, %v342_v56  ;;  %v403_v61 = vadd.f32 %v3083_v26, %v343_v24  ;;  %v404_v35 = vadd.f32 %v3087_v19, %v344_v12  ;;  %v405_v27 = vadd.f32 %v5238_v43, %v345_v18  ;;  %v5249_v56 = vld [vmem:[#allocation67_spill] sm:$0xff]  ;;  %v5250_v12 = vld [vmem:[#allocation70_spill] sm:$0xff]  ;;  %v5252_v18 = vld [vmem:[#allocation72_spill] sm:$0xff] }
  0xa1   :  { %v441_v5 = vadd.f32 %v5239_v20, %v381_v4  ;;  %v442_v3 = vadd.f32 %v5240_v22, %v382_v10  ;;  %v443_v16 = vadd.f32 %v5241_v32, %v383_v1  ;;  %v444_v17 = vadd.f32 %v5242_v31, %v384_v28  ;;  %v5253_v57 = vld [vmem:[#allocation73_spill] sm:$0xff]  ;;  %v5254_v28 = vld [vmem:[#allocation74_spill] sm:$0xff]  ;;  %v5268_v32 = vld [vmem:[#allocation80_spill] sm:$0xff] }
  0xa2   :  { %v445_v0 = vadd.f32 %v5243_v25, %v385_v30  ;;  %v446_v26 = vadd.f32 %v5244_v21, %v386_v7  ;;  %v447_v19 = vadd.f32 %v3123_v13, %v387_v41  ;;  %v448_v62 = vadd.f32 %v3125_v14, %v388_v29  ;;  %v5255_v30 = vld [vmem:[#allocation75_spill] sm:$0xff]  ;;  %v5256_v7 = vld [vmem:[#allocation76_spill] sm:$0xff]  ;;  %v5257_v41 = vld [vmem:[#allocation77_spill] sm:$0xff] }
  0xa3   :  { %v458_v59 = vadd.f32 %v3129_v44, %v398_v38  ;;  %v459_v6 = vadd.f32 %v3133_v15, %v399_v9  ;;  %v460_v42 = vadd.f32 %v3137_v33, %v400_v2  ;;  %v461_v49 = vadd.f32 %v5245_v40, %v401_v53  ;;  %v5251_v15 = vld [vmem:[#allocation71_spill] sm:$0xff]  ;;  %v5258_v38 = vld [vmem:[#allocation78_spill] sm:$0xff]  ;;  %v5259_v9 = vld [vmem:[#allocation24_spill] sm:$0xff] }
  0xa4   :  { %v462_v45 = vadd.f32 %v5246_v23, %v402_v60  ;;  %v463_v48 = vadd.f32 %v5247_v46, %v403_v61  ;;  %v464_v36 = vadd.f32 %v5248_v47, %v404_v35  ;;  %v465_v24 = vadd.f32 %v5249_v56, %v405_v27  ;;  %v5262_v60 = vld [vmem:[#allocation68_spill] sm:$0xff]  ;;  %v5264_v43 = vld [vmem:[#allocation69_spill] sm:$0xff]  ;;  %v5272_v21 = vld [vmem:[#allocation82_spill] sm:$0xff] }
  0xa5   :  { %v501_v13 = vadd.f32 %v3169_v8, %v441_v5  ;;  %v502_v14 = vadd.f32 %v3171_v51, %v442_v3  ;;  %v503_v44 = vadd.f32 %v5250_v12, %v443_v16  ;;  %v504_v33 = vadd.f32 %v5251_v15, %v444_v17  ;;  %v5266_v5 = vld [vmem:[#allocation79_spill] sm:$0xff]  ;;  %v5270_v17 = vld [vmem:[#allocation81_spill] sm:$0xff] }
  0xa6   :  { %v505_v4 = vadd.f32 %v5252_v18, %v445_v0  ;;  %v506_v50 = vadd.f32 %v3179_v54, %v446_v26  ;;  %v507_v10 = vadd.f32 %v3185_v37, %v447_v19  ;;  %v508_v11 = vadd.f32 %v3187_v63, %v448_v62  ;;  %v5274_v62 = vld [vmem:[#allocation83_spill] sm:$0xff] }
  0xa7   :  { %v518_v1 = vadd.f32 %v3181_v55, %v458_v59  ;;  %v519_v8 = vadd.f32 %v3183_v34, %v459_v6  ;;  %v520_v51 = vadd.f32 %v5253_v57, %v460_v42  ;;  %v521_v39 = vadd.f32 %v5254_v28, %v461_v49  ;;  %v5260_v55 = vld [vmem:[#allocation26_spill] sm:$0xff]  ;;  %v5261_v34 = vld [vmem:[#allocation25_spill] sm:$0xff]  ;;  %v5276_v42 = vld [vmem:[#allocation84_spill] sm:$0xff] }
  0xa8   :  { %v522_v58 = vadd.f32 %v5255_v30, %v462_v45  ;;  %v523_v52 = vadd.f32 %v5256_v7, %v463_v48  ;;  %v524_v29 = vadd.f32 %v5257_v41, %v464_v36  ;;  %v525_v54 = vadd.f32 %v5258_v38, %v465_v24 }
  0xa9   :  { %v552_v37 = vstv %s3275_s4  ;;  %v569_v63 = vstv %s3277_s23  ;;  %v593_v2 = vmul.f32 %v5260_v55, %v5259_v9  ;;  %v594_v53 = vmul.f32 %v5260_v55, %v5261_v34  ;;  %s3743_s4 = sld [smem:[#allocation9 + $0x1a]]  ;;  %s3745_s23 = sld [smem:[#allocation9 + $0x1b]] }
  0xaa   :  { %v5263_v61 = vmax.f32 %v5262_v60, 0.0  ;;  %v5265_v27 = vmax.f32 %v5264_v43, 0.0  ;;  %v5267_v22 = vmax.f32 %v5266_v5, 0.0  ;;  %v5269_v16 = vmax.f32 %v5268_v32, 0.0  ;;  %v5287_v32 = vld [vmem:[#allocation27_spill] sm:$0xff] }
  0xab   :  { %v5271_v25 = vmax.f32 %v5270_v17, 0.0  ;;  %v5273_v26 = vmax.f32 %v5272_v21, 0.0  ;;  %v5275_v59 = vmax.f32 %v5274_v62, 0.0  ;;  %v5277_v40 = vmax.f32 %v5276_v42, 0.0  ;;  %v5290_v21 = vld [vmem:[#allocation32_spill] sm:$0xff] }
  0xac   :  { %v553_v35 = vmul.f32 %v552_v37, %v5263_v61  ;;  %v554_v20 = vmul.f32 %v552_v37, %v5265_v27  ;;  %v555_v3 = vmul.f32 %v552_v37, %v5267_v22  ;;  %v556_v31 = vmul.f32 %v552_v37, %v5269_v16 }
  0xad   :  { %v557_v0 = vmul.f32 %v552_v37, %v5271_v25  ;;  %v558_v19 = vmul.f32 %v552_v37, %v5273_v26  ;;  %v559_v6 = vmul.f32 %v552_v37, %v5275_v59  ;;  %v560_v49 = vmul.f32 %v552_v37, %v5277_v40 }
  0xae   :  { %v561_v23 = vadd.f32 %v553_v35, %v501_v13  ;;  %v562_v45 = vadd.f32 %v554_v20, %v502_v14  ;;  %v563_v46 = vadd.f32 %v555_v3, %v503_v44  ;;  %v564_v48 = vadd.f32 %v556_v31, %v504_v33  ;;  %v5286_v3 = vld [vmem:[#allocation18_spill] sm:$0xff] }
  0xaf   :  { %v565_v47 = vadd.f32 %v557_v0, %v505_v4  ;;  %v566_v36 = vadd.f32 %v558_v19, %v506_v50  ;;  %v567_v56 = vadd.f32 %v559_v6, %v507_v10  ;;  %v568_v24 = vadd.f32 %v560_v49, %v508_v11  ;;  %v5288_v31 = vld [vmem:[#allocation30_spill] sm:$0xff] }
  0xb0   :  { %v5278_v12 = vmov %v5263_v61  ;;  %v5279_v18 = vmov %v5265_v27  ;;  %v5280_v28 = vmov %v5267_v22  ;;  %v5281_v13 = vmov %v5269_v16 }
  0xb1   :  { %v570_v15 = vmul.f32 %v569_v63, %v5278_v12  ;;  %v571_v57 = vmul.f32 %v569_v63, %v5279_v18  ;;  %v572_v30 = vmul.f32 %v569_v63, %v5280_v28  ;;  %v573_v14 = vmul.f32 %v569_v63, %v5281_v13 }
  0xb2   :  { %v5282_v44 = vmov %v5271_v25  ;;  %v5283_v4 = vmov %v5273_v26  ;;  %v5284_v10 = vmov %v5275_v59  ;;  %v5285_v7 = vmov %v5277_v40  ;;  %v5289_v25 = vld [vmem:[#allocation31_spill] sm:$0xff] }
  0xb3   :  { %v574_v33 = vmul.f32 %v569_v63, %v5282_v44  ;;  %v575_v50 = vmul.f32 %v569_v63, %v5283_v4  ;;  %v576_v11 = vmul.f32 %v569_v63, %v5284_v10  ;;  %v577_v41 = vmul.f32 %v569_v63, %v5285_v7 }
  0xb4   :  { %v578_v38 = vadd.f32 %v570_v15, %v518_v1  ;;  %v579_v37 = vadd.f32 %v571_v57, %v519_v8  ;;  %v580_v55 = vadd.f32 %v572_v30, %v520_v51  ;;  %v581_v60 = vadd.f32 %v573_v14, %v521_v39  ;;  %v5291_v1 = vld [vmem:[#allocation33_spill] sm:$0xff]  ;;  %v5292_v51 = vld [vmem:[#allocation34_spill] sm:$0xff] }
  0xb5   :  { %v582_v61 = vadd.f32 %v574_v33, %v522_v58  ;;  %v583_v35 = vadd.f32 %v575_v50, %v523_v52  ;;  %v584_v43 = vadd.f32 %v576_v11, %v524_v29  ;;  %v585_v27 = vadd.f32 %v577_v41, %v525_v54  ;;  %v5293_v58 = vld [vmem:[#allocation35_spill] sm:$0xff] }
  0xb6   :  { %v595_v20 = vstv %s3311_s24  ;;  %v612_v5 = vstv %s3319_s25  ;;  %v629_v22 = vstv %s3321_s26  ;;  %v647_v16 = vmul.f32 %v5287_v32, %v5286_v3  ;;  %s3807_s24 = sld [smem:[#allocation6 + $0xe]]  ;;  %s3811_s26 = sld [smem:[#allocation9 + $0x1c]] }
  0xb7   :  { %v596_v17 = vadd.f32 %v595_v20, %v5288_v31  ;;  %v597_v0 = vadd.f32 %v595_v20, %v5289_v25  ;;  %v598_v63 = vadd.f32 %v595_v20, %v5290_v21  ;;  %v599_v8 = vadd.f32 %v595_v20, %v5291_v1  ;;  %v5294_v21 = vld [vmem:[#allocation19_spill] sm:$0xff]  ;;  %v5295_v1 = vld [vmem:[#allocation20_spill] sm:$0xff]  ;;  %s3809_s25 = sld [smem:[#allocation7 + $0xe]] }
  0xb8   :  { %v600_v39 = vadd.f32 %v595_v20, %v5292_v51  ;;  %v601_v52 = vadd.f32 %v595_v20, %v5293_v58  ;;  %v602_v29 = vadd.f32 %v595_v20, %v593_v2  ;;  %v603_v54 = vadd.f32 %v595_v20, %v594_v53 }
  0xb9   :  { %v604_v26 = vmax.f32 %v596_v17, 0.0  ;;  %v605_v19 = vmax.f32 %v597_v0, 0.0  ;;  %v606_v62 = vmax.f32 %v598_v63, 0.0  ;;  %v607_v59 = vmax.f32 %v599_v8, 0.0 }
  0xba   :  { %v608_v6 = vmax.f32 %v600_v39, 0.0  ;;  %v609_v42 = vmax.f32 %v601_v52, 0.0  ;;  %v610_v40 = vmax.f32 %v602_v29, 0.0  ;;  %v611_v49 = vmax.f32 %v603_v54, 0.0  ;;  %v5297_v39 = vld [vmem:[#allocation22_spill] sm:$0xff] }
  0xbb   :  { %v613_v12 = vmul.f32 %v612_v5, %v604_v26  ;;  %v614_v15 = vmul.f32 %v612_v5, %v605_v19  ;;  %v615_v18 = vmul.f32 %v612_v5, %v606_v62  ;;  %v616_v57 = vmul.f32 %v612_v5, %v607_v59 }
  0xbc   :  { %v617_v28 = vmul.f32 %v612_v5, %v608_v6  ;;  %v618_v30 = vmul.f32 %v612_v5, %v609_v42  ;;  %v619_v13 = vmul.f32 %v612_v5, %v610_v40  ;;  %v620_v14 = vmul.f32 %v612_v5, %v611_v49 }
  0xbd   :  { %v3368_v2 = vadd.f32 %v613_v12, %v561_v23  ;;  %v3370_v53 = vadd.f32 %v614_v15, %v562_v45  ;;  %v3372_v44 = vadd.f32 %v615_v18, %v563_v46  ;;  %v3374_v33 = vadd.f32 %v616_v57, %v564_v48 }
  0xbe   :  { %v3376_v4 = vadd.f32 %v617_v28, %v565_v47  ;;  %v3378_v50 = vadd.f32 %v618_v30, %v566_v36  ;;  %v3380_v10 = vadd.f32 %v619_v13, %v567_v56  ;;  %v3382_v11 = vadd.f32 %v620_v14, %v568_v24 }
  0xbf   :  { %v630_v7 = vmul.f32 %v629_v22, %v604_v26  ;;  %v631_v41 = vmul.f32 %v629_v22, %v605_v19  ;;  %v632_v20 = vmul.f32 %v629_v22, %v606_v62  ;;  %v633_v5 = vmul.f32 %v629_v22, %v607_v59 }
  0xc0   :  { %v634_v23 = vmul.f32 %v629_v22, %v608_v6  ;;  %v635_v31 = vmul.f32 %v629_v22, %v609_v42  ;;  %v636_v45 = vmul.f32 %v629_v22, %v610_v40  ;;  %v637_v17 = vmul.f32 %v629_v22, %v611_v49  ;;  %v5296_v22 = vld [vmem:[#allocation21_spill] sm:$0xff] }
  0xc1   :  { %v638_v46 = vadd.f32 %v630_v7, %v578_v38  ;;  %v639_v48 = vadd.f32 %v631_v41, %v579_v37  ;;  %v640_v47 = vadd.f32 %v632_v20, %v580_v55  ;;  %v641_v36 = vadd.f32 %v633_v5, %v581_v60  ;;  %v5298_v38 = vld [vmem:[#allocation23_spill] sm:$0xff] }
  0xc2   :  { %v642_v56 = vadd.f32 %v634_v23, %v582_v61  ;;  %v643_v24 = vadd.f32 %v635_v31, %v583_v35  ;;  %v644_v25 = vadd.f32 %v636_v45, %v584_v43  ;;  %v645_v0 = vadd.f32 %v637_v17, %v585_v27 }
  0xc3   :  { %v648_v63 = vmul.f32 %v5287_v32, %v5294_v21  ;;  %v649_v8 = vmul.f32 %v5287_v32, %v5295_v1  ;;  %v650_v51 = vmul.f32 %v5287_v32, %v5296_v22  ;;  %v651_v58 = vmul.f32 %v5287_v32, %v5297_v39 }
  0xc4   :  { %v652_v37 = vmul.f32 %v5287_v32, %v5298_v38  ;;  %v653_v55 = vmul.f32 %v5287_v32, %v5259_v9  ;;  %v654_v60 = vmul.f32 %v5287_v32, %v5261_v34  ;;  %v655_v61 = vstv %s3366_s27  ;;  %s3813_s27 = sld [smem:[#allocation9 + $0x1d]] }
  0xc5   :  { %v656_v35 = vadd.f32 %v655_v61, %v647_v16  ;;  %v657_v43 = vadd.f32 %v655_v61, %v648_v63  ;;  %v658_v27 = vadd.f32 %v655_v61, %v649_v8  ;;  %v659_v52 = vadd.f32 %v655_v61, %v650_v51  ;;  %v5299_v16 = vld [vmem:[#allocation28_spill] sm:$0xff] }
  0xc6   :  { %v660_v29 = vadd.f32 %v655_v61, %v651_v58  ;;  %v661_v54 = vadd.f32 %v655_v61, %v652_v37  ;;  %v662_v26 = vadd.f32 %v655_v61, %v653_v55  ;;  %v663_v19 = vadd.f32 %v655_v61, %v654_v60  ;;  %v3453_v55 = vld [vmem:[#allocation2 + $0x10] sm:$0xff]  ;;  %v3473_v61 = vld [vmem:[#allocation2 + $0x38] sm:$0xff] }
  0xc7   :  { %v664_v62 = vmax.f32 %v656_v35, 0.0  ;;  %v665_v59 = vmax.f32 %v657_v43, 0.0  ;;  %v666_v6 = vmax.f32 %v658_v27, 0.0  ;;  %v667_v42 = vmax.f32 %v659_v52, 0.0 }
  0xc8   :  { %v668_v40 = vmax.f32 %v660_v29, 0.0  ;;  %v669_v9 = vmax.f32 %v661_v54, 0.0  ;;  %v670_v49 = vmax.f32 %v662_v26, 0.0  ;;  %v671_v12 = vmax.f32 %v663_v19, 0.0 }
  0xc9   :  { %v672_v34 = vstv %s3384_s28  ;;  %v689_v32 = vstv %s3386_s2  ;;  %v707_v15 = vmul.f32 %v5299_v16, %v5286_v3  ;;  %v708_v18 = vmul.f32 %v5299_v16, %v5294_v21  ;;  %s3875_s28 = sld [smem:[#allocation6 + $0xf]] }
  0xca   :  { %v673_v57 = vmul.f32 %v672_v34, %v664_v62  ;;  %v674_v28 = vmul.f32 %v672_v34, %v665_v59  ;;  %v675_v30 = vmul.f32 %v672_v34, %v666_v6  ;;  %v676_v13 = vmul.f32 %v672_v34, %v667_v42  ;;  %s3877_s2 = sld [smem:[#allocation7 + $0xf]] }
  0xcb   :  { %v677_v14 = vmul.f32 %v672_v34, %v668_v40  ;;  %v678_v7 = vmul.f32 %v672_v34, %v669_v9  ;;  %v679_v41 = vmul.f32 %v672_v34, %v670_v49  ;;  %v680_v20 = vmul.f32 %v672_v34, %v671_v12 }
  0xcc   :  { %v3414_v5 = vadd.f32 %v673_v57, %v3368_v2  ;;  %v3417_v3 = vadd.f32 %v674_v28, %v3370_v53  ;;  %v3420_v23 = vadd.f32 %v675_v30, %v3372_v44  ;;  %v3423_v31 = vadd.f32 %v676_v13, %v3374_v33 }
  0xcd   :  { %v3426_v45 = vadd.f32 %v677_v14, %v3376_v4  ;;  %v3429_v17 = vadd.f32 %v678_v7, %v3378_v50  ;;  %v3432_v21 = vadd.f32 %v679_v41, %v3380_v10  ;;  %v3435_v2 = vadd.f32 %v680_v20, %v3382_v11 }
  0xce   :  { %v690_v53 = vmul.f32 %v689_v32, %v664_v62  ;;  %v691_v63 = vmul.f32 %v689_v32, %v665_v59  ;;  %v692_v1 = vmul.f32 %v689_v32, %v666_v6  ;;  %v693_v44 = vmul.f32 %v689_v32, %v667_v42 }
  0xcf   :  { %v694_v8 = vmul.f32 %v689_v32, %v668_v40  ;;  %v695_v22 = vmul.f32 %v689_v32, %v669_v9  ;;  %v696_v33 = vmul.f32 %v689_v32, %v670_v49  ;;  %v697_v51 = vmul.f32 %v689_v32, %v671_v12 }
  0xd0   :  { %v3437_v39 = vadd.f32 %v690_v53, %v638_v46  ;;  %v3439_v4 = vadd.f32 %v691_v63, %v639_v48  ;;  %v3441_v50 = vadd.f32 %v692_v1, %v640_v47  ;;  %v3443_v58 = vadd.f32 %v693_v44, %v641_v36  ;;  %v3457_v48 = vld [vmem:[#allocation2 + $0x18] sm:$0xff]  ;;  %v3461_v36 = vld [vmem:[#allocation2 + $0x20] sm:$0xff] }
  0xd1   :  { %v3445_v10 = vadd.f32 %v694_v8, %v642_v56  ;;  %v3447_v11 = vadd.f32 %v695_v22, %v643_v24  ;;  %v3449_v38 = vadd.f32 %v696_v33, %v644_v25  ;;  %v3451_v37 = vadd.f32 %v697_v51, %v645_v0  ;;  %v3465_v24 = vld [vmem:[#allocation2 + $0x28] sm:$0xff]  ;;  %v3469_v0 = vld [vmem:[#allocation2 + $0x30] sm:$0xff]  ;;  %v3512_v22 = vld [vmem:[#allocation2] sm:$0xff] }
  0xd2   :  { %v709_v46 = vmul.f32 %v3453_v55, %v5299_v16  ;;  %v710_v47 = vmul.f32 %v3457_v48, %v5299_v16  ;;  %v711_v56 = vmul.f32 %v3461_v36, %v5299_v16  ;;  %v712_v25 = vmul.f32 %v3465_v24, %v5299_v16 }
  0xd3   :  { %v713_v60 = vmul.f32 %v3469_v0, %v5299_v16  ;;  %v714_v35 = vmul.f32 %v3473_v61, %v5299_v16  ;;  %v715_v43 = vstv %s3409_s29  ;;  %v732_v27 = vstv %s3411_s30  ;;  %s3879_s29 = sld [smem:[#allocation9 + $0x1e]]  ;;  %s3881_s30 = sld [smem:[#allocation9 + $0x1f]] }
  0xd4   :  { %v716_v52 = vadd.f32 %v715_v43, %v707_v15  ;;  %v717_v29 = vadd.f32 %v715_v43, %v708_v18  ;;  %v718_v54 = vadd.f32 %v715_v43, %v709_v46  ;;  %v719_v26 = vadd.f32 %v715_v43, %v710_v47 }
  0xd5   :  { %v720_v19 = vadd.f32 %v715_v43, %v711_v56  ;;  %v721_v62 = vadd.f32 %v715_v43, %v712_v25  ;;  %v722_v59 = vadd.f32 %v715_v43, %v713_v60  ;;  %v723_v6 = vadd.f32 %v715_v43, %v714_v35 }
  0xd6   :  { %v724_v42 = vmax.f32 %v716_v52, 0.0  ;;  %v725_v40 = vmax.f32 %v717_v29, 0.0  ;;  %v726_v9 = vmax.f32 %v718_v54, 0.0  ;;  %v727_v49 = vmax.f32 %v719_v26, 0.0 }
  0xd7   :  { %v728_v12 = vmax.f32 %v720_v19, 0.0  ;;  %v729_v34 = vmax.f32 %v721_v62, 0.0  ;;  %v730_v32 = vmax.f32 %v722_v59, 0.0  ;;  %v731_v16 = vmax.f32 %v723_v6, 0.0 }
  0xd8   :  { %v733_v57 = vmul.f32 %v732_v27, %v724_v42  ;;  %v734_v28 = vmul.f32 %v732_v27, %v725_v40  ;;  %v735_v30 = vmul.f32 %v732_v27, %v726_v9  ;;  %v736_v13 = vmul.f32 %v732_v27, %v727_v49 }
  0xd9   :  { %v737_v15 = vmul.f32 %v732_v27, %v728_v12  ;;  %v738_v18 = vmul.f32 %v732_v27, %v729_v34  ;;  %v739_v14 = vmul.f32 %v732_v27, %v730_v32  ;;  %v740_v7 = vmul.f32 %v732_v27, %v731_v16 }
  0xda   :  { %v3488_v41 = vadd.f32 %v733_v57, %v3414_v5  ;;  %v3491_v20 = vadd.f32 %v734_v28, %v3417_v3  ;;  %v3494_v53 = vadd.f32 %v735_v30, %v3420_v23  ;;  %v3497_v63 = vadd.f32 %v736_v13, %v3423_v31  ;;  %v5300_v23 = vld [vmem:[#allocation29_spill] sm:$0xff]  ;;  %v3516_v31 = vld [vmem:[#allocation2 + $0x8] sm:$0xff] }
  0xdb   :  { %v3500_v1 = vadd.f32 %v737_v15, %v3426_v45  ;;  %v3503_v44 = vadd.f32 %v738_v18, %v3429_v17  ;;  %v3506_v8 = vadd.f32 %v739_v14, %v3432_v21  ;;  %v3509_v5 = vadd.f32 %v740_v7, %v3435_v2 }
  0xdc   :  { %v749_v3 = vstv %s3479_s6  ;;  %v767_v33 = vmul.f32 %v3512_v22, %v5300_v23  ;;  %v768_v45 = vmul.f32 %v3516_v31, %v5300_v23  ;;  %v769_v17 = vmul.f32 %v3453_v55, %v5300_v23  ;;  %s3943_s6 = sld [smem:[#allocation6 + $0x10]] }
  0xdd   :  { %v750_v51 = vmul.f32 %v749_v3, %v724_v42  ;;  %v751_v21 = vmul.f32 %v749_v3, %v725_v40  ;;  %v752_v46 = vmul.f32 %v749_v3, %v726_v9  ;;  %v753_v47 = vmul.f32 %v749_v3, %v727_v49 }
  0xde   :  { %v754_v2 = vmul.f32 %v749_v3, %v728_v12  ;;  %v755_v56 = vmul.f32 %v749_v3, %v729_v34  ;;  %v756_v25 = vmul.f32 %v749_v3, %v730_v32  ;;  %v757_v60 = vmul.f32 %v749_v3, %v731_v16 }
  0xdf   :  { %v758_v35 = vadd.f32 %v750_v51, %v3437_v39  ;;  %v759_v43 = vadd.f32 %v751_v21, %v3439_v4  ;;  %v760_v27 = vadd.f32 %v752_v46, %v3441_v50  ;;  %v761_v52 = vadd.f32 %v753_v47, %v3443_v58 }
  0xe0   :  { %v762_v29 = vadd.f32 %v754_v2, %v3445_v10  ;;  %v763_v54 = vadd.f32 %v755_v56, %v3447_v11  ;;  %v764_v26 = vadd.f32 %v756_v25, %v3449_v38  ;;  %v765_v19 = vadd.f32 %v757_v60, %v3451_v37 }
  0xe1   :  { %v770_v62 = vmul.f32 %v3457_v48, %v5300_v23  ;;  %v771_v39 = vmul.f32 %v3461_v36, %v5300_v23  ;;  %v772_v4 = vmul.f32 %v3465_v24, %v5300_v23  ;;  %v773_v50 = vmul.f32 %v3469_v0, %v5300_v23 }
  0xe2   :  { %v774_v58 = vmul.f32 %v3473_v61, %v5300_v23  ;;  %v775_v10 = vstv %s3481_s9  ;;  %v792_v11 = vstv %s3483_s10  ;;  %v809_v38 = vstv %s3485_s11  ;;  %s3945_s9 = sld [smem:[#allocation7 + $0x10]]  ;;  %s3949_s11 = sld [smem:[#allocation9 + $0x21]] }
  0xe3   :  { %v776_v59 = vadd.f32 %v775_v10, %v767_v33  ;;  %v777_v37 = vadd.f32 %v775_v10, %v768_v45  ;;  %v778_v6 = vadd.f32 %v775_v10, %v769_v17  ;;  %v779_v42 = vadd.f32 %v775_v10, %v770_v62  ;;  %s3947_s10 = sld [smem:[#allocation9 + $0x20]] }
  0xe4   :  { %v780_v40 = vadd.f32 %v775_v10, %v771_v39  ;;  %v781_v9 = vadd.f32 %v775_v10, %v772_v4  ;;  %v782_v49 = vadd.f32 %v775_v10, %v773_v50  ;;  %v783_v12 = vadd.f32 %v775_v10, %v774_v58 }
  0xe5   :  { %v784_v34 = vmax.f32 %v776_v59, 0.0  ;;  %v785_v32 = vmax.f32 %v777_v37, 0.0  ;;  %v786_v16 = vmax.f32 %v778_v6, 0.0  ;;  %v787_v57 = vmax.f32 %v779_v42, 0.0 }
  0xe6   :  { %v788_v28 = vmax.f32 %v780_v40, 0.0  ;;  %v789_v30 = vmax.f32 %v781_v9, 0.0  ;;  %v790_v13 = vmax.f32 %v782_v49, 0.0  ;;  %v791_v15 = vmax.f32 %v783_v12, 0.0 }
  0xe7   :  { %v793_v18 = vmul.f32 %v792_v11, %v784_v34  ;;  %v794_v14 = vmul.f32 %v792_v11, %v785_v32  ;;  %v795_v7 = vmul.f32 %v792_v11, %v786_v16  ;;  %v796_v3 = vmul.f32 %v792_v11, %v787_v57 }
  0xe8   :  { %v797_v23 = vmul.f32 %v792_v11, %v788_v28  ;;  %v798_v33 = vmul.f32 %v792_v11, %v789_v30  ;;  %v799_v45 = vmul.f32 %v792_v11, %v790_v13  ;;  %v800_v17 = vmul.f32 %v792_v11, %v791_v15 }
  0xe9   :  { %v3552_v51 = vadd.f32 %v793_v18, %v3488_v41  ;;  %v3555_v21 = vadd.f32 %v794_v14, %v3491_v20  ;;  %v3558_v46 = vadd.f32 %v795_v7, %v3494_v53  ;;  %v3561_v47 = vadd.f32 %v796_v3, %v3497_v63 }
  0xea   :  { %v3564_v2 = vadd.f32 %v797_v23, %v3500_v1  ;;  %v3567_v56 = vadd.f32 %v798_v33, %v3503_v44  ;;  %v3570_v25 = vadd.f32 %v799_v45, %v3506_v8  ;;  %v3573_v41 = vadd.f32 %v800_v17, %v3509_v5 }
  0xeb   :  { %v810_v20 = vmul.f32 %v809_v38, %v784_v34  ;;  %v811_v60 = vmul.f32 %v809_v38, %v785_v32  ;;  %v812_v53 = vmul.f32 %v809_v38, %v786_v16  ;;  %v813_v63 = vmul.f32 %v809_v38, %v787_v57 }
  0xec   :  { %v814_v62 = vmul.f32 %v809_v38, %v788_v28  ;;  %v815_v1 = vmul.f32 %v809_v38, %v789_v30  ;;  %v816_v39 = vmul.f32 %v809_v38, %v790_v13  ;;  %v817_v4 = vmul.f32 %v809_v38, %v791_v15 }
  0xed   :  { %v3575_v44 = vadd.f32 %v810_v20, %v758_v35  ;;  %v3577_v50 = vadd.f32 %v811_v60, %v759_v43  ;;  %v3579_v8 = vadd.f32 %v812_v53, %v760_v27  ;;  %v3581_v5 = vadd.f32 %v813_v63, %v761_v52 }
  0xee   :  { %v3583_v58 = vadd.f32 %v814_v62, %v762_v29  ;;  %v3585_v10 = vadd.f32 %v815_v1, %v763_v54  ;;  %v3587_v11 = vadd.f32 %v816_v39, %v764_v26  ;;  %v3589_v59 = vadd.f32 %v817_v4, %v765_v19 }
  0xef   :  { %v826_v37 = vstv %s3543_s12  ;;  %v835_v6 = vstv %s3545_s13  ;;  %v852_v42 = vstv %s3547_s14  ;;  %v869_v38 = vstv %s3549_s15  ;;  %s4023_s12 = sld [smem:[#allocation6 + $0x11]]  ;;  %s4027_s14 = sld [smem:[#allocation9 + $0x22]] }
  0xf0   :  { %v827_v35 = vmul.f32 %v3512_v22, %v826_v37  ;;  %v828_v43 = vmul.f32 %v3516_v31, %v826_v37  ;;  %v829_v27 = vmul.f32 %v3453_v55, %v826_v37  ;;  %v830_v52 = vmul.f32 %v3457_v48, %v826_v37  ;;  %s4025_s13 = sld [smem:[#allocation7 + $0x11]]  ;;  %s4029_s15 = sld [smem:[#allocation9 + $0x23]] }
  0xf1   :  { %v831_v29 = vmul.f32 %v3461_v36, %v826_v37  ;;  %v832_v54 = vmul.f32 %v3465_v24, %v826_v37  ;;  %v833_v26 = vmul.f32 %v3469_v0, %v826_v37  ;;  %v834_v19 = vmul.f32 %v3473_v61, %v826_v37 }
  0xf2   :  { %v836_v40 = vadd.f32 %v835_v6, %v827_v35  ;;  %v837_v9 = vadd.f32 %v835_v6, %v828_v43  ;;  %v838_v49 = vadd.f32 %v835_v6, %v829_v27  ;;  %v839_v12 = vadd.f32 %v835_v6, %v830_v52 }
  0xf3   :  { %v840_v34 = vadd.f32 %v835_v6, %v831_v29  ;;  %v841_v32 = vadd.f32 %v835_v6, %v832_v54  ;;  %v842_v16 = vadd.f32 %v835_v6, %v833_v26  ;;  %v843_v57 = vadd.f32 %v835_v6, %v834_v19 }
  0xf4   :  { %v844_v28 = vmax.f32 %v836_v40, 0.0  ;;  %v845_v30 = vmax.f32 %v837_v9, 0.0  ;;  %v846_v13 = vmax.f32 %v838_v49, 0.0  ;;  %v847_v15 = vmax.f32 %v839_v12, 0.0 }
  0xf5   :  { %v848_v18 = vmax.f32 %v840_v34, 0.0  ;;  %v849_v14 = vmax.f32 %v841_v32, 0.0  ;;  %v850_v7 = vmax.f32 %v842_v16, 0.0  ;;  %v851_v3 = vmax.f32 %v843_v57, 0.0 }
  0xf6   :  { %v853_v23 = vmul.f32 %v852_v42, %v844_v28  ;;  %v854_v33 = vmul.f32 %v852_v42, %v845_v30  ;;  %v855_v45 = vmul.f32 %v852_v42, %v846_v13  ;;  %v856_v17 = vmul.f32 %v852_v42, %v847_v15 }
  0xf7   :  { %v857_v20 = vmul.f32 %v852_v42, %v848_v18  ;;  %v858_v60 = vmul.f32 %v852_v42, %v849_v14  ;;  %v859_v53 = vmul.f32 %v852_v42, %v850_v7  ;;  %v860_v63 = vmul.f32 %v852_v42, %v851_v3 }
  0xf8   :  { %v3612_v62 = vadd.f32 %v853_v23, %v3552_v51  ;;  %v3615_v1 = vadd.f32 %v854_v33, %v3555_v21  ;;  %v3618_v39 = vadd.f32 %v855_v45, %v3558_v46  ;;  %v3621_v4 = vadd.f32 %v856_v17, %v3561_v47 }
  0xf9   :  { %v3624_v37 = vadd.f32 %v857_v20, %v3564_v2  ;;  %v3627_v6 = vadd.f32 %v858_v60, %v3567_v56  ;;  %v3630_v42 = vadd.f32 %v859_v53, %v3570_v25  ;;  %v3633_v51 = vadd.f32 %v860_v63, %v3573_v41 }
  0xfa   :  { %v870_v21 = vmul.f32 %v869_v38, %v844_v28  ;;  %v871_v35 = vmul.f32 %v869_v38, %v845_v30  ;;  %v872_v46 = vmul.f32 %v869_v38, %v846_v13  ;;  %v873_v47 = vmul.f32 %v869_v38, %v847_v15 }
  0xfb   :  { %v874_v43 = vmul.f32 %v869_v38, %v848_v18  ;;  %v875_v2 = vmul.f32 %v869_v38, %v849_v14  ;;  %v876_v27 = vmul.f32 %v869_v38, %v850_v7  ;;  %v877_v52 = vmul.f32 %v869_v38, %v851_v3 }
  0xfc   :  { %v3636_v56 = vadd.f32 %v870_v21, %v3575_v44  ;;  %v3639_v25 = vadd.f32 %v871_v35, %v3577_v50  ;;  %v3642_v41 = vadd.f32 %v872_v46, %v3579_v8  ;;  %v3645_v29 = vadd.f32 %v873_v47, %v3581_v5 }
  0xfd   :  { %v3648_v54 = vadd.f32 %v874_v43, %v3583_v58  ;;  %v3651_v26 = vadd.f32 %v875_v2, %v3585_v10  ;;  %v3654_v38 = vadd.f32 %v876_v27, %v3587_v11  ;;  %v3657_v44 = vadd.f32 %v877_v52, %v3589_v59 }
  0xfe   :  { %v886_v50 = vstv %s3603_s16  ;;  %v895_v19 = vstv %s3605_s17  ;;  %v912_v40 = vstv %s3607_s18  ;;  %v929_v8 = vstv %s3609_s0  ;;  %s4095_s16 = sld [smem:[#allocation6 + $0x12]]  ;;  %s4099_s18 = sld [smem:[#allocation9 + $0x24]] }
  0xff   :  { %v887_v9 = vmul.f32 %v3512_v22, %v886_v50  ;;  %v888_v5 = vmul.f32 %v3516_v31, %v886_v50  ;;  %v889_v58 = vmul.f32 %v3453_v55, %v886_v50  ;;  %v890_v49 = vmul.f32 %v3457_v48, %v886_v50  ;;  %s4097_s17 = sld [smem:[#allocation7 + $0x12]]  ;;  %s4101_s0 = sld [smem:[#allocation9 + $0x25]] }
 0x100   :  { %v891_v10 = vmul.f32 %v3461_v36, %v886_v50  ;;  %v892_v11 = vmul.f32 %v3465_v24, %v886_v50  ;;  %v893_v12 = vmul.f32 %v3469_v0, %v886_v50  ;;  %v894_v59 = vmul.f32 %v3473_v61, %v886_v50 }
 0x101   :  { %v896_v34 = vadd.f32 %v895_v19, %v887_v9  ;;  %v897_v32 = vadd.f32 %v895_v19, %v888_v5  ;;  %v898_v16 = vadd.f32 %v895_v19, %v889_v58  ;;  %v899_v57 = vadd.f32 %v895_v19, %v890_v49 }
 0x102   :  { %v900_v28 = vadd.f32 %v895_v19, %v891_v10  ;;  %v901_v30 = vadd.f32 %v895_v19, %v892_v11  ;;  %v902_v13 = vadd.f32 %v895_v19, %v893_v12  ;;  %v903_v15 = vadd.f32 %v895_v19, %v894_v59 }
 0x103   :  { %v904_v18 = vmax.f32 %v896_v34, 0.0  ;;  %v905_v14 = vmax.f32 %v897_v32, 0.0  ;;  %v906_v7 = vmax.f32 %v898_v16, 0.0  ;;  %v907_v3 = vmax.f32 %v899_v57, 0.0 }
 0x104   :  { %v908_v23 = vmax.f32 %v900_v28, 0.0  ;;  %v909_v33 = vmax.f32 %v901_v30, 0.0  ;;  %v910_v45 = vmax.f32 %v902_v13, 0.0  ;;  %v911_v17 = vmax.f32 %v903_v15, 0.0 }
 0x105   :  { %v913_v20 = vmul.f32 %v912_v40, %v904_v18  ;;  %v914_v60 = vmul.f32 %v912_v40, %v905_v14  ;;  %v915_v53 = vmul.f32 %v912_v40, %v906_v7  ;;  %v916_v63 = vmul.f32 %v912_v40, %v907_v3 }
 0x106   :  { %v917_v21 = vmul.f32 %v912_v40, %v908_v23  ;;  %v918_v35 = vmul.f32 %v912_v40, %v909_v33  ;;  %v919_v46 = vmul.f32 %v912_v40, %v910_v45  ;;  %v920_v47 = vmul.f32 %v912_v40, %v911_v17 }
 0x107   :  { %v3680_v43 = vadd.f32 %v913_v20, %v3612_v62  ;;  %v3683_v2 = vadd.f32 %v914_v60, %v3615_v1  ;;  %v3686_v27 = vadd.f32 %v915_v53, %v3618_v39  ;;  %v3689_v52 = vadd.f32 %v916_v63, %v3621_v4 }
 0x108   :  { %v3692_v50 = vadd.f32 %v917_v21, %v3624_v37  ;;  %v3695_v19 = vadd.f32 %v918_v35, %v3627_v6  ;;  %v3698_v40 = vadd.f32 %v919_v46, %v3630_v42  ;;  %v3701_v62 = vadd.f32 %v920_v47, %v3633_v51 }
 0x109   :  { %v930_v1 = vmul.f32 %v929_v8, %v904_v18  ;;  %v931_v9 = vmul.f32 %v929_v8, %v905_v14  ;;  %v932_v39 = vmul.f32 %v929_v8, %v906_v7  ;;  %v933_v4 = vmul.f32 %v929_v8, %v907_v3 }
 0x10a   :  { %v934_v5 = vmul.f32 %v929_v8, %v908_v23  ;;  %v935_v37 = vmul.f32 %v929_v8, %v909_v33  ;;  %v936_v58 = vmul.f32 %v929_v8, %v910_v45  ;;  %v937_v49 = vmul.f32 %v929_v8, %v911_v17 }
 0x10b   :  { %v3704_v6 = vadd.f32 %v930_v1, %v3636_v56  ;;  %v3707_v42 = vadd.f32 %v931_v9, %v3639_v25  ;;  %v3710_v51 = vadd.f32 %v932_v39, %v3642_v41  ;;  %v3713_v10 = vadd.f32 %v933_v4, %v3645_v29 }
 0x10c   :  { %v3716_v11 = vadd.f32 %v934_v5, %v3648_v54  ;;  %v3719_v12 = vadd.f32 %v935_v37, %v3651_v26  ;;  %v3722_v8 = vadd.f32 %v936_v58, %v3654_v38  ;;  %v3725_v56 = vadd.f32 %v937_v49, %v3657_v44 }
 0x10d   :  { %v946_v25 = vstv %s3671_s1  ;;  %v955_v59 = vstv %s3673_s3  ;;  %v972_v34 = vstv %s3675_s19  ;;  %v989_v41 = vstv %s3677_s20  ;;  %s4163_s1 = sld [smem:[#allocation6 + $0x13]]  ;;  %s4167_s19 = sld [smem:[#allocation9 + $0x26]] }
 0x10e   :  { %v947_v32 = vmul.f32 %v3512_v22, %v946_v25  ;;  %v948_v29 = vmul.f32 %v3516_v31, %v946_v25  ;;  %v949_v54 = vmul.f32 %v3453_v55, %v946_v25  ;;  %v950_v16 = vmul.f32 %v3457_v48, %v946_v25  ;;  %s4165_s3 = sld [smem:[#allocation7 + $0x13]]  ;;  %s4169_s20 = sld [smem:[#allocation9 + $0x27]] }
 0x10f   :  { %v951_v26 = vmul.f32 %v3461_v36, %v946_v25  ;;  %v952_v38 = vmul.f32 %v3465_v24, %v946_v25  ;;  %v953_v57 = vmul.f32 %v3469_v0, %v946_v25  ;;  %v954_v44 = vmul.f32 %v3473_v61, %v946_v25 }
 0x110   :  { %v956_v28 = vadd.f32 %v955_v59, %v947_v32  ;;  %v957_v30 = vadd.f32 %v955_v59, %v948_v29  ;;  %v958_v13 = vadd.f32 %v955_v59, %v949_v54  ;;  %v959_v15 = vadd.f32 %v955_v59, %v950_v16 }
 0x111   :  { %v960_v18 = vadd.f32 %v955_v59, %v951_v26  ;;  %v961_v14 = vadd.f32 %v955_v59, %v952_v38  ;;  %v962_v7 = vadd.f32 %v955_v59, %v953_v57  ;;  %v963_v3 = vadd.f32 %v955_v59, %v954_v44 }
 0x112   :  { %v964_v23 = vmax.f32 %v956_v28, 0.0  ;;  %v965_v33 = vmax.f32 %v957_v30, 0.0  ;;  %v966_v45 = vmax.f32 %v958_v13, 0.0  ;;  %v967_v17 = vmax.f32 %v959_v15, 0.0 }
 0x113   :  { %v968_v20 = vmax.f32 %v960_v18, 0.0  ;;  %v969_v60 = vmax.f32 %v961_v14, 0.0  ;;  %v970_v53 = vmax.f32 %v962_v7, 0.0  ;;  %v971_v63 = vmax.f32 %v963_v3, 0.0 }
 0x114   :  { %v973_v21 = vmul.f32 %v972_v34, %v964_v23  ;;  %v974_v35 = vmul.f32 %v972_v34, %v965_v33  ;;  %v975_v46 = vmul.f32 %v972_v34, %v966_v45  ;;  %v976_v47 = vmul.f32 %v972_v34, %v967_v17 }
 0x115   :  { %v977_v1 = vmul.f32 %v972_v34, %v968_v20  ;;  %v978_v9 = vmul.f32 %v972_v34, %v969_v60  ;;  %v979_v39 = vmul.f32 %v972_v34, %v970_v53  ;;  %v980_v4 = vmul.f32 %v972_v34, %v971_v63 }
 0x116   :  { %v3748_v5 = vadd.f32 %v973_v21, %v3680_v43  ;;  %v3751_v37 = vadd.f32 %v974_v35, %v3683_v2  ;;  %v3754_v58 = vadd.f32 %v975_v46, %v3686_v27  ;;  %v3757_v49 = vadd.f32 %v976_v47, %v3689_v52 }
 0x117   :  { %v3760_v25 = vadd.f32 %v977_v1, %v3692_v50  ;;  %v3763_v59 = vadd.f32 %v978_v9, %v3695_v19  ;;  %v3766_v34 = vadd.f32 %v979_v39, %v3698_v40  ;;  %v3769_v43 = vadd.f32 %v980_v4, %v3701_v62 }
 0x118   :  { %v990_v2 = vmul.f32 %v989_v41, %v964_v23  ;;  %v991_v32 = vmul.f32 %v989_v41, %v965_v33  ;;  %v992_v27 = vmul.f32 %v989_v41, %v966_v45  ;;  %v993_v52 = vmul.f32 %v989_v41, %v967_v17 }
 0x119   :  { %v994_v29 = vmul.f32 %v989_v41, %v968_v20  ;;  %v995_v50 = vmul.f32 %v989_v41, %v969_v60  ;;  %v996_v54 = vmul.f32 %v989_v41, %v970_v53  ;;  %v997_v16 = vmul.f32 %v989_v41, %v971_v63 }
 0x11a   :  { %v3772_v19 = vadd.f32 %v990_v2, %v3704_v6  ;;  %v3775_v40 = vadd.f32 %v991_v32, %v3707_v42  ;;  %v3778_v62 = vadd.f32 %v992_v27, %v3710_v51  ;;  %v3781_v26 = vadd.f32 %v993_v52, %v3713_v10 }
 0x11b   :  { %v3784_v38 = vadd.f32 %v994_v29, %v3716_v11  ;;  %v3787_v57 = vadd.f32 %v995_v50, %v3719_v12  ;;  %v3790_v41 = vadd.f32 %v996_v54, %v3722_v8  ;;  %v3793_v6 = vadd.f32 %v997_v16, %v3725_v56 }
 0x11c   :  { %v1006_v42 = vstv %s3739_s21  ;;  %v1015_v44 = vstv %s3741_s22  ;;  %v1032_v28 = vstv %s3743_s4  ;;  %v1049_v51 = vstv %s3745_s23  ;;  %s4231_s21 = sld [smem:[#allocation6 + $0x14]]  ;;  %s4235_s4 = sld [smem:[#allocation9 + $0x28]] }
 0x11d   :  { %v1007_v30 = vmul.f32 %v3512_v22, %v1006_v42  ;;  %v1008_v10 = vmul.f32 %v3516_v31, %v1006_v42  ;;  %v1009_v11 = vmul.f32 %v3453_v55, %v1006_v42  ;;  %v1010_v13 = vmul.f32 %v3457_v48, %v1006_v42  ;;  %s4233_s22 = sld [smem:[#allocation7 + $0x14]]  ;;  %s4237_s23 = sld [smem:[#allocation9 + $0x29]] }
 0x11e   :  { %v1011_v12 = vmul.f32 %v3461_v36, %v1006_v42  ;;  %v1012_v8 = vmul.f32 %v3465_v24, %v1006_v42  ;;  %v1013_v15 = vmul.f32 %v3469_v0, %v1006_v42  ;;  %v1014_v56 = vmul.f32 %v3473_v61, %v1006_v42 }
 0x11f   :  { %v1016_v18 = vadd.f32 %v1015_v44, %v1007_v30  ;;  %v1017_v14 = vadd.f32 %v1015_v44, %v1008_v10  ;;  %v1018_v7 = vadd.f32 %v1015_v44, %v1009_v11  ;;  %v1019_v3 = vadd.f32 %v1015_v44, %v1010_v13 }
 0x120   :  { %v1020_v23 = vadd.f32 %v1015_v44, %v1011_v12  ;;  %v1021_v33 = vadd.f32 %v1015_v44, %v1012_v8  ;;  %v1022_v45 = vadd.f32 %v1015_v44, %v1013_v15  ;;  %v1023_v17 = vadd.f32 %v1015_v44, %v1014_v56 }
 0x121   :  { %v1024_v20 = vmax.f32 %v1016_v18, 0.0  ;;  %v1025_v60 = vmax.f32 %v1017_v14, 0.0  ;;  %v1026_v53 = vmax.f32 %v1018_v7, 0.0  ;;  %v1027_v63 = vmax.f32 %v1019_v3, 0.0 }
 0x122   :  { %v1028_v21 = vmax.f32 %v1020_v23, 0.0  ;;  %v1029_v35 = vmax.f32 %v1021_v33, 0.0  ;;  %v1030_v46 = vmax.f32 %v1022_v45, 0.0  ;;  %v1031_v47 = vmax.f32 %v1023_v17, 0.0 }
 0x123   :  { %v1033_v1 = vmul.f32 %v1032_v28, %v1024_v20  ;;  %v1034_v9 = vmul.f32 %v1032_v28, %v1025_v60  ;;  %v1035_v39 = vmul.f32 %v1032_v28, %v1026_v53  ;;  %v1036_v4 = vmul.f32 %v1032_v28, %v1027_v63 }
 0x124   :  { %v1037_v2 = vmul.f32 %v1032_v28, %v1028_v21  ;;  %v1038_v32 = vmul.f32 %v1032_v28, %v1029_v35  ;;  %v1039_v27 = vmul.f32 %v1032_v28, %v1030_v46  ;;  %v1040_v52 = vmul.f32 %v1032_v28, %v1031_v47 }
 0x125   :  { %v3816_v29 = vadd.f32 %v1033_v1, %v3748_v5  ;;  %v3819_v50 = vadd.f32 %v1034_v9, %v3751_v37  ;;  %v3822_v54 = vadd.f32 %v1035_v39, %v3754_v58  ;;  %v3825_v16 = vadd.f32 %v1036_v4, %v3757_v49 }
 0x126   :  { %v3828_v42 = vadd.f32 %v1037_v2, %v3760_v25  ;;  %v3831_v44 = vadd.f32 %v1038_v32, %v3763_v59  ;;  %v3834_v28 = vadd.f32 %v1039_v27, %v3766_v34  ;;  %v3837_v5 = vadd.f32 %v1040_v52, %v3769_v43 }
 0x127   :  { %v1050_v37 = vmul.f32 %v1049_v51, %v1024_v20  ;;  %v1051_v30 = vmul.f32 %v1049_v51, %v1025_v60  ;;  %v1052_v58 = vmul.f32 %v1049_v51, %v1026_v53  ;;  %v1053_v49 = vmul.f32 %v1049_v51, %v1027_v63 }
 0x128   :  { %v1054_v10 = vmul.f32 %v1049_v51, %v1028_v21  ;;  %v1055_v25 = vmul.f32 %v1049_v51, %v1029_v35  ;;  %v1056_v11 = vmul.f32 %v1049_v51, %v1030_v46  ;;  %v1057_v13 = vmul.f32 %v1049_v51, %v1031_v47 }
 0x129   :  { %v3840_v59 = vadd.f32 %v1050_v37, %v3772_v19  ;;  %v3843_v34 = vadd.f32 %v1051_v30, %v3775_v40  ;;  %v3846_v43 = vadd.f32 %v1052_v58, %v3778_v62  ;;  %v3849_v12 = vadd.f32 %v1053_v49, %v3781_v26 }
 0x12a   :  { %v3852_v8 = vadd.f32 %v1054_v10, %v3784_v38  ;;  %v3855_v15 = vadd.f32 %v1055_v25, %v3787_v57  ;;  %v3858_v51 = vadd.f32 %v1056_v11, %v3790_v41  ;;  %v3861_v19 = vadd.f32 %v1057_v13, %v3793_v6 }
 0x12b   :  { %v1066_v40 = vstv %s3807_s24  ;;  %v1075_v56 = vstv %s3809_s25  ;;  %v1092_v18 = vstv %s3811_s26  ;;  %v1109_v62 = vstv %s3813_s27  ;;  %s4299_s24 = sld [smem:[#allocation6 + $0x15]]  ;;  %s4303_s26 = sld [smem:[#allocation9 + $0x2a]] }
 0x12c   :  { %v1067_v14 = vmul.f32 %v3512_v22, %v1066_v40  ;;  %v1068_v26 = vmul.f32 %v3516_v31, %v1066_v40  ;;  %v1069_v38 = vmul.f32 %v3453_v55, %v1066_v40  ;;  %v1070_v7 = vmul.f32 %v3457_v48, %v1066_v40  ;;  %s4301_s25 = sld [smem:[#allocation7 + $0x15]]  ;;  %s4305_s27 = sld [smem:[#allocation9 + $0x2b]] }
 0x12d   :  { %v1071_v57 = vmul.f32 %v3461_v36, %v1066_v40  ;;  %v1072_v41 = vmul.f32 %v3465_v24, %v1066_v40  ;;  %v1073_v3 = vmul.f32 %v3469_v0, %v1066_v40  ;;  %v1074_v6 = vmul.f32 %v3473_v61, %v1066_v40 }
 0x12e   :  { %v1076_v23 = vadd.f32 %v1075_v56, %v1067_v14  ;;  %v1077_v33 = vadd.f32 %v1075_v56, %v1068_v26  ;;  %v1078_v45 = vadd.f32 %v1075_v56, %v1069_v38  ;;  %v1079_v17 = vadd.f32 %v1075_v56, %v1070_v7 }
 0x12f   :  { %v1080_v20 = vadd.f32 %v1075_v56, %v1071_v57  ;;  %v1081_v60 = vadd.f32 %v1075_v56, %v1072_v41  ;;  %v1082_v53 = vadd.f32 %v1075_v56, %v1073_v3  ;;  %v1083_v63 = vadd.f32 %v1075_v56, %v1074_v6 }
 0x130   :  { %v1084_v21 = vmax.f32 %v1076_v23, 0.0  ;;  %v1085_v35 = vmax.f32 %v1077_v33, 0.0  ;;  %v1086_v46 = vmax.f32 %v1078_v45, 0.0  ;;  %v1087_v47 = vmax.f32 %v1079_v17, 0.0 }
 0x131   :  { %v1088_v1 = vmax.f32 %v1080_v20, 0.0  ;;  %v1089_v9 = vmax.f32 %v1081_v60, 0.0  ;;  %v1090_v39 = vmax.f32 %v1082_v53, 0.0  ;;  %v1091_v4 = vmax.f32 %v1083_v63, 0.0 }
 0x132   :  { %v1093_v2 = vmul.f32 %v1092_v18, %v1084_v21  ;;  %v1094_v32 = vmul.f32 %v1092_v18, %v1085_v35  ;;  %v1095_v27 = vmul.f32 %v1092_v18, %v1086_v46  ;;  %v1096_v52 = vmul.f32 %v1092_v18, %v1087_v47 }
 0x133   :  { %v1097_v37 = vmul.f32 %v1092_v18, %v1088_v1  ;;  %v1098_v30 = vmul.f32 %v1092_v18, %v1089_v9  ;;  %v1099_v58 = vmul.f32 %v1092_v18, %v1090_v39  ;;  %v1100_v49 = vmul.f32 %v1092_v18, %v1091_v4 }
 0x134   :  { %v3884_v10 = vadd.f32 %v1093_v2, %v3816_v29  ;;  %v3887_v25 = vadd.f32 %v1094_v32, %v3819_v50  ;;  %v3890_v11 = vadd.f32 %v1095_v27, %v3822_v54  ;;  %v3893_v13 = vadd.f32 %v1096_v52, %v3825_v16 }
 0x135   :  { %v3896_v40 = vadd.f32 %v1097_v37, %v3828_v42  ;;  %v3899_v56 = vadd.f32 %v1098_v30, %v3831_v44  ;;  %v3902_v18 = vadd.f32 %v1099_v58, %v3834_v28  ;;  %v3905_v29 = vadd.f32 %v1100_v49, %v3837_v5 }
 0x136   :  { %v1110_v50 = vmul.f32 %v1109_v62, %v1084_v21  ;;  %v1111_v14 = vmul.f32 %v1109_v62, %v1085_v35  ;;  %v1112_v54 = vmul.f32 %v1109_v62, %v1086_v46  ;;  %v1113_v16 = vmul.f32 %v1109_v62, %v1087_v47 }
 0x137   :  { %v1114_v26 = vmul.f32 %v1109_v62, %v1088_v1  ;;  %v1115_v42 = vmul.f32 %v1109_v62, %v1089_v9  ;;  %v1116_v38 = vmul.f32 %v1109_v62, %v1090_v39  ;;  %v1117_v7 = vmul.f32 %v1109_v62, %v1091_v4 }
 0x138   :  { %v3908_v44 = vadd.f32 %v1110_v50, %v3840_v59  ;;  %v3911_v28 = vadd.f32 %v1111_v14, %v3843_v34  ;;  %v3914_v5 = vadd.f32 %v1112_v54, %v3846_v43  ;;  %v3917_v57 = vadd.f32 %v1113_v16, %v3849_v12 }
 0x139   :  { %v3920_v41 = vadd.f32 %v1114_v26, %v3852_v8  ;;  %v3923_v3 = vadd.f32 %v1115_v42, %v3855_v15  ;;  %v3926_v62 = vadd.f32 %v1116_v38, %v3858_v51  ;;  %v3929_v59 = vadd.f32 %v1117_v7, %v3861_v19 }
 0x13a   :  { %v1126_v34 = vstv %s3875_s28  ;;  %v1135_v6 = vstv %s3877_s2  ;;  %v1152_v23 = vstv %s3879_s29  ;;  %v1169_v43 = vstv %s3881_s30  ;;  %s4367_s28 = sld [smem:[#allocation6 + $0x16]]  ;;  %s4371_s29 = sld [smem:[#allocation9 + $0x2c]] }
 0x13b   :  { %v1127_v33 = vmul.f32 %v3512_v22, %v1126_v34  ;;  %v1128_v12 = vmul.f32 %v3516_v31, %v1126_v34  ;;  %v1129_v8 = vmul.f32 %v3453_v55, %v1126_v34  ;;  %v1130_v45 = vmul.f32 %v3457_v48, %v1126_v34  ;;  %s4369_s2 = sld [smem:[#allocation7 + $0x16]]  ;;  %s4373_s30 = sld [smem:[#allocation9 + $0x2d]] }
 0x13c   :  { %v1131_v15 = vmul.f32 %v3461_v36, %v1126_v34  ;;  %v1132_v51 = vmul.f32 %v3465_v24, %v1126_v34  ;;  %v1133_v17 = vmul.f32 %v3469_v0, %v1126_v34  ;;  %v1134_v19 = vmul.f32 %v3473_v61, %v1126_v34 }
 0x13d   :  { %v1136_v20 = vadd.f32 %v1135_v6, %v1127_v33  ;;  %v1137_v60 = vadd.f32 %v1135_v6, %v1128_v12  ;;  %v1138_v53 = vadd.f32 %v1135_v6, %v1129_v8  ;;  %v1139_v63 = vadd.f32 %v1135_v6, %v1130_v45 }
 0x13e   :  { %v1140_v21 = vadd.f32 %v1135_v6, %v1131_v15  ;;  %v1141_v35 = vadd.f32 %v1135_v6, %v1132_v51  ;;  %v1142_v46 = vadd.f32 %v1135_v6, %v1133_v17  ;;  %v1143_v47 = vadd.f32 %v1135_v6, %v1134_v19  ;;  %v4005_v15 = vld [vmem:[#allocation2 + $0x10] sm:$0xff]  ;;  %v4011_v51 = vld [vmem:[#allocation2 + $0x20] sm:$0xff]  ;;  %v4014_v17 = vld [vmem:[#allocation2 + $0x28] sm:$0xff] }
 0x13f   :  { %v1144_v55 = vmax.f32 %v1136_v20, 0.0  ;;  %v1145_v48 = vmax.f32 %v1137_v60, 0.0  ;;  %v1146_v1 = vmax.f32 %v1138_v53, 0.0  ;;  %v1147_v36 = vmax.f32 %v1139_v63, 0.0  ;;  %v4017_v20 = vld [vmem:[#allocation2 + $0x30] sm:$0xff] }
 0x140   :  { %v1148_v24 = vmax.f32 %v1140_v21, 0.0  ;;  %v1149_v0 = vmax.f32 %v1141_v35, 0.0  ;;  %v1150_v9 = vmax.f32 %v1142_v46, 0.0  ;;  %v1151_v61 = vmax.f32 %v1143_v47, 0.0 }
 0x141   :  { %v1153_v39 = vmul.f32 %v1152_v23, %v1144_v55  ;;  %v1154_v4 = vmul.f32 %v1152_v23, %v1145_v48  ;;  %v1155_v2 = vmul.f32 %v1152_v23, %v1146_v1  ;;  %v1156_v32 = vmul.f32 %v1152_v23, %v1147_v36 }
 0x142   :  { %v1157_v27 = vmul.f32 %v1152_v23, %v1148_v24  ;;  %v1158_v52 = vmul.f32 %v1152_v23, %v1149_v0  ;;  %v1159_v37 = vmul.f32 %v1152_v23, %v1150_v9  ;;  %v1160_v30 = vmul.f32 %v1152_v23, %v1151_v61 }
 0x143   :  { %v3952_v58 = vadd.f32 %v1153_v39, %v3884_v10  ;;  %v3955_v49 = vadd.f32 %v1154_v4, %v3887_v25  ;;  %v3958_v50 = vadd.f32 %v1155_v2, %v3890_v11  ;;  %v3961_v14 = vadd.f32 %v1156_v32, %v3893_v13 }
 0x144   :  { %v3964_v54 = vadd.f32 %v1157_v27, %v3896_v40  ;;  %v3967_v16 = vadd.f32 %v1158_v52, %v3899_v56  ;;  %v3970_v26 = vadd.f32 %v1159_v37, %v3902_v18  ;;  %v3973_v10 = vadd.f32 %v1160_v30, %v3905_v29 }
 0x145   :  { %v1170_v25 = vmul.f32 %v1169_v43, %v1144_v55  ;;  %v1171_v42 = vmul.f32 %v1169_v43, %v1145_v48  ;;  %v1172_v11 = vmul.f32 %v1169_v43, %v1146_v1  ;;  %v1173_v13 = vmul.f32 %v1169_v43, %v1147_v36 }
 0x146   :  { %v1174_v38 = vmul.f32 %v1169_v43, %v1148_v24  ;;  %v1175_v40 = vmul.f32 %v1169_v43, %v1149_v0  ;;  %v1176_v7 = vmul.f32 %v1169_v43, %v1150_v9  ;;  %v1177_v34 = vmul.f32 %v1169_v43, %v1151_v61 }
 0x147   :  { %v3976_v56 = vadd.f32 %v1170_v25, %v3908_v44  ;;  %v3979_v18 = vadd.f32 %v1171_v42, %v3911_v28  ;;  %v3982_v29 = vadd.f32 %v1172_v11, %v3914_v5  ;;  %v3985_v6 = vadd.f32 %v1173_v13, %v3917_v57 }
 0x148   :  { %v3988_v23 = vadd.f32 %v1174_v38, %v3920_v41  ;;  %v3991_v33 = vadd.f32 %v1175_v40, %v3923_v3  ;;  %v3994_v43 = vadd.f32 %v1176_v7, %v3926_v62  ;;  %v3997_v44 = vadd.f32 %v1177_v34, %v3929_v59  ;;  %v4008_v3 = vld [vmem:[#allocation2 + $0x18] sm:$0xff] }
 0x149   :  { %v1186_v28 = vstv %s3943_s6  ;;  %v1195_v12 = vstv %s3945_s9  ;;  %v1212_v8 = vstv %s3947_s10  ;;  %v1229_v5 = vstv %s3949_s11  ;;  %s4435_s6 = sld [smem:[#allocation6 + $0x17]]  ;;  %s4439_s10 = sld [smem:[#allocation9 + $0x2e]] }
 0x14a   :  { %v1187_v45 = vmul.f32 %v3512_v22, %v1186_v28  ;;  %v1188_v57 = vmul.f32 %v3516_v31, %v1186_v28  ;;  %v1189_v41 = vmul.f32 %v4005_v15, %v1186_v28  ;;  %v1190_v62 = vmul.f32 %v4008_v3, %v1186_v28  ;;  %v4020_v31 = vld [vmem:[#allocation2 + $0x38] sm:$0xff]  ;;  %s4437_s9 = sld [smem:[#allocation7 + $0x17]] }
 0x14b   :  { %v1191_v59 = vmul.f32 %v4011_v51, %v1186_v28  ;;  %v1192_v19 = vmul.f32 %v4014_v17, %v1186_v28  ;;  %v1193_v22 = vmul.f32 %v4017_v20, %v1186_v28  ;;  %v1194_v60 = vmul.f32 %v4020_v31, %v1186_v28  ;;  %s4441_s11 = sld [smem:[#allocation9 + $0x2f]] }
 0x14c   :  { %v1196_v53 = vadd.f32 %v1195_v12, %v1187_v45  ;;  %v1197_v63 = vadd.f32 %v1195_v12, %v1188_v57  ;;  %v1198_v21 = vadd.f32 %v1195_v12, %v1189_v41  ;;  %v1199_v35 = vadd.f32 %v1195_v12, %v1190_v62 }
 0x14d   :  { %v1200_v46 = vadd.f32 %v1195_v12, %v1191_v59  ;;  %v1201_v47 = vadd.f32 %v1195_v12, %v1192_v19  ;;  %v1202_v55 = vadd.f32 %v1195_v12, %v1193_v22  ;;  %v1203_v48 = vadd.f32 %v1195_v12, %v1194_v60  ;;  %v4083_v60 = vld [vmem:[#allocation2] sm:$0xff] }
 0x14e   :  { %v1204_v1 = vmax.f32 %v1196_v53, 0.0  ;;  %v1205_v36 = vmax.f32 %v1197_v63, 0.0  ;;  %v1206_v24 = vmax.f32 %v1198_v21, 0.0  ;;  %v1207_v0 = vmax.f32 %v1199_v35, 0.0  ;;  %v4086_v53 = vld [vmem:[#allocation2 + $0x8] sm:$0xff] }
 0x14f   :  { %v1208_v9 = vmax.f32 %v1200_v46, 0.0  ;;  %v1209_v61 = vmax.f32 %v1201_v47, 0.0  ;;  %v1210_v39 = vmax.f32 %v1202_v55, 0.0  ;;  %v1211_v4 = vmax.f32 %v1203_v48, 0.0 }
 0x150   :  { %v1213_v2 = vmul.f32 %v1212_v8, %v1204_v1  ;;  %v1214_v32 = vmul.f32 %v1212_v8, %v1205_v36  ;;  %v1215_v27 = vmul.f32 %v1212_v8, %v1206_v24  ;;  %v1216_v52 = vmul.f32 %v1212_v8, %v1207_v0 }
 0x151   :  { %v1217_v37 = vmul.f32 %v1212_v8, %v1208_v9  ;;  %v1218_v30 = vmul.f32 %v1212_v8, %v1209_v61  ;;  %v1219_v25 = vmul.f32 %v1212_v8, %v1210_v39  ;;  %v1220_v42 = vmul.f32 %v1212_v8, %v1211_v4 }
 0x152   :  { %v4032_v11 = vadd.f32 %v1213_v2, %v3952_v58  ;;  %v4035_v13 = vadd.f32 %v1214_v32, %v3955_v49  ;;  %v4038_v38 = vadd.f32 %v1215_v27, %v3958_v50  ;;  %v4041_v40 = vadd.f32 %v1216_v52, %v3961_v14 }
 0x153   :  { %v4044_v7 = vadd.f32 %v1217_v37, %v3964_v54  ;;  %v4047_v34 = vadd.f32 %v1218_v30, %v3967_v16  ;;  %v4050_v28 = vadd.f32 %v1219_v25, %v3970_v26  ;;  %v4053_v58 = vadd.f32 %v1220_v42, %v3973_v10 }
 0x154   :  { %v1230_v49 = vmul.f32 %v1229_v5, %v1204_v1  ;;  %v1231_v12 = vmul.f32 %v1229_v5, %v1205_v36  ;;  %v1232_v50 = vmul.f32 %v1229_v5, %v1206_v24  ;;  %v1233_v14 = vmul.f32 %v1229_v5, %v1207_v0 }
 0x155   :  { %v1234_v8 = vmul.f32 %v1229_v5, %v1208_v9  ;;  %v1235_v54 = vmul.f32 %v1229_v5, %v1209_v61  ;;  %v1236_v45 = vmul.f32 %v1229_v5, %v1210_v39  ;;  %v1237_v57 = vmul.f32 %v1229_v5, %v1211_v4 }
 0x156   :  { %v4056_v16 = vadd.f32 %v1230_v49, %v3976_v56  ;;  %v4059_v26 = vadd.f32 %v1231_v12, %v3979_v18  ;;  %v4062_v10 = vadd.f32 %v1232_v50, %v3982_v29  ;;  %v4065_v41 = vadd.f32 %v1233_v14, %v3985_v6 }
 0x157   :  { %v4068_v62 = vadd.f32 %v1234_v8, %v3988_v23  ;;  %v4071_v59 = vadd.f32 %v1235_v54, %v3991_v33  ;;  %v4074_v5 = vadd.f32 %v1236_v45, %v3994_v43  ;;  %v4077_v56 = vadd.f32 %v1237_v57, %v3997_v44 }
 0x158   :  { %v1246_v18 = vstv %s4023_s12  ;;  %v1255_v19 = vstv %s4025_s13  ;;  %v1272_v22 = vstv %s4027_s14  ;;  %v1289_v29 = vstv %s4029_s15  ;;  %s4503_s12 = sld [smem:[#allocation6 + $0x18]]  ;;  %s4509_s15 = sld [smem:[#allocation9 + $0x31]] }
 0x159   :  { %v1247_v6 = vmul.f32 %v4083_v60, %v1246_v18  ;;  %v1248_v23 = vmul.f32 %v4086_v53, %v1246_v18  ;;  %v1249_v33 = vmul.f32 %v4005_v15, %v1246_v18  ;;  %v1250_v43 = vmul.f32 %v4008_v3, %v1246_v18  ;;  %s4505_s13 = sld [smem:[#allocation7 + $0x18]] }
 0x15a   :  { %v1251_v63 = vmul.f32 %v4011_v51, %v1246_v18  ;;  %v1252_v44 = vmul.f32 %v4014_v17, %v1246_v18  ;;  %v1253_v21 = vmul.f32 %v4017_v20, %v1246_v18  ;;  %v1254_v35 = vmul.f32 %v4020_v31, %v1246_v18  ;;  %s4507_s14 = sld [smem:[#allocation9 + $0x30]] }
 0x15b   :  { %v1256_v46 = vadd.f32 %v1255_v19, %v1247_v6  ;;  %v1257_v47 = vadd.f32 %v1255_v19, %v1248_v23  ;;  %v1258_v55 = vadd.f32 %v1255_v19, %v1249_v33  ;;  %v1259_v48 = vadd.f32 %v1255_v19, %v1250_v43 }
 0x15c   :  { %v1260_v1 = vadd.f32 %v1255_v19, %v1251_v63  ;;  %v1261_v36 = vadd.f32 %v1255_v19, %v1252_v44  ;;  %v1262_v24 = vadd.f32 %v1255_v19, %v1253_v21  ;;  %v1263_v0 = vadd.f32 %v1255_v19, %v1254_v35 }
 0x15d   :  { %v1264_v9 = vmax.f32 %v1256_v46, 0.0  ;;  %v1265_v61 = vmax.f32 %v1257_v47, 0.0  ;;  %v1266_v39 = vmax.f32 %v1258_v55, 0.0  ;;  %v1267_v4 = vmax.f32 %v1259_v48, 0.0 }
 0x15e   :  { %v1268_v2 = vmax.f32 %v1260_v1, 0.0  ;;  %v1269_v32 = vmax.f32 %v1261_v36, 0.0  ;;  %v1270_v27 = vmax.f32 %v1262_v24, 0.0  ;;  %v1271_v52 = vmax.f32 %v1263_v0, 0.0 }
 0x15f   :  { %v1273_v37 = vmul.f32 %v1272_v22, %v1264_v9  ;;  %v1274_v30 = vmul.f32 %v1272_v22, %v1265_v61  ;;  %v1275_v25 = vmul.f32 %v1272_v22, %v1266_v39  ;;  %v1276_v42 = vmul.f32 %v1272_v22, %v1267_v4 }
 0x160   :  { %v1277_v49 = vmul.f32 %v1272_v22, %v1268_v2  ;;  %v1278_v12 = vmul.f32 %v1272_v22, %v1269_v32  ;;  %v1279_v50 = vmul.f32 %v1272_v22, %v1270_v27  ;;  %v1280_v14 = vmul.f32 %v1272_v22, %v1271_v52 }
 0x161   :  { %v4104_v8 = vadd.f32 %v1273_v37, %v4032_v11  ;;  %v4107_v54 = vadd.f32 %v1274_v30, %v4035_v13  ;;  %v4110_v45 = vadd.f32 %v1275_v25, %v4038_v38  ;;  %v4113_v57 = vadd.f32 %v1276_v42, %v4041_v40 }
 0x162   :  { %v4116_v18 = vadd.f32 %v1277_v49, %v4044_v7  ;;  %v4119_v19 = vadd.f32 %v1278_v12, %v4047_v34  ;;  %v4122_v22 = vadd.f32 %v1279_v50, %v4050_v28  ;;  %v4125_v11 = vadd.f32 %v1280_v14, %v4053_v58 }
 0x163   :  { %v1290_v13 = vmul.f32 %v1289_v29, %v1264_v9  ;;  %v1291_v6 = vmul.f32 %v1289_v29, %v1265_v61  ;;  %v1292_v38 = vmul.f32 %v1289_v29, %v1266_v39  ;;  %v1293_v40 = vmul.f32 %v1289_v29, %v1267_v4 }
 0x164   :  { %v1294_v23 = vmul.f32 %v1289_v29, %v1268_v2  ;;  %v1295_v7 = vmul.f32 %v1289_v29, %v1269_v32  ;;  %v1296_v33 = vmul.f32 %v1289_v29, %v1270_v27  ;;  %v1297_v43 = vmul.f32 %v1289_v29, %v1271_v52 }
 0x165   :  { %v4128_v34 = vadd.f32 %v1290_v13, %v4056_v16  ;;  %v4131_v28 = vadd.f32 %v1291_v6, %v4059_v26  ;;  %v4134_v58 = vadd.f32 %v1292_v38, %v4062_v10  ;;  %v4137_v63 = vadd.f32 %v1293_v40, %v4065_v41 }
 0x166   :  { %v4140_v44 = vadd.f32 %v1294_v23, %v4068_v62  ;;  %v4143_v21 = vadd.f32 %v1295_v7, %v4071_v59  ;;  %v4146_v29 = vadd.f32 %v1296_v33, %v4074_v5  ;;  %v4149_v16 = vadd.f32 %v1297_v43, %v4077_v56 }
 0x167   :  { %v1306_v26 = vstv %s4095_s16  ;;  %v1315_v35 = vstv %s4097_s17  ;;  %v1332_v46 = vstv %s4099_s18  ;;  %v1349_v10 = vstv %s4101_s0  ;;  %s4583_s16 = sld [smem:[#allocation6 + $0x19]]  ;;  %s4587_s18 = sld [smem:[#allocation9 + $0x32]] }
 0x168   :  { %v1307_v47 = vmul.f32 %v4083_v60, %v1306_v26  ;;  %v1308_v41 = vmul.f32 %v4086_v53, %v1306_v26  ;;  %v1309_v62 = vmul.f32 %v4005_v15, %v1306_v26  ;;  %v1310_v55 = vmul.f32 %v4008_v3, %v1306_v26  ;;  %s4585_s17 = sld [smem:[#allocation7 + $0x19]]  ;;  %s4589_s0 = sld [smem:[#allocation9 + $0x33]] }
 0x169   :  { %v1311_v59 = vmul.f32 %v4011_v51, %v1306_v26  ;;  %v1312_v5 = vmul.f32 %v4014_v17, %v1306_v26  ;;  %v1313_v48 = vmul.f32 %v4017_v20, %v1306_v26  ;;  %v1314_v56 = vmul.f32 %v4020_v31, %v1306_v26 }
 0x16a   :  { %v1316_v1 = vadd.f32 %v1315_v35, %v1307_v47  ;;  %v1317_v36 = vadd.f32 %v1315_v35, %v1308_v41  ;;  %v1318_v24 = vadd.f32 %v1315_v35, %v1309_v62  ;;  %v1319_v0 = vadd.f32 %v1315_v35, %v1310_v55 }
 0x16b   :  { %v1320_v9 = vadd.f32 %v1315_v35, %v1311_v59  ;;  %v1321_v61 = vadd.f32 %v1315_v35, %v1312_v5  ;;  %v1322_v39 = vadd.f32 %v1315_v35, %v1313_v48  ;;  %v1323_v4 = vadd.f32 %v1315_v35, %v1314_v56 }
 0x16c   :  { %v1324_v2 = vmax.f32 %v1316_v1, 0.0  ;;  %v1325_v32 = vmax.f32 %v1317_v36, 0.0  ;;  %v1326_v27 = vmax.f32 %v1318_v24, 0.0  ;;  %v1327_v52 = vmax.f32 %v1319_v0, 0.0 }
 0x16d   :  { %v1328_v37 = vmax.f32 %v1320_v9, 0.0  ;;  %v1329_v30 = vmax.f32 %v1321_v61, 0.0  ;;  %v1330_v25 = vmax.f32 %v1322_v39, 0.0  ;;  %v1331_v42 = vmax.f32 %v1323_v4, 0.0 }
 0x16e   :  { %v1333_v49 = vmul.f32 %v1332_v46, %v1324_v2  ;;  %v1334_v12 = vmul.f32 %v1332_v46, %v1325_v32  ;;  %v1335_v50 = vmul.f32 %v1332_v46, %v1326_v27  ;;  %v1336_v14 = vmul.f32 %v1332_v46, %v1327_v52 }
 0x16f   :  { %v1337_v13 = vmul.f32 %v1332_v46, %v1328_v37  ;;  %v1338_v6 = vmul.f32 %v1332_v46, %v1329_v30  ;;  %v1339_v38 = vmul.f32 %v1332_v46, %v1330_v25  ;;  %v1340_v40 = vmul.f32 %v1332_v46, %v1331_v42 }
 0x170   :  { %v4172_v23 = vadd.f32 %v1333_v49, %v4104_v8  ;;  %v4175_v7 = vadd.f32 %v1334_v12, %v4107_v54  ;;  %v4178_v33 = vadd.f32 %v1335_v50, %v4110_v45  ;;  %v4181_v43 = vadd.f32 %v1336_v14, %v4113_v57 }
 0x171   :  { %v4184_v26 = vadd.f32 %v1337_v13, %v4116_v18  ;;  %v4187_v35 = vadd.f32 %v1338_v6, %v4119_v19  ;;  %v4190_v46 = vadd.f32 %v1339_v38, %v4122_v22  ;;  %v4193_v8 = vadd.f32 %v1340_v40, %v4125_v11 }
 0x172   :  { %v1350_v54 = vmul.f32 %v1349_v10, %v1324_v2  ;;  %v1351_v47 = vmul.f32 %v1349_v10, %v1325_v32  ;;  %v1352_v45 = vmul.f32 %v1349_v10, %v1326_v27  ;;  %v1353_v57 = vmul.f32 %v1349_v10, %v1327_v52 }
 0x173   :  { %v1354_v41 = vmul.f32 %v1349_v10, %v1328_v37  ;;  %v1355_v18 = vmul.f32 %v1349_v10, %v1329_v30  ;;  %v1356_v62 = vmul.f32 %v1349_v10, %v1330_v25  ;;  %v1357_v55 = vmul.f32 %v1349_v10, %v1331_v42 }
 0x174   :  { %v4196_v19 = vadd.f32 %v1350_v54, %v4128_v34  ;;  %v4199_v22 = vadd.f32 %v1351_v47, %v4131_v28  ;;  %v4202_v11 = vadd.f32 %v1352_v45, %v4134_v58  ;;  %v4205_v59 = vadd.f32 %v1353_v57, %v4137_v63 }
 0x175   :  { %v4208_v5 = vadd.f32 %v1354_v41, %v4140_v44  ;;  %v4211_v48 = vadd.f32 %v1355_v18, %v4143_v21  ;;  %v4214_v10 = vadd.f32 %v1356_v62, %v4146_v29  ;;  %v4217_v34 = vadd.f32 %v1357_v55, %v4149_v16 }
 0x176   :  { %v1366_v28 = vstv %s4163_s1  ;;  %v1375_v56 = vstv %s4165_s3  ;;  %v1392_v1 = vstv %s4167_s19  ;;  %v1409_v58 = vstv %s4169_s20  ;;  %s4655_s1 = sld [smem:[#allocation6 + $0x1a]]  ;;  %s4659_s19 = sld [smem:[#allocation9 + $0x34]] }
 0x177   :  { %v1367_v36 = vmul.f32 %v4083_v60, %v1366_v28  ;;  %v1368_v63 = vmul.f32 %v4086_v53, %v1366_v28  ;;  %v1369_v44 = vmul.f32 %v4005_v15, %v1366_v28  ;;  %v1370_v24 = vmul.f32 %v4008_v3, %v1366_v28  ;;  %s4657_s3 = sld [smem:[#allocation7 + $0x1a]]  ;;  %s4661_s20 = sld [smem:[#allocation9 + $0x35]] }
 0x178   :  { %v1371_v21 = vmul.f32 %v4011_v51, %v1366_v28  ;;  %v1372_v29 = vmul.f32 %v4014_v17, %v1366_v28  ;;  %v1373_v0 = vmul.f32 %v4017_v20, %v1366_v28  ;;  %v1374_v16 = vmul.f32 %v4020_v31, %v1366_v28 }
 0x179   :  { %v1376_v9 = vadd.f32 %v1375_v56, %v1367_v36  ;;  %v1377_v61 = vadd.f32 %v1375_v56, %v1368_v63  ;;  %v1378_v39 = vadd.f32 %v1375_v56, %v1369_v44  ;;  %v1379_v4 = vadd.f32 %v1375_v56, %v1370_v24 }
 0x17a   :  { %v1380_v2 = vadd.f32 %v1375_v56, %v1371_v21  ;;  %v1381_v32 = vadd.f32 %v1375_v56, %v1372_v29  ;;  %v1382_v27 = vadd.f32 %v1375_v56, %v1373_v0  ;;  %v1383_v52 = vadd.f32 %v1375_v56, %v1374_v16 }
 0x17b   :  { %v1384_v37 = vmax.f32 %v1376_v9, 0.0  ;;  %v1385_v30 = vmax.f32 %v1377_v61, 0.0  ;;  %v1386_v25 = vmax.f32 %v1378_v39, 0.0  ;;  %v1387_v42 = vmax.f32 %v1379_v4, 0.0 }
 0x17c   :  { %v1388_v49 = vmax.f32 %v1380_v2, 0.0  ;;  %v1389_v12 = vmax.f32 %v1381_v32, 0.0  ;;  %v1390_v50 = vmax.f32 %v1382_v27, 0.0  ;;  %v1391_v14 = vmax.f32 %v1383_v52, 0.0 }
 0x17d   :  { %v1393_v13 = vmul.f32 %v1392_v1, %v1384_v37  ;;  %v1394_v6 = vmul.f32 %v1392_v1, %v1385_v30  ;;  %v1395_v38 = vmul.f32 %v1392_v1, %v1386_v25  ;;  %v1396_v40 = vmul.f32 %v1392_v1, %v1387_v42 }
 0x17e   :  { %v1397_v54 = vmul.f32 %v1392_v1, %v1388_v49  ;;  %v1398_v47 = vmul.f32 %v1392_v1, %v1389_v12  ;;  %v1399_v45 = vmul.f32 %v1392_v1, %v1390_v50  ;;  %v1400_v57 = vmul.f32 %v1392_v1, %v1391_v14 }
 0x17f   :  { %v4240_v41 = vadd.f32 %v1393_v13, %v4172_v23  ;;  %v4243_v18 = vadd.f32 %v1394_v6, %v4175_v7  ;;  %v4246_v62 = vadd.f32 %v1395_v38, %v4178_v33  ;;  %v4249_v55 = vadd.f32 %v1396_v40, %v4181_v43 }
 0x180   :  { %v4252_v28 = vadd.f32 %v1397_v54, %v4184_v26  ;;  %v4255_v56 = vadd.f32 %v1398_v47, %v4187_v35  ;;  %v4258_v1 = vadd.f32 %v1399_v45, %v4190_v46  ;;  %v4261_v23 = vadd.f32 %v1400_v57, %v4193_v8 }
 0x181   :  { %v1410_v7 = vmul.f32 %v1409_v58, %v1384_v37  ;;  %v1411_v36 = vmul.f32 %v1409_v58, %v1385_v30  ;;  %v1412_v33 = vmul.f32 %v1409_v58, %v1386_v25  ;;  %v1413_v43 = vmul.f32 %v1409_v58, %v1387_v42 }
 0x182   :  { %v1414_v63 = vmul.f32 %v1409_v58, %v1388_v49  ;;  %v1415_v26 = vmul.f32 %v1409_v58, %v1389_v12  ;;  %v1416_v44 = vmul.f32 %v1409_v58, %v1390_v50  ;;  %v1417_v24 = vmul.f32 %v1409_v58, %v1391_v14 }
 0x183   :  { %v4264_v35 = vadd.f32 %v1410_v7, %v4196_v19  ;;  %v4267_v46 = vadd.f32 %v1411_v36, %v4199_v22  ;;  %v4270_v8 = vadd.f32 %v1412_v33, %v4202_v11  ;;  %v4273_v21 = vadd.f32 %v1413_v43, %v4205_v59 }
 0x184   :  { %v4276_v29 = vadd.f32 %v1414_v63, %v4208_v5  ;;  %v4279_v0 = vadd.f32 %v1415_v26, %v4211_v48  ;;  %v4282_v58 = vadd.f32 %v1416_v44, %v4214_v10  ;;  %v4285_v19 = vadd.f32 %v1417_v24, %v4217_v34 }
 0x185   :  { %v1426_v22 = vstv %s4231_s21  ;;  %v1435_v16 = vstv %s4233_s22  ;;  %v1452_v9 = vstv %s4235_s4  ;;  %v1469_v11 = vstv %s4237_s23  ;;  %s4723_s21 = sld [smem:[#allocation6 + $0x1b]]  ;;  %s4727_s4 = sld [smem:[#allocation9 + $0x36]] }
 0x186   :  { %v1427_v61 = vmul.f32 %v4083_v60, %v1426_v22  ;;  %v1428_v59 = vmul.f32 %v4086_v53, %v1426_v22  ;;  %v1429_v5 = vmul.f32 %v4005_v15, %v1426_v22  ;;  %v1430_v39 = vmul.f32 %v4008_v3, %v1426_v22  ;;  %s4725_s22 = sld [smem:[#allocation7 + $0x1b]]  ;;  %s4729_s23 = sld [smem:[#allocation9 + $0x37]] }
 0x187   :  { %v1431_v48 = vmul.f32 %v4011_v51, %v1426_v22  ;;  %v1432_v10 = vmul.f32 %v4014_v17, %v1426_v22  ;;  %v1433_v4 = vmul.f32 %v4017_v20, %v1426_v22  ;;  %v1434_v34 = vmul.f32 %v4020_v31, %v1426_v22 }
 0x188   :  { %v1436_v2 = vadd.f32 %v1435_v16, %v1427_v61  ;;  %v1437_v32 = vadd.f32 %v1435_v16, %v1428_v59  ;;  %v1438_v27 = vadd.f32 %v1435_v16, %v1429_v5  ;;  %v1439_v52 = vadd.f32 %v1435_v16, %v1430_v39 }
 0x189   :  { %v1440_v37 = vadd.f32 %v1435_v16, %v1431_v48  ;;  %v1441_v30 = vadd.f32 %v1435_v16, %v1432_v10  ;;  %v1442_v25 = vadd.f32 %v1435_v16, %v1433_v4  ;;  %v1443_v42 = vadd.f32 %v1435_v16, %v1434_v34 }
 0x18a   :  { %v1444_v49 = vmax.f32 %v1436_v2, 0.0  ;;  %v1445_v12 = vmax.f32 %v1437_v32, 0.0  ;;  %v1446_v50 = vmax.f32 %v1438_v27, 0.0  ;;  %v1447_v14 = vmax.f32 %v1439_v52, 0.0 }
 0x18b   :  { %v1448_v13 = vmax.f32 %v1440_v37, 0.0  ;;  %v1449_v6 = vmax.f32 %v1441_v30, 0.0  ;;  %v1450_v38 = vmax.f32 %v1442_v25, 0.0  ;;  %v1451_v40 = vmax.f32 %v1443_v42, 0.0 }
 0x18c   :  { %v1453_v54 = vmul.f32 %v1452_v9, %v1444_v49  ;;  %v1454_v47 = vmul.f32 %v1452_v9, %v1445_v12  ;;  %v1455_v45 = vmul.f32 %v1452_v9, %v1446_v50  ;;  %v1456_v57 = vmul.f32 %v1452_v9, %v1447_v14 }
 0x18d   :  { %v1457_v7 = vmul.f32 %v1452_v9, %v1448_v13  ;;  %v1458_v36 = vmul.f32 %v1452_v9, %v1449_v6  ;;  %v1459_v33 = vmul.f32 %v1452_v9, %v1450_v38  ;;  %v1460_v43 = vmul.f32 %v1452_v9, %v1451_v40 }
 0x18e   :  { %v4308_v63 = vadd.f32 %v1453_v54, %v4240_v41  ;;  %v4311_v26 = vadd.f32 %v1454_v47, %v4243_v18  ;;  %v4314_v44 = vadd.f32 %v1455_v45, %v4246_v62  ;;  %v4317_v24 = vadd.f32 %v1456_v57, %v4249_v55 }
 0x18f   :  { %v4320_v22 = vadd.f32 %v1457_v7, %v4252_v28  ;;  %v4323_v16 = vadd.f32 %v1458_v36, %v4255_v56  ;;  %v4326_v9 = vadd.f32 %v1459_v33, %v4258_v1  ;;  %v4329_v41 = vadd.f32 %v1460_v43, %v4261_v23 }
 0x190   :  { %v1470_v18 = vmul.f32 %v1469_v11, %v1444_v49  ;;  %v1471_v61 = vmul.f32 %v1469_v11, %v1445_v12  ;;  %v1472_v62 = vmul.f32 %v1469_v11, %v1446_v50  ;;  %v1473_v55 = vmul.f32 %v1469_v11, %v1447_v14 }
 0x191   :  { %v1474_v59 = vmul.f32 %v1469_v11, %v1448_v13  ;;  %v1475_v28 = vmul.f32 %v1469_v11, %v1449_v6  ;;  %v1476_v5 = vmul.f32 %v1469_v11, %v1450_v38  ;;  %v1477_v39 = vmul.f32 %v1469_v11, %v1451_v40 }
 0x192   :  { %v4332_v56 = vadd.f32 %v1470_v18, %v4264_v35  ;;  %v4335_v1 = vadd.f32 %v1471_v61, %v4267_v46  ;;  %v4338_v23 = vadd.f32 %v1472_v62, %v4270_v8  ;;  %v4341_v48 = vadd.f32 %v1473_v55, %v4273_v21 }
 0x193   :  { %v4344_v10 = vadd.f32 %v1474_v59, %v4276_v29  ;;  %v4347_v4 = vadd.f32 %v1475_v28, %v4279_v0  ;;  %v4350_v11 = vadd.f32 %v1476_v5, %v4282_v58  ;;  %v4353_v35 = vadd.f32 %v1477_v39, %v4285_v19 }
 0x194   :  { %v1486_v46 = vstv %s4299_s24  ;;  %v1495_v34 = vstv %s4301_s25  ;;  %v1512_v2 = vstv %s4303_s26  ;;  %v1529_v8 = vstv %s4305_s27  ;;  %s4791_s24 = sld [smem:[#allocation6 + $0x1c]]  ;;  %s4795_s26 = sld [smem:[#allocation9 + $0x38]] }
 0x195   :  { %v1487_v32 = vmul.f32 %v4083_v60, %v1486_v46  ;;  %v1488_v21 = vmul.f32 %v4086_v53, %v1486_v46  ;;  %v1489_v29 = vmul.f32 %v4005_v15, %v1486_v46  ;;  %v1490_v27 = vmul.f32 %v4008_v3, %v1486_v46  ;;  %s4793_s25 = sld [smem:[#allocation7 + $0x1c]]  ;;  %s4797_s27 = sld [smem:[#allocation9 + $0x39]] }
 0x196   :  { %v1491_v0 = vmul.f32 %v4011_v51, %v1486_v46  ;;  %v1492_v58 = vmul.f32 %v4014_v17, %v1486_v46  ;;  %v1493_v52 = vmul.f32 %v4017_v20, %v1486_v46  ;;  %v1494_v19 = vmul.f32 %v4020_v31, %v1486_v46 }
 0x197   :  { %v1496_v37 = vadd.f32 %v1495_v34, %v1487_v32  ;;  %v1497_v30 = vadd.f32 %v1495_v34, %v1488_v21  ;;  %v1498_v25 = vadd.f32 %v1495_v34, %v1489_v29  ;;  %v1499_v42 = vadd.f32 %v1495_v34, %v1490_v27 }
 0x198   :  { %v1500_v49 = vadd.f32 %v1495_v34, %v1491_v0  ;;  %v1501_v12 = vadd.f32 %v1495_v34, %v1492_v58  ;;  %v1502_v50 = vadd.f32 %v1495_v34, %v1493_v52  ;;  %v1503_v14 = vadd.f32 %v1495_v34, %v1494_v19 }
 0x199   :  { %v1504_v13 = vmax.f32 %v1496_v37, 0.0  ;;  %v1505_v6 = vmax.f32 %v1497_v30, 0.0  ;;  %v1506_v38 = vmax.f32 %v1498_v25, 0.0  ;;  %v1507_v40 = vmax.f32 %v1499_v42, 0.0 }
 0x19a   :  { %v1508_v54 = vmax.f32 %v1500_v49, 0.0  ;;  %v1509_v47 = vmax.f32 %v1501_v12, 0.0  ;;  %v1510_v45 = vmax.f32 %v1502_v50, 0.0  ;;  %v1511_v57 = vmax.f32 %v1503_v14, 0.0 }
 0x19b   :  { %v1513_v7 = vmul.f32 %v1512_v2, %v1504_v13  ;;  %v1514_v36 = vmul.f32 %v1512_v2, %v1505_v6  ;;  %v1515_v33 = vmul.f32 %v1512_v2, %v1506_v38  ;;  %v1516_v43 = vmul.f32 %v1512_v2, %v1507_v40 }
 0x19c   :  { %v1517_v18 = vmul.f32 %v1512_v2, %v1508_v54  ;;  %v1518_v61 = vmul.f32 %v1512_v2, %v1509_v47  ;;  %v1519_v62 = vmul.f32 %v1512_v2, %v1510_v45  ;;  %v1520_v55 = vmul.f32 %v1512_v2, %v1511_v57 }
 0x19d   :  { %v4376_v59 = vadd.f32 %v1513_v7, %v4308_v63  ;;  %v4379_v28 = vadd.f32 %v1514_v36, %v4311_v26  ;;  %v4382_v5 = vadd.f32 %v1515_v33, %v4314_v44  ;;  %v4385_v39 = vadd.f32 %v1516_v43, %v4317_v24 }
 0x19e   :  { %v4388_v46 = vadd.f32 %v1517_v18, %v4320_v22  ;;  %v4391_v34 = vadd.f32 %v1518_v61, %v4323_v16  ;;  %v4394_v2 = vadd.f32 %v1519_v62, %v4326_v9  ;;  %v4397_v63 = vadd.f32 %v1520_v55, %v4329_v41 }
 0x19f   :  { %v1530_v26 = vmul.f32 %v1529_v8, %v1504_v13  ;;  %v1531_v32 = vmul.f32 %v1529_v8, %v1505_v6  ;;  %v1532_v44 = vmul.f32 %v1529_v8, %v1506_v38  ;;  %v1533_v24 = vmul.f32 %v1529_v8, %v1507_v40 }
 0x1a0   :  { %v1534_v21 = vmul.f32 %v1529_v8, %v1508_v54  ;;  %v1535_v22 = vmul.f32 %v1529_v8, %v1509_v47  ;;  %v1536_v29 = vmul.f32 %v1529_v8, %v1510_v45  ;;  %v1537_v27 = vmul.f32 %v1529_v8, %v1511_v57 }
 0x1a1   :  { %v4400_v16 = vadd.f32 %v1530_v26, %v4332_v56  ;;  %v4403_v9 = vadd.f32 %v1531_v32, %v4335_v1  ;;  %v4406_v41 = vadd.f32 %v1532_v44, %v4338_v23  ;;  %v4409_v0 = vadd.f32 %v1533_v24, %v4341_v48 }
 0x1a2   :  { %v4412_v58 = vadd.f32 %v1534_v21, %v4344_v10  ;;  %v4415_v52 = vadd.f32 %v1535_v22, %v4347_v4  ;;  %v4418_v8 = vadd.f32 %v1536_v29, %v4350_v11  ;;  %v4421_v56 = vadd.f32 %v1537_v27, %v4353_v35 }
 0x1a3   :  { %v1546_v1 = vstv %s4367_s28  ;;  %v1555_v19 = vstv %s4369_s2  ;;  %v1572_v37 = vstv %s4371_s29  ;;  %v1589_v23 = vstv %s4373_s30  ;;  %s4859_s28 = sld [smem:[#allocation6 + $0x1d]]  ;;  %s4863_s29 = sld [smem:[#allocation9 + $0x3a]] }
 0x1a4   :  { %v1547_v30 = vmul.f32 %v4083_v60, %v1546_v1  ;;  %v1548_v48 = vmul.f32 %v4086_v53, %v1546_v1  ;;  %v1549_v10 = vmul.f32 %v4005_v15, %v1546_v1  ;;  %v1550_v25 = vmul.f32 %v4008_v3, %v1546_v1  ;;  %s4861_s2 = sld [smem:[#allocation7 + $0x1d]]  ;;  %s4865_s30 = sld [smem:[#allocation9 + $0x3b]] }
 0x1a5   :  { %v1551_v4 = vmul.f32 %v4011_v51, %v1546_v1  ;;  %v1552_v11 = vmul.f32 %v4014_v17, %v1546_v1  ;;  %v1553_v42 = vmul.f32 %v4017_v20, %v1546_v1  ;;  %v1554_v35 = vmul.f32 %v4020_v31, %v1546_v1 }
 0x1a6   :  { %v1556_v49 = vadd.f32 %v1555_v19, %v1547_v30  ;;  %v1557_v12 = vadd.f32 %v1555_v19, %v1548_v48  ;;  %v1558_v50 = vadd.f32 %v1555_v19, %v1549_v10  ;;  %v1559_v14 = vadd.f32 %v1555_v19, %v1550_v25 }
 0x1a7   :  { %v1560_v13 = vadd.f32 %v1555_v19, %v1551_v4  ;;  %v1561_v6 = vadd.f32 %v1555_v19, %v1552_v11  ;;  %v1562_v38 = vadd.f32 %v1555_v19, %v1553_v42  ;;  %v1563_v40 = vadd.f32 %v1555_v19, %v1554_v35 }
 0x1a8   :  { %v1564_v54 = vmax.f32 %v1556_v49, 0.0  ;;  %v1565_v47 = vmax.f32 %v1557_v12, 0.0  ;;  %v1566_v45 = vmax.f32 %v1558_v50, 0.0  ;;  %v1567_v57 = vmax.f32 %v1559_v14, 0.0 }
 0x1a9   :  { %v1568_v7 = vmax.f32 %v1560_v13, 0.0  ;;  %v1569_v36 = vmax.f32 %v1561_v6, 0.0  ;;  %v1570_v33 = vmax.f32 %v1562_v38, 0.0  ;;  %v1571_v43 = vmax.f32 %v1563_v40, 0.0 }
 0x1aa   :  { %v1573_v18 = vmul.f32 %v1572_v37, %v1564_v54  ;;  %v1574_v61 = vmul.f32 %v1572_v37, %v1565_v47  ;;  %v1575_v62 = vmul.f32 %v1572_v37, %v1566_v45  ;;  %v1576_v55 = vmul.f32 %v1572_v37, %v1567_v57 }
 0x1ab   :  { %v1577_v26 = vmul.f32 %v1572_v37, %v1568_v7  ;;  %v1578_v32 = vmul.f32 %v1572_v37, %v1569_v36  ;;  %v1579_v44 = vmul.f32 %v1572_v37, %v1570_v33  ;;  %v1580_v24 = vmul.f32 %v1572_v37, %v1571_v43 }
 0x1ac   :  { %v4444_v21 = vadd.f32 %v1573_v18, %v4376_v59  ;;  %v4447_v22 = vadd.f32 %v1574_v61, %v4379_v28  ;;  %v4450_v29 = vadd.f32 %v1575_v62, %v4382_v5  ;;  %v4453_v27 = vadd.f32 %v1576_v55, %v4385_v39 }
 0x1ad   :  { %v4456_v1 = vadd.f32 %v1577_v26, %v4388_v46  ;;  %v4459_v19 = vadd.f32 %v1578_v32, %v4391_v34  ;;  %v4462_v37 = vadd.f32 %v1579_v44, %v4394_v2  ;;  %v4465_v59 = vadd.f32 %v1580_v24, %v4397_v63 }
 0x1ae   :  { %v1590_v28 = vmul.f32 %v1589_v23, %v1564_v54  ;;  %v1591_v30 = vmul.f32 %v1589_v23, %v1565_v47  ;;  %v1592_v5 = vmul.f32 %v1589_v23, %v1566_v45  ;;  %v1593_v39 = vmul.f32 %v1589_v23, %v1567_v57 }
 0x1af   :  { %v1594_v48 = vmul.f32 %v1589_v23, %v1568_v7  ;;  %v1595_v46 = vmul.f32 %v1589_v23, %v1569_v36  ;;  %v1596_v10 = vmul.f32 %v1589_v23, %v1570_v33  ;;  %v1597_v25 = vmul.f32 %v1589_v23, %v1571_v43 }
 0x1b0   :  { %v4468_v34 = vadd.f32 %v1590_v28, %v4400_v16  ;;  %v4471_v2 = vadd.f32 %v1591_v30, %v4403_v9  ;;  %v4474_v63 = vadd.f32 %v1592_v5, %v4406_v41  ;;  %v4477_v4 = vadd.f32 %v1593_v39, %v4409_v0 }
 0x1b1   :  { %v4480_v11 = vadd.f32 %v1594_v48, %v4412_v58  ;;  %v4483_v42 = vadd.f32 %v1595_v46, %v4415_v52  ;;  %v4486_v23 = vadd.f32 %v1596_v10, %v4418_v8  ;;  %v4489_v16 = vadd.f32 %v1597_v25, %v4421_v56 }
 0x1b2   :  { %v1606_v9 = vstv %s4435_s6  ;;  %v1615_v35 = vstv %s4437_s9  ;;  %v1632_v49 = vstv %s4439_s10  ;;  %v1649_v41 = vstv %s4441_s11  ;;  %s4927_s6 = sld [smem:[#allocation6 + $0x1e]]  ;;  %s4931_s10 = sld [smem:[#allocation9 + $0x3c]] }
 0x1b3   :  { %v1607_v12 = vmul.f32 %v4083_v60, %v1606_v9  ;;  %v1608_v0 = vmul.f32 %v4086_v53, %v1606_v9  ;;  %v1609_v58 = vmul.f32 %v4005_v15, %v1606_v9  ;;  %v1610_v50 = vmul.f32 %v4008_v3, %v1606_v9  ;;  %s4929_s9 = sld [smem:[#allocation7 + $0x1e]]  ;;  %s4933_s11 = sld [smem:[#allocation9 + $0x3d]] }
 0x1b4   :  { %v1611_v52 = vmul.f32 %v4011_v51, %v1606_v9  ;;  %v1612_v8 = vmul.f32 %v4014_v17, %v1606_v9  ;;  %v1613_v14 = vmul.f32 %v4017_v20, %v1606_v9  ;;  %v1614_v56 = vmul.f32 %v4020_v31, %v1606_v9 }
 0x1b5   :  { %v1616_v13 = vadd.f32 %v1615_v35, %v1607_v12  ;;  %v1617_v6 = vadd.f32 %v1615_v35, %v1608_v0  ;;  %v1618_v38 = vadd.f32 %v1615_v35, %v1609_v58  ;;  %v1619_v40 = vadd.f32 %v1615_v35, %v1610_v50 }
 0x1b6   :  { %v1620_v54 = vadd.f32 %v1615_v35, %v1611_v52  ;;  %v1621_v47 = vadd.f32 %v1615_v35, %v1612_v8  ;;  %v1622_v45 = vadd.f32 %v1615_v35, %v1613_v14  ;;  %v1623_v57 = vadd.f32 %v1615_v35, %v1614_v56  ;;  %v4565_v52 = vld [vmem:[#allocation2 + $0x10] sm:$0xff]  ;;  %v4571_v8 = vld [vmem:[#allocation2 + $0x20] sm:$0xff]  ;;  %v4574_v14 = vld [vmem:[#allocation2 + $0x28] sm:$0xff] }
 0x1b7   :  { %v1624_v15 = vmax.f32 %v1616_v13, 0.0  ;;  %v1625_v3 = vmax.f32 %v1617_v6, 0.0  ;;  %v1626_v7 = vmax.f32 %v1618_v38, 0.0  ;;  %v1627_v51 = vmax.f32 %v1619_v40, 0.0  ;;  %v4577_v13 = vld [vmem:[#allocation2 + $0x30] sm:$0xff] }
 0x1b8   :  { %v1628_v17 = vmax.f32 %v1620_v54, 0.0  ;;  %v1629_v20 = vmax.f32 %v1621_v47, 0.0  ;;  %v1630_v36 = vmax.f32 %v1622_v45, 0.0  ;;  %v1631_v31 = vmax.f32 %v1623_v57, 0.0 }
 0x1b9   :  { %v1633_v33 = vmul.f32 %v1632_v49, %v1624_v15  ;;  %v1634_v43 = vmul.f32 %v1632_v49, %v1625_v3  ;;  %v1635_v18 = vmul.f32 %v1632_v49, %v1626_v7  ;;  %v1636_v61 = vmul.f32 %v1632_v49, %v1627_v51 }
 0x1ba   :  { %v1637_v62 = vmul.f32 %v1632_v49, %v1628_v17  ;;  %v1638_v55 = vmul.f32 %v1632_v49, %v1629_v20  ;;  %v1639_v26 = vmul.f32 %v1632_v49, %v1630_v36  ;;  %v1640_v32 = vmul.f32 %v1632_v49, %v1631_v31 }
 0x1bb   :  { %v4512_v44 = vadd.f32 %v1633_v33, %v4444_v21  ;;  %v4515_v24 = vadd.f32 %v1634_v43, %v4447_v22  ;;  %v4518_v28 = vadd.f32 %v1635_v18, %v4450_v29  ;;  %v4521_v30 = vadd.f32 %v1636_v61, %v4453_v27 }
 0x1bc   :  { %v4524_v5 = vadd.f32 %v1637_v62, %v4456_v1  ;;  %v4527_v39 = vadd.f32 %v1638_v55, %v4459_v19  ;;  %v4530_v48 = vadd.f32 %v1639_v26, %v4462_v37  ;;  %v4533_v21 = vadd.f32 %v1640_v32, %v4465_v59 }
 0x1bd   :  { %v1650_v22 = vmul.f32 %v1649_v41, %v1624_v15  ;;  %v1651_v46 = vmul.f32 %v1649_v41, %v1625_v3  ;;  %v1652_v29 = vmul.f32 %v1649_v41, %v1626_v7  ;;  %v1653_v27 = vmul.f32 %v1649_v41, %v1627_v51 }
 0x1be   :  { %v1654_v10 = vmul.f32 %v1649_v41, %v1628_v17  ;;  %v1655_v1 = vmul.f32 %v1649_v41, %v1629_v20  ;;  %v1656_v25 = vmul.f32 %v1649_v41, %v1630_v36  ;;  %v1657_v9 = vmul.f32 %v1649_v41, %v1631_v31 }
 0x1bf   :  { %v4536_v19 = vadd.f32 %v1650_v22, %v4468_v34  ;;  %v4539_v37 = vadd.f32 %v1651_v46, %v4471_v2  ;;  %v4542_v59 = vadd.f32 %v1652_v29, %v4474_v63  ;;  %v4545_v35 = vadd.f32 %v1653_v27, %v4477_v4 }
 0x1c0   :  { %v4548_v49 = vadd.f32 %v1654_v10, %v4480_v11  ;;  %v4551_v12 = vadd.f32 %v1655_v1, %v4483_v42  ;;  %v4554_v41 = vadd.f32 %v1656_v25, %v4486_v23  ;;  %v4557_v34 = vadd.f32 %v1657_v9, %v4489_v16  ;;  %v4568_v42 = vld [vmem:[#allocation2 + $0x18] sm:$0xff] }
 0x1c1   :  { %v1666_v2 = vstv %s4503_s12  ;;  %v1675_v0 = vstv %s4505_s13  ;;  %v1692_v58 = vstv %s4507_s14  ;;  %v1709_v63 = vstv %s4509_s15  ;;  %s4995_s12 = sld [smem:[#allocation6 + $0x1f]]  ;;  %s4999_s14 = sld [smem:[#allocation9 + $0x3e]] }
 0x1c2   :  { %v1667_v50 = vmul.f32 %v4083_v60, %v1666_v2  ;;  %v1668_v4 = vmul.f32 %v4086_v53, %v1666_v2  ;;  %v1669_v11 = vmul.f32 %v4565_v52, %v1666_v2  ;;  %v1670_v23 = vmul.f32 %v4568_v42, %v1666_v2  ;;  %v4580_v53 = vld [vmem:[#allocation2 + $0x38] sm:$0xff]  ;;  %s4997_s13 = sld [smem:[#allocation7 + $0x1f]] }
 0x1c3   :  { %v1671_v16 = vmul.f32 %v4571_v8, %v1666_v2  ;;  %v1672_v56 = vmul.f32 %v4574_v14, %v1666_v2  ;;  %v1673_v60 = vmul.f32 %v4577_v13, %v1666_v2  ;;  %v1674_v6 = vmul.f32 %v4580_v53, %v1666_v2  ;;  %s5001_s15 = sld [smem:[#allocation9 + $0x3f]] }
 0x1c4   :  { %v1676_v38 = vadd.f32 %v1675_v0, %v1667_v50  ;;  %v1677_v40 = vadd.f32 %v1675_v0, %v1668_v4  ;;  %v1678_v54 = vadd.f32 %v1675_v0, %v1669_v11  ;;  %v1679_v47 = vadd.f32 %v1675_v0, %v1670_v23 }
 0x1c5   :  { %v1680_v45 = vadd.f32 %v1675_v0, %v1671_v16  ;;  %v1681_v57 = vadd.f32 %v1675_v0, %v1672_v56  ;;  %v1682_v15 = vadd.f32 %v1675_v0, %v1673_v60  ;;  %v1683_v3 = vadd.f32 %v1675_v0, %v1674_v6  ;;  %v4643_v6 = vld [vmem:[#allocation2] sm:$0xff] }
 0x1c6   :  { %v1684_v7 = vmax.f32 %v1676_v38, 0.0  ;;  %v1685_v51 = vmax.f32 %v1677_v40, 0.0  ;;  %v1686_v17 = vmax.f32 %v1678_v54, 0.0  ;;  %v1687_v20 = vmax.f32 %v1679_v47, 0.0  ;;  %v4646_v38 = vld [vmem:[#allocation2 + $0x8] sm:$0xff] }
 0x1c7   :  { %v1688_v36 = vmax.f32 %v1680_v45, 0.0  ;;  %v1689_v31 = vmax.f32 %v1681_v57, 0.0  ;;  %v1690_v33 = vmax.f32 %v1682_v15, 0.0  ;;  %v1691_v43 = vmax.f32 %v1683_v3, 0.0 }
 0x1c8   :  { %v1693_v18 = vmul.f32 %v1692_v58, %v1684_v7  ;;  %v1694_v61 = vmul.f32 %v1692_v58, %v1685_v51  ;;  %v1695_v62 = vmul.f32 %v1692_v58, %v1686_v17  ;;  %v1696_v55 = vmul.f32 %v1692_v58, %v1687_v20 }
 0x1c9   :  { %v1697_v26 = vmul.f32 %v1692_v58, %v1688_v36  ;;  %v1698_v32 = vmul.f32 %v1692_v58, %v1689_v31  ;;  %v1699_v22 = vmul.f32 %v1692_v58, %v1690_v33  ;;  %v1700_v46 = vmul.f32 %v1692_v58, %v1691_v43 }
 0x1ca   :  { %v4592_v29 = vadd.f32 %v1693_v18, %v4512_v44  ;;  %v4595_v27 = vadd.f32 %v1694_v61, %v4515_v24  ;;  %v4598_v10 = vadd.f32 %v1695_v62, %v4518_v28  ;;  %v4601_v1 = vadd.f32 %v1696_v55, %v4521_v30 }
 0x1cb   :  { %v4604_v25 = vadd.f32 %v1697_v26, %v4524_v5  ;;  %v4607_v9 = vadd.f32 %v1698_v32, %v4527_v39  ;;  %v4610_v2 = vadd.f32 %v1699_v22, %v4530_v48  ;;  %v4613_v44 = vadd.f32 %v1700_v46, %v4533_v21 }
 0x1cc   :  { %v1710_v24 = vmul.f32 %v1709_v63, %v1684_v7  ;;  %v1711_v0 = vmul.f32 %v1709_v63, %v1685_v51  ;;  %v1712_v28 = vmul.f32 %v1709_v63, %v1686_v17  ;;  %v1713_v30 = vmul.f32 %v1709_v63, %v1687_v20 }
 0x1cd   :  { %v1714_v58 = vmul.f32 %v1709_v63, %v1688_v36  ;;  %v1715_v5 = vmul.f32 %v1709_v63, %v1689_v31  ;;  %v1716_v50 = vmul.f32 %v1709_v63, %v1690_v33  ;;  %v1717_v4 = vmul.f32 %v1709_v63, %v1691_v43 }
 0x1ce   :  { %v4616_v39 = vadd.f32 %v1710_v24, %v4536_v19  ;;  %v4619_v48 = vadd.f32 %v1711_v0, %v4539_v37  ;;  %v4622_v21 = vadd.f32 %v1712_v28, %v4542_v59  ;;  %v4625_v11 = vadd.f32 %v1713_v30, %v4545_v35 }
 0x1cf   :  { %v4628_v23 = vadd.f32 %v1714_v58, %v4548_v49  ;;  %v4631_v16 = vadd.f32 %v1715_v5, %v4551_v12  ;;  %v4634_v63 = vadd.f32 %v1716_v50, %v4554_v41  ;;  %v4637_v19 = vadd.f32 %v1717_v4, %v4557_v34 }
 0x1d0   :  { %v1726_v37 = vstv %s4583_s16  ;;  %v1735_v56 = vstv %s4585_s17  ;;  %v1752_v60 = vstv %s4587_s18  ;;  %v1769_v59 = vstv %s4589_s0  ;;  %s2477_s16 = smov [#allocation12]  }
 0x1d1   :  { %v1727_v35 = vmul.f32 %v4643_v6, %v1726_v37  ;;  %v1728_v49 = vmul.f32 %v4646_v38, %v1726_v37  ;;  %v1729_v12 = vmul.f32 %v4565_v52, %v1726_v37  ;;  %v1730_v41 = vmul.f32 %v4568_v42, %v1726_v37  ;;  %s2188_s17 = sshll.u32 %s2477_s16, 4  ;;  %s2189_s17 = int_to_ptr.vmem [resolvable:$true] %s2188_s17 }
 0x1d2   :  { %v1731_v40 = vmul.f32 %v4571_v8, %v1726_v37  ;;  %v1732_v34 = vmul.f32 %v4574_v14, %v1726_v37  ;;  %v1733_v54 = vmul.f32 %v4577_v13, %v1726_v37  ;;  %v1734_v47 = vmul.f32 %v4580_v53, %v1726_v37  ;;  %s2438_s18 = scalar_lea.vmem %s2189_s17, 2048  ;;  %p2443_p1 = scmp.lt.s32.totalorder %s2189_s17, %s2189_s17 }
 0x1d3   :  { %v1736_v45 = vadd.f32 %v1735_v56, %v1727_v35  ;;  %v1737_v57 = vadd.f32 %v1735_v56, %v1728_v49  ;;  %v1738_v15 = vadd.f32 %v1735_v56, %v1729_v12  ;;  %v1739_v3 = vadd.f32 %v1735_v56, %v1730_v41  ;;  %p2439_p0 = scmp.ne.s32.totalorder %s2189_s17, %s2438_s18  ;;  %p2444_p2 = scmp.lt.s32.totalorder %s2438_s18, %s2438_s18 }
 0x1d4   :  { %v1740_v7 = vadd.f32 %v1735_v56, %v1731_v40  ;;  %v1741_v51 = vadd.f32 %v1735_v56, %v1732_v34  ;;  %v1742_v17 = vadd.f32 %v1735_v56, %v1733_v54  ;;  %v1743_v20 = vadd.f32 %v1735_v56, %v1734_v47 }
 0x1d5   :  { %v1744_v36 = vmax.f32 %v1736_v45, 0.0  ;;  %v1745_v31 = vmax.f32 %v1737_v57, 0.0  ;;  %v1746_v33 = vmax.f32 %v1738_v15, 0.0  ;;  %v1747_v43 = vmax.f32 %v1739_v3, 0.0  ;;  %p2445_p3 = por %p2444_p2, %p2443_p1 }
 0x1d6   :  { %v1748_v18 = vmax.f32 %v1740_v7, 0.0  ;;  %v1749_v61 = vmax.f32 %v1741_v51, 0.0  ;;  %v1750_v62 = vmax.f32 %v1742_v17, 0.0  ;;  %v1751_v55 = vmax.f32 %v1743_v20, 0.0 }
 0x1d7   :  { %v1753_v26 = vmul.f32 %v1752_v60, %v1744_v36  ;;  %v1754_v32 = vmul.f32 %v1752_v60, %v1745_v31  ;;  %v1755_v22 = vmul.f32 %v1752_v60, %v1746_v33  ;;  %v1756_v46 = vmul.f32 %v1752_v60, %v1747_v43  ;;  %p2446_p4 = pnand %p2445_p3, %p2439_p0 }
 0x1d8   :  { %v1757_v24 = vmul.f32 %v1752_v60, %v1748_v18  ;;  %v1758_v0 = vmul.f32 %v1752_v60, %v1749_v61  ;;  %v1759_v28 = vmul.f32 %v1752_v60, %v1750_v62  ;;  %v1760_v30 = vmul.f32 %v1752_v60, %v1751_v55 }
 0x1d9   :  { %v4664_v58 = vadd.f32 %v1753_v26, %v4592_v29  ;;  %v4667_v5 = vadd.f32 %v1754_v32, %v4595_v27  ;;  %v4670_v50 = vadd.f32 %v1755_v22, %v4598_v10  ;;  %v4673_v4 = vadd.f32 %v1756_v46, %v4601_v1 }
 0x1da   :  { %v4676_v37 = vadd.f32 %v1757_v24, %v4604_v25  ;;  %v4679_v56 = vadd.f32 %v1758_v0, %v4607_v9  ;;  %v4682_v60 = vadd.f32 %v1759_v28, %v4610_v2  ;;  %v4685_v29 = vadd.f32 %v1760_v30, %v4613_v44 }
 0x1db   :  { %v1770_v27 = vmul.f32 %v1769_v59, %v1744_v36  ;;  %v1771_v35 = vmul.f32 %v1769_v59, %v1745_v31  ;;  %v1772_v10 = vmul.f32 %v1769_v59, %v1746_v33  ;;  %v1773_v1 = vmul.f32 %v1769_v59, %v1747_v43 }
 0x1dc   :  { %v1774_v49 = vmul.f32 %v1769_v59, %v1748_v18  ;;  %v1775_v25 = vmul.f32 %v1769_v59, %v1749_v61  ;;  %v1776_v12 = vmul.f32 %v1769_v59, %v1750_v62  ;;  %v1777_v41 = vmul.f32 %v1769_v59, %v1751_v55 }
 0x1dd   :  { %v4688_v9 = vadd.f32 %v1770_v27, %v4616_v39  ;;  %v4691_v2 = vadd.f32 %v1771_v35, %v4619_v48  ;;  %v4694_v44 = vadd.f32 %v1772_v10, %v4622_v21  ;;  %v4697_v40 = vadd.f32 %v1773_v1, %v4625_v11 }
 0x1de   :  { %v4700_v34 = vadd.f32 %v1774_v49, %v4628_v23  ;;  %v4703_v54 = vadd.f32 %v1775_v25, %v4631_v16  ;;  %v4706_v59 = vadd.f32 %v1776_v12, %v4634_v63  ;;  %v4709_v39 = vadd.f32 %v1777_v41, %v4637_v19 }
 0x1df   :  { %v1786_v48 = vstv %s4655_s1  ;;  %v1795_v47 = vstv %s4657_s3  ;;  %v1812_v45 = vstv %s4659_s19  ;;  %v1829_v21 = vstv %s4661_s20 }
 0x1e0   :  { %v1787_v57 = vmul.f32 %v4643_v6, %v1786_v48  ;;  %v1788_v11 = vmul.f32 %v4646_v38, %v1786_v48  ;;  %v1789_v23 = vmul.f32 %v4565_v52, %v1786_v48  ;;  %v1790_v15 = vmul.f32 %v4568_v42, %v1786_v48 }
 0x1e1   :  { %v1791_v16 = vmul.f32 %v4571_v8, %v1786_v48  ;;  %v1792_v63 = vmul.f32 %v4574_v14, %v1786_v48  ;;  %v1793_v3 = vmul.f32 %v4577_v13, %v1786_v48  ;;  %v1794_v19 = vmul.f32 %v4580_v53, %v1786_v48 }
 0x1e2   :  { %v1796_v7 = vadd.f32 %v1795_v47, %v1787_v57  ;;  %v1797_v51 = vadd.f32 %v1795_v47, %v1788_v11  ;;  %v1798_v17 = vadd.f32 %v1795_v47, %v1789_v23  ;;  %v1799_v20 = vadd.f32 %v1795_v47, %v1790_v15 }
 0x1e3   :  { %v1800_v36 = vadd.f32 %v1795_v47, %v1791_v16  ;;  %v1801_v31 = vadd.f32 %v1795_v47, %v1792_v63  ;;  %v1802_v33 = vadd.f32 %v1795_v47, %v1793_v3  ;;  %v1803_v43 = vadd.f32 %v1795_v47, %v1794_v19 }
 0x1e4   :  { %v1804_v18 = vmax.f32 %v1796_v7, 0.0  ;;  %v1805_v61 = vmax.f32 %v1797_v51, 0.0  ;;  %v1806_v62 = vmax.f32 %v1798_v17, 0.0  ;;  %v1807_v55 = vmax.f32 %v1799_v20, 0.0 }
 0x1e5   :  { %v1808_v26 = vmax.f32 %v1800_v36, 0.0  ;;  %v1809_v32 = vmax.f32 %v1801_v31, 0.0  ;;  %v1810_v22 = vmax.f32 %v1802_v33, 0.0  ;;  %v1811_v46 = vmax.f32 %v1803_v43, 0.0 }
 0x1e6   :  { %v1813_v24 = vmul.f32 %v1812_v45, %v1804_v18  ;;  %v1814_v0 = vmul.f32 %v1812_v45, %v1805_v61  ;;  %v1815_v28 = vmul.f32 %v1812_v45, %v1806_v62  ;;  %v1816_v30 = vmul.f32 %v1812_v45, %v1807_v55 }
 0x1e7   :  { %v1817_v27 = vmul.f32 %v1812_v45, %v1808_v26  ;;  %v1818_v35 = vmul.f32 %v1812_v45, %v1809_v32  ;;  %v1819_v10 = vmul.f32 %v1812_v45, %v1810_v22  ;;  %v1820_v1 = vmul.f32 %v1812_v45, %v1811_v46 }
 0x1e8   :  { %v4732_v49 = vadd.f32 %v1813_v24, %v4664_v58  ;;  %v4735_v25 = vadd.f32 %v1814_v0, %v4667_v5  ;;  %v4738_v12 = vadd.f32 %v1815_v28, %v4670_v50  ;;  %v4741_v41 = vadd.f32 %v1816_v30, %v4673_v4 }
 0x1e9   :  { %v4744_v48 = vadd.f32 %v1817_v27, %v4676_v37  ;;  %v4747_v47 = vadd.f32 %v1818_v35, %v4679_v56  ;;  %v4750_v45 = vadd.f32 %v1819_v10, %v4682_v60  ;;  %v4753_v58 = vadd.f32 %v1820_v1, %v4685_v29 }
 0x1ea   :  { %v1830_v5 = vmul.f32 %v1829_v21, %v1804_v18  ;;  %v1831_v57 = vmul.f32 %v1829_v21, %v1805_v61  ;;  %v1832_v50 = vmul.f32 %v1829_v21, %v1806_v62  ;;  %v1833_v4 = vmul.f32 %v1829_v21, %v1807_v55 }
 0x1eb   :  { %v1834_v11 = vmul.f32 %v1829_v21, %v1808_v26  ;;  %v1835_v37 = vmul.f32 %v1829_v21, %v1809_v32  ;;  %v1836_v23 = vmul.f32 %v1829_v21, %v1810_v22  ;;  %v1837_v15 = vmul.f32 %v1829_v21, %v1811_v46 }
 0x1ec   :  { %v4756_v56 = vadd.f32 %v1830_v5, %v4688_v9  ;;  %v4759_v60 = vadd.f32 %v1831_v57, %v4691_v2  ;;  %v4762_v29 = vadd.f32 %v1832_v50, %v4694_v44  ;;  %v4765_v16 = vadd.f32 %v1833_v4, %v4697_v40 }
 0x1ed   :  { %v4768_v63 = vadd.f32 %v1834_v11, %v4700_v34  ;;  %v4771_v3 = vadd.f32 %v1835_v37, %v4703_v54  ;;  %v4774_v21 = vadd.f32 %v1836_v23, %v4706_v59  ;;  %v4777_v9 = vadd.f32 %v1837_v15, %v4709_v39 }
 0x1ee   :  { %v1846_v2 = vstv %s4723_s21  ;;  %v1855_v19 = vstv %s4725_s22  ;;  %v1872_v7 = vstv %s4727_s4  ;;  %v1889_v44 = vstv %s4729_s23 }
 0x1ef   :  { %v1847_v51 = vmul.f32 %v4643_v6, %v1846_v2  ;;  %v1848_v40 = vmul.f32 %v4646_v38, %v1846_v2  ;;  %v1849_v34 = vmul.f32 %v4565_v52, %v1846_v2  ;;  %v1850_v17 = vmul.f32 %v4568_v42, %v1846_v2 }
 0x1f0   :  { %v1851_v54 = vmul.f32 %v4571_v8, %v1846_v2  ;;  %v1852_v59 = vmul.f32 %v4574_v14, %v1846_v2  ;;  %v1853_v20 = vmul.f32 %v4577_v13, %v1846_v2  ;;  %v1854_v39 = vmul.f32 %v4580_v53, %v1846_v2 }
 0x1f1   :  { %v1856_v36 = vadd.f32 %v1855_v19, %v1847_v51  ;;  %v1857_v31 = vadd.f32 %v1855_v19, %v1848_v40  ;;  %v1858_v33 = vadd.f32 %v1855_v19, %v1849_v34  ;;  %v1859_v43 = vadd.f32 %v1855_v19, %v1850_v17 }
 0x1f2   :  { %v1860_v18 = vadd.f32 %v1855_v19, %v1851_v54  ;;  %v1861_v61 = vadd.f32 %v1855_v19, %v1852_v59  ;;  %v1862_v62 = vadd.f32 %v1855_v19, %v1853_v20  ;;  %v1863_v55 = vadd.f32 %v1855_v19, %v1854_v39 }
 0x1f3   :  { %v1864_v26 = vmax.f32 %v1856_v36, 0.0  ;;  %v1865_v32 = vmax.f32 %v1857_v31, 0.0  ;;  %v1866_v22 = vmax.f32 %v1858_v33, 0.0  ;;  %v1867_v46 = vmax.f32 %v1859_v43, 0.0 }
 0x1f4   :  { %v1868_v24 = vmax.f32 %v1860_v18, 0.0  ;;  %v1869_v0 = vmax.f32 %v1861_v61, 0.0  ;;  %v1870_v28 = vmax.f32 %v1862_v62, 0.0  ;;  %v1871_v30 = vmax.f32 %v1863_v55, 0.0 }
 0x1f5   :  { %v1873_v27 = vmul.f32 %v1872_v7, %v1864_v26  ;;  %v1874_v35 = vmul.f32 %v1872_v7, %v1865_v32  ;;  %v1875_v10 = vmul.f32 %v1872_v7, %v1866_v22  ;;  %v1876_v1 = vmul.f32 %v1872_v7, %v1867_v46 }
 0x1f6   :  { %v1877_v5 = vmul.f32 %v1872_v7, %v1868_v24  ;;  %v1878_v57 = vmul.f32 %v1872_v7, %v1869_v0  ;;  %v1879_v50 = vmul.f32 %v1872_v7, %v1870_v28  ;;  %v1880_v4 = vmul.f32 %v1872_v7, %v1871_v30 }
 0x1f7   :  { %v4800_v11 = vadd.f32 %v1873_v27, %v4732_v49  ;;  %v4803_v37 = vadd.f32 %v1874_v35, %v4735_v25  ;;  %v4806_v23 = vadd.f32 %v1875_v10, %v4738_v12  ;;  %v4809_v15 = vadd.f32 %v1876_v1, %v4741_v41 }
 0x1f8   :  { %v4812_v2 = vadd.f32 %v1877_v5, %v4744_v48  ;;  %v4815_v19 = vadd.f32 %v1878_v57, %v4747_v47  ;;  %v4818_v7 = vadd.f32 %v1879_v50, %v4750_v45  ;;  %v4821_v49 = vadd.f32 %v1880_v4, %v4753_v58 }
 0x1f9   :  { %v1890_v25 = vmul.f32 %v1889_v44, %v1864_v26  ;;  %v1891_v51 = vmul.f32 %v1889_v44, %v1865_v32  ;;  %v1892_v12 = vmul.f32 %v1889_v44, %v1866_v22  ;;  %v1893_v41 = vmul.f32 %v1889_v44, %v1867_v46 }
 0x1fa   :  { %v1894_v40 = vmul.f32 %v1889_v44, %v1868_v24  ;;  %v1895_v48 = vmul.f32 %v1889_v44, %v1869_v0  ;;  %v1896_v34 = vmul.f32 %v1889_v44, %v1870_v28  ;;  %v1897_v17 = vmul.f32 %v1889_v44, %v1871_v30 }
 0x1fb   :  { %v4824_v47 = vadd.f32 %v1890_v25, %v4756_v56  ;;  %v4827_v45 = vadd.f32 %v1891_v51, %v4759_v60  ;;  %v4830_v58 = vadd.f32 %v1892_v12, %v4762_v29  ;;  %v4833_v54 = vadd.f32 %v1893_v41, %v4765_v16 }
 0x1fc   :  { %v4836_v59 = vadd.f32 %v1894_v40, %v4768_v63  ;;  %v4839_v20 = vadd.f32 %v1895_v48, %v4771_v3  ;;  %v4842_v44 = vadd.f32 %v1896_v34, %v4774_v21  ;;  %v4845_v56 = vadd.f32 %v1897_v17, %v4777_v9 }
 0x1fd   :  { %v1906_v60 = vstv %s4791_s24  ;;  %v1915_v39 = vstv %s4793_s25  ;;  %v1932_v36 = vstv %s4795_s26  ;;  %v1949_v29 = vstv %s4797_s27 }
 0x1fe   :  { %v1907_v31 = vmul.f32 %v4643_v6, %v1906_v60  ;;  %v1908_v16 = vmul.f32 %v4646_v38, %v1906_v60  ;;  %v1909_v63 = vmul.f32 %v4565_v52, %v1906_v60  ;;  %v1910_v33 = vmul.f32 %v4568_v42, %v1906_v60 }
 0x1ff   :  { %v1911_v3 = vmul.f32 %v4571_v8, %v1906_v60  ;;  %v1912_v21 = vmul.f32 %v4574_v14, %v1906_v60  ;;  %v1913_v43 = vmul.f32 %v4577_v13, %v1906_v60  ;;  %v1914_v9 = vmul.f32 %v4580_v53, %v1906_v60 }
 0x200   :  { %v1916_v18 = vadd.f32 %v1915_v39, %v1907_v31  ;;  %v1917_v61 = vadd.f32 %v1915_v39, %v1908_v16  ;;  %v1918_v62 = vadd.f32 %v1915_v39, %v1909_v63  ;;  %v1919_v55 = vadd.f32 %v1915_v39, %v1910_v33 }
 0x201   :  { %v1920_v26 = vadd.f32 %v1915_v39, %v1911_v3  ;;  %v1921_v32 = vadd.f32 %v1915_v39, %v1912_v21  ;;  %v1922_v22 = vadd.f32 %v1915_v39, %v1913_v43  ;;  %v1923_v46 = vadd.f32 %v1915_v39, %v1914_v9 }
 0x202   :  { %v1924_v24 = vmax.f32 %v1916_v18, 0.0  ;;  %v1925_v0 = vmax.f32 %v1917_v61, 0.0  ;;  %v1926_v28 = vmax.f32 %v1918_v62, 0.0  ;;  %v1927_v30 = vmax.f32 %v1919_v55, 0.0 }
 0x203   :  { %v1928_v27 = vmax.f32 %v1920_v26, 0.0  ;;  %v1929_v35 = vmax.f32 %v1921_v32, 0.0  ;;  %v1930_v10 = vmax.f32 %v1922_v22, 0.0  ;;  %v1931_v1 = vmax.f32 %v1923_v46, 0.0 }
 0x204   :  { %v1933_v5 = vmul.f32 %v1932_v36, %v1924_v24  ;;  %v1934_v57 = vmul.f32 %v1932_v36, %v1925_v0  ;;  %v1935_v50 = vmul.f32 %v1932_v36, %v1926_v28  ;;  %v1936_v4 = vmul.f32 %v1932_v36, %v1927_v30 }
 0x205   :  { %v1937_v25 = vmul.f32 %v1932_v36, %v1928_v27  ;;  %v1938_v51 = vmul.f32 %v1932_v36, %v1929_v35  ;;  %v1939_v12 = vmul.f32 %v1932_v36, %v1930_v10  ;;  %v1940_v41 = vmul.f32 %v1932_v36, %v1931_v1 }
 0x206   :  { %v4868_v40 = vadd.f32 %v1933_v5, %v4800_v11  ;;  %v4871_v48 = vadd.f32 %v1934_v57, %v4803_v37  ;;  %v4874_v34 = vadd.f32 %v1935_v50, %v4806_v23  ;;  %v4877_v17 = vadd.f32 %v1936_v4, %v4809_v15 }
 0x207   :  { %v4880_v60 = vadd.f32 %v1937_v25, %v4812_v2  ;;  %v4883_v39 = vadd.f32 %v1938_v51, %v4815_v19  ;;  %v4886_v36 = vadd.f32 %v1939_v12, %v4818_v7  ;;  %v4889_v11 = vadd.f32 %v1940_v41, %v4821_v49 }
 0x208   :  { %v1950_v37 = vmul.f32 %v1949_v29, %v1924_v24  ;;  %v1951_v31 = vmul.f32 %v1949_v29, %v1925_v0  ;;  %v1952_v23 = vmul.f32 %v1949_v29, %v1926_v28  ;;  %v1953_v15 = vmul.f32 %v1949_v29, %v1927_v30 }
 0x209   :  { %v1954_v16 = vmul.f32 %v1949_v29, %v1928_v27  ;;  %v1955_v2 = vmul.f32 %v1949_v29, %v1929_v35  ;;  %v1956_v63 = vmul.f32 %v1949_v29, %v1930_v10  ;;  %v1957_v33 = vmul.f32 %v1949_v29, %v1931_v1 }
 0x20a   :  { %v4892_v19 = vadd.f32 %v1950_v37, %v4824_v47  ;;  %v4895_v7 = vadd.f32 %v1951_v31, %v4827_v45  ;;  %v4898_v49 = vadd.f32 %v1952_v23, %v4830_v58  ;;  %v4901_v3 = vadd.f32 %v1953_v15, %v4833_v54 }
 0x20b   :  { %v4904_v21 = vadd.f32 %v1954_v16, %v4836_v59  ;;  %v4907_v43 = vadd.f32 %v1955_v2, %v4839_v20  ;;  %v4910_v29 = vadd.f32 %v1956_v63, %v4842_v44  ;;  %v4913_v47 = vadd.f32 %v1957_v33, %v4845_v56 }
 0x20c   :  { %v1966_v45 = vstv %s4859_s28  ;;  %v1975_v9 = vstv %s4861_s2  ;;  %v1992_v18 = vstv %s4863_s29  ;;  %v2009_v58 = vstv %s4865_s30 }
 0x20d   :  { %v1967_v61 = vmul.f32 %v4643_v6, %v1966_v45  ;;  %v1968_v54 = vmul.f32 %v4646_v38, %v1966_v45  ;;  %v1969_v59 = vmul.f32 %v4565_v52, %v1966_v45  ;;  %v1970_v62 = vmul.f32 %v4568_v42, %v1966_v45 }
 0x20e   :  { %v1971_v20 = vmul.f32 %v4571_v8, %v1966_v45  ;;  %v1972_v44 = vmul.f32 %v4574_v14, %v1966_v45  ;;  %v1973_v55 = vmul.f32 %v4577_v13, %v1966_v45  ;;  %v1974_v56 = vmul.f32 %v4580_v53, %v1966_v45 }
 0x20f   :  { %v1976_v26 = vadd.f32 %v1975_v9, %v1967_v61  ;;  %v1977_v32 = vadd.f32 %v1975_v9, %v1968_v54  ;;  %v1978_v22 = vadd.f32 %v1975_v9, %v1969_v59  ;;  %v1979_v46 = vadd.f32 %v1975_v9, %v1970_v62 }
 0x210   :  { %v1980_v24 = vadd.f32 %v1975_v9, %v1971_v20  ;;  %v1981_v0 = vadd.f32 %v1975_v9, %v1972_v44  ;;  %v1982_v28 = vadd.f32 %v1975_v9, %v1973_v55  ;;  %v1983_v30 = vadd.f32 %v1975_v9, %v1974_v56 }
 0x211   :  { %v1984_v27 = vmax.f32 %v1976_v26, 0.0  ;;  %v1985_v35 = vmax.f32 %v1977_v32, 0.0  ;;  %v1986_v10 = vmax.f32 %v1978_v22, 0.0  ;;  %v1987_v1 = vmax.f32 %v1979_v46, 0.0 }
 0x212   :  { %v1988_v5 = vmax.f32 %v1980_v24, 0.0  ;;  %v1989_v57 = vmax.f32 %v1981_v0, 0.0  ;;  %v1990_v50 = vmax.f32 %v1982_v28, 0.0  ;;  %v1991_v4 = vmax.f32 %v1983_v30, 0.0 }
 0x213   :  { %v1993_v25 = vmul.f32 %v1992_v18, %v1984_v27  ;;  %v1994_v51 = vmul.f32 %v1992_v18, %v1985_v35  ;;  %v1995_v12 = vmul.f32 %v1992_v18, %v1986_v10  ;;  %v1996_v41 = vmul.f32 %v1992_v18, %v1987_v1 }
 0x214   :  { %v1997_v37 = vmul.f32 %v1992_v18, %v1988_v5  ;;  %v1998_v31 = vmul.f32 %v1992_v18, %v1989_v57  ;;  %v1999_v23 = vmul.f32 %v1992_v18, %v1990_v50  ;;  %v2000_v15 = vmul.f32 %v1992_v18, %v1991_v4 }
 0x215   :  { %v4936_v16 = vadd.f32 %v1993_v25, %v4868_v40  ;;  %v4939_v2 = vadd.f32 %v1994_v51, %v4871_v48  ;;  %v4942_v63 = vadd.f32 %v1995_v12, %v4874_v34  ;;  %v4945_v33 = vadd.f32 %v1996_v41, %v4877_v17 }
 0x216   :  { %v4948_v45 = vadd.f32 %v1997_v37, %v4880_v60  ;;  %v4951_v9 = vadd.f32 %v1998_v31, %v4883_v39  ;;  %v4954_v18 = vadd.f32 %v1999_v23, %v4886_v36  ;;  %v4957_v40 = vadd.f32 %v2000_v15, %v4889_v11 }
 0x217   :  { %v2010_v48 = vmul.f32 %v2009_v58, %v1984_v27  ;;  %v2011_v61 = vmul.f32 %v2009_v58, %v1985_v35  ;;  %v2012_v34 = vmul.f32 %v2009_v58, %v1986_v10  ;;  %v2013_v17 = vmul.f32 %v2009_v58, %v1987_v1 }
 0x218   :  { %v2014_v54 = vmul.f32 %v2009_v58, %v1988_v5  ;;  %v2015_v60 = vmul.f32 %v2009_v58, %v1989_v57  ;;  %v2016_v59 = vmul.f32 %v2009_v58, %v1990_v50  ;;  %v2017_v62 = vmul.f32 %v2009_v58, %v1991_v4 }
 0x219   :  { %v4960_v39 = vadd.f32 %v2010_v48, %v4892_v19  ;;  %v4963_v36 = vadd.f32 %v2011_v61, %v4895_v7  ;;  %v4966_v11 = vadd.f32 %v2012_v34, %v4898_v49  ;;  %v4969_v20 = vadd.f32 %v2013_v17, %v4901_v3 }
 0x21a   :  { %v4972_v44 = vadd.f32 %v2014_v54, %v4904_v21  ;;  %v4975_v55 = vadd.f32 %v2015_v60, %v4907_v43  ;;  %v4978_v58 = vadd.f32 %v2016_v59, %v4910_v29  ;;  %v4981_v19 = vadd.f32 %v2017_v62, %v4913_v47 }
 0x21b   :  { %v2026_v7 = vstv %s4927_s6  ;;  %v2035_v56 = vstv %s4929_s9  ;;  %v2052_v26 = vstv %s4931_s10  ;;  %v2069_v49 = vstv %s4933_s11 }
 0x21c   :  { %v2027_v32 = vmul.f32 %v4643_v6, %v2026_v7  ;;  %v2028_v3 = vmul.f32 %v4646_v38, %v2026_v7  ;;  %v2029_v21 = vmul.f32 %v4565_v52, %v2026_v7  ;;  %v2030_v22 = vmul.f32 %v4568_v42, %v2026_v7 }
 0x21d   :  { %v2031_v43 = vmul.f32 %v4571_v8, %v2026_v7  ;;  %v2032_v29 = vmul.f32 %v4574_v14, %v2026_v7  ;;  %v2033_v46 = vmul.f32 %v4577_v13, %v2026_v7  ;;  %v2034_v47 = vmul.f32 %v4580_v53, %v2026_v7 }
 0x21e   :  { %v2036_v24 = vadd.f32 %v2035_v56, %v2027_v32  ;;  %v2037_v0 = vadd.f32 %v2035_v56, %v2028_v3  ;;  %v2038_v28 = vadd.f32 %v2035_v56, %v2029_v21  ;;  %v2039_v30 = vadd.f32 %v2035_v56, %v2030_v22 }
 0x21f   :  { %v2040_v27 = vadd.f32 %v2035_v56, %v2031_v43  ;;  %v2041_v35 = vadd.f32 %v2035_v56, %v2032_v29  ;;  %v2042_v10 = vadd.f32 %v2035_v56, %v2033_v46  ;;  %v2043_v1 = vadd.f32 %v2035_v56, %v2034_v47 }
 0x220   :  { %v2044_v5 = vmax.f32 %v2036_v24, 0.0  ;;  %v2045_v57 = vmax.f32 %v2037_v0, 0.0  ;;  %v2046_v50 = vmax.f32 %v2038_v28, 0.0  ;;  %v2047_v4 = vmax.f32 %v2039_v30, 0.0 }
 0x221   :  { %v2048_v25 = vmax.f32 %v2040_v27, 0.0  ;;  %v2049_v51 = vmax.f32 %v2041_v35, 0.0  ;;  %v2050_v12 = vmax.f32 %v2042_v10, 0.0  ;;  %v2051_v41 = vmax.f32 %v2043_v1, 0.0 }
 0x222   :  { %v2053_v37 = vmul.f32 %v2052_v26, %v2044_v5  ;;  %v2054_v31 = vmul.f32 %v2052_v26, %v2045_v57  ;;  %v2055_v23 = vmul.f32 %v2052_v26, %v2046_v50  ;;  %v2056_v15 = vmul.f32 %v2052_v26, %v2047_v4 }
 0x223   :  { %v2057_v48 = vmul.f32 %v2052_v26, %v2048_v25  ;;  %v2058_v61 = vmul.f32 %v2052_v26, %v2049_v51  ;;  %v2059_v34 = vmul.f32 %v2052_v26, %v2050_v12  ;;  %v2060_v17 = vmul.f32 %v2052_v26, %v2051_v41 }
 0x224   :  { %v2061_v54 = vadd.f32 %v2053_v37, %v4936_v16  ;;  %v2062_v60 = vadd.f32 %v2054_v31, %v4939_v2  ;;  %v2063_v59 = vadd.f32 %v2055_v23, %v4942_v63  ;;  %v2064_v62 = vadd.f32 %v2056_v15, %v4945_v33 }
 0x225   :  { %v2065_v7 = vadd.f32 %v2057_v48, %v4948_v45  ;;  %v2066_v56 = vadd.f32 %v2058_v61, %v4951_v9  ;;  %v2067_v32 = vadd.f32 %v2059_v34, %v4954_v18  ;;  %v2068_v3 = vadd.f32 %v2060_v17, %v4957_v40 }
 0x226   :  { %v2070_v21 = vmul.f32 %v2069_v49, %v2044_v5  ;;  %v2071_v22 = vmul.f32 %v2069_v49, %v2045_v57  ;;  %v2072_v26 = vmul.f32 %v2069_v49, %v2046_v50  ;;  %v2073_v16 = vmul.f32 %v2069_v49, %v2047_v4 }
 0x227   :  { %v2074_v2 = vmul.f32 %v2069_v49, %v2048_v25  ;;  %v2075_v63 = vmul.f32 %v2069_v49, %v2049_v51  ;;  %v2076_v43 = vmul.f32 %v2069_v49, %v2050_v12  ;;  %v2077_v33 = vmul.f32 %v2069_v49, %v2051_v41 }
 0x228   :  { %v2078_v45 = vadd.f32 %v2070_v21, %v4960_v39  ;;  %v2079_v9 = vadd.f32 %v2071_v22, %v4963_v36  ;;  %v2080_v18 = vadd.f32 %v2072_v26, %v4966_v11  ;;  %v2081_v40 = vadd.f32 %v2073_v16, %v4969_v20 }
 0x229   :  { %v2082_v29 = vadd.f32 %v2074_v2, %v4972_v44  ;;  %v2083_v46 = vadd.f32 %v2075_v63, %v4975_v55  ;;  %v2084_v47 = vadd.f32 %v2076_v43, %v4978_v58  ;;  %v2085_v24 = vadd.f32 %v2077_v33, %v4981_v19 }
 0x22a   :  { %v2086_v0 = vstv %s4995_s12  ;;  %v2095_v28 = vstv %s4997_s13  ;;  %v2112_v30 = vstv %s4999_s14  ;;  %v2129_v49 = vstv %s5001_s15 }
 0x22b   :  { %v2087_v39 = vmul.f32 %v4643_v6, %v2086_v0  ;;  %v2088_v36 = vmul.f32 %v4646_v38, %v2086_v0  ;;  %v2089_v11 = vmul.f32 %v4565_v52, %v2086_v0  ;;  %v2090_v20 = vmul.f32 %v4568_v42, %v2086_v0 }
 0x22c   :  { %v2091_v44 = vmul.f32 %v4571_v8, %v2086_v0  ;;  %v2092_v55 = vmul.f32 %v4574_v14, %v2086_v0  ;;  %v2093_v58 = vmul.f32 %v4577_v13, %v2086_v0  ;;  %v2094_v19 = vmul.f32 %v4580_v53, %v2086_v0 }
 0x22d   :  { %v2096_v27 = vadd.f32 %v2095_v28, %v2087_v39  ;;  %v2097_v35 = vadd.f32 %v2095_v28, %v2088_v36  ;;  %v2098_v10 = vadd.f32 %v2095_v28, %v2089_v11  ;;  %v2099_v1 = vadd.f32 %v2095_v28, %v2090_v20 }
 0x22e   :  { %v2100_v5 = vadd.f32 %v2095_v28, %v2091_v44  ;;  %v2101_v57 = vadd.f32 %v2095_v28, %v2092_v55  ;;  %v2102_v50 = vadd.f32 %v2095_v28, %v2093_v58  ;;  %v2103_v4 = vadd.f32 %v2095_v28, %v2094_v19 }
 0x22f   :  { %v2104_v25 = vmax.f32 %v2096_v27, 0.0  ;;  %v2105_v51 = vmax.f32 %v2097_v35, 0.0  ;;  %v2106_v12 = vmax.f32 %v2098_v10, 0.0  ;;  %v2107_v41 = vmax.f32 %v2099_v1, 0.0 }
 0x230   :  { %v2108_v37 = vmax.f32 %v2100_v5, 0.0  ;;  %v2109_v31 = vmax.f32 %v2101_v57, 0.0  ;;  %v2110_v23 = vmax.f32 %v2102_v50, 0.0  ;;  %v2111_v15 = vmax.f32 %v2103_v4, 0.0  ;;  %v2367_v50 = vld [vmem:[#allocation2 + $0x38] sm:$0xff] }
 0x231   :  { %v2113_v48 = vmul.f32 %v2112_v30, %v2104_v25  ;;  %v2114_v61 = vmul.f32 %v2112_v30, %v2105_v51  ;;  %v2115_v34 = vmul.f32 %v2112_v30, %v2106_v12  ;;  %v2116_v17 = vmul.f32 %v2112_v30, %v2107_v41 }
 0x232   :  { %v2117_v21 = vmul.f32 %v2112_v30, %v2108_v37  ;;  %v2118_v22 = vmul.f32 %v2112_v30, %v2109_v31  ;;  %v2119_v26 = vmul.f32 %v2112_v30, %v2110_v23  ;;  %v2120_v16 = vmul.f32 %v2112_v30, %v2111_v15 }
 0x233   :  { %v2121_v2 = vadd.f32 %v2113_v48, %v2061_v54  ;;  %v2122_v63 = vadd.f32 %v2114_v61, %v2062_v60  ;;  %v2123_v43 = vadd.f32 %v2115_v34, %v2063_v59  ;;  %v2124_v33 = vadd.f32 %v2116_v17, %v2064_v62 }
 0x234   :  { %v2125_v0 = vadd.f32 %v2117_v21, %v2065_v7  ;;  %v2126_v28 = vadd.f32 %v2118_v22, %v2066_v56  ;;  %v2127_v39 = vadd.f32 %v2119_v26, %v2067_v32  ;;  %v2128_v36 = vadd.f32 %v2120_v16, %v2068_v3 }
 0x235   :  { %v2130_v11 = vmul.f32 %v2129_v49, %v2104_v25  ;;  %v2131_v20 = vmul.f32 %v2129_v49, %v2105_v51  ;;  %v2132_v44 = vmul.f32 %v2129_v49, %v2106_v12  ;;  %v2133_v55 = vmul.f32 %v2129_v49, %v2107_v41 }
 0x236   :  { %v2134_v58 = vmul.f32 %v2129_v49, %v2108_v37  ;;  %v2135_v19 = vmul.f32 %v2129_v49, %v2109_v31  ;;  %v2136_v27 = vmul.f32 %v2129_v49, %v2110_v23  ;;  %v2137_v35 = vmul.f32 %v2129_v49, %v2111_v15 }
 0x237   :  { %v2138_v10 = vadd.f32 %v2130_v11, %v2078_v45  ;;  %v2139_v1 = vadd.f32 %v2131_v20, %v2079_v9  ;;  %v2140_v5 = vadd.f32 %v2132_v44, %v2080_v18  ;;  %v2141_v30 = vadd.f32 %v2133_v55, %v2081_v40 }
 0x238   :  { %v2142_v54 = vadd.f32 %v2134_v58, %v2082_v29  ;;  %v2143_v60 = vadd.f32 %v2135_v19, %v2083_v46  ;;  %v2144_v59 = vadd.f32 %v2136_v27, %v2084_v47  ;;  %v2145_v62 = vadd.f32 %v2137_v35, %v2085_v24  ;;  %v2362_v29 = vld [vmem:[#allocation2 + $0x10] sm:$0xff]  ;;  %v2363_v46 = vld [vmem:[#allocation2 + $0x18] sm:$0xff] }
 0x239   :  { %v2146_v7 = vmul.f32 %v4643_v6, %v2121_v2  ;;  %v2147_v56 = vmul.f32 %v4646_v38, %v2122_v63  ;;  %v2148_v32 = vmul.f32 %v4565_v52, %v2123_v43  ;;  %v2149_v3 = vmul.f32 %v4568_v42, %v2124_v33  ;;  %v2366_v24 = vld [vmem:[#allocation2 + $0x30] sm:$0xff] }
 0x23a   :  { %v2150_v49 = vmul.f32 %v4571_v8, %v2125_v0  ;;  %v2151_v45 = vmul.f32 %v4574_v14, %v2126_v28  ;;  %v2152_v9 = vmul.f32 %v4577_v13, %v2127_v39  ;;  %v2153_v18 = vmul.f32 %v4580_v53, %v2128_v36  ;;  %v2364_v8 = vld [vmem:[#allocation2 + $0x20] sm:$0xff]  ;;  %v2365_v13 = vld [vmem:[#allocation2 + $0x28] sm:$0xff] }
 0x23b   :  { %2156 = vst [vmem:[#allocation12] sm:$0xff] %v2146_v7  ;;  %2157 = vst [vmem:[#allocation12 + $0x8] sm:$0xff] %v2147_v56  ;;  %v2164_v40 = vmul.f32 %v4643_v6, %v2138_v10  ;;  %v2165_v52 = vmul.f32 %v4646_v38, %v2139_v1  ;;  %v2166_v42 = vmul.f32 %v2362_v29, %v2140_v5 }
 0x23c   :  { %2158 = vst [vmem:[#allocation12 + $0x10] sm:$0xff] %v2148_v32  ;;  %2159 = vst [vmem:[#allocation12 + $0x18] sm:$0xff] %v2149_v3  ;;  %v2167_v47 = vmul.f32 %v2363_v46, %v2141_v30  ;;  %v2168_v14 = vmul.f32 %v2364_v8, %v2142_v54  ;;  %v2169_v53 = vmul.f32 %v2365_v13, %v2143_v60 }
 0x23d   :  { %2160 = vst [vmem:[#allocation12 + $0x20] sm:$0xff] %v2150_v49  ;;  %2161 = vst [vmem:[#allocation12 + $0x28] sm:$0xff] %v2151_v45  ;;  %v2170_v57 = vmul.f32 %v2366_v24, %v2144_v59  ;;  %v2171_v4 = vmul.f32 %v2367_v50, %v2145_v62 }
 0x23e   :  { %2162 = vst [vmem:[#allocation12 + $0x30] sm:$0xff] %v2152_v9  ;;  %2163 = vst [vmem:[#allocation12 + $0x38] sm:$0xff] %v2153_v18 }
 0x23f   :  { %2175 = vst [vmem:[#allocation12 + $0x40] sm:$0xff] %v2164_v40  ;;  %2176 = vst [vmem:[#allocation12 + $0x48] sm:$0xff] %v2165_v52 }
 0x240   :  { %2177 = vst [vmem:[#allocation12 + $0x50] sm:$0xff] %v2166_v42  ;;  %2178 = vst [vmem:[#allocation12 + $0x58] sm:$0xff] %v2167_v47 }
 0x241   :  { %2179 = vst [vmem:[#allocation12 + $0x60] sm:$0xff] %v2168_v14  ;;  %2180 = vst [vmem:[#allocation12 + $0x68] sm:$0xff] %v2169_v53 }
 0x242   :  { %2181 = vst [vmem:[#allocation12 + $0x70] sm:$0xff] %v2170_v57  ;;  %2182 = vst [vmem:[#allocation12 + $0x78] sm:$0xff] %v2171_v4 }
 0x243   :  { %2449 = shalt.err (!%p2446_p4)
}
 0x244   :  { %s2450_s3 = scalar_lea.hbm %s5061_s5, 2048 }
 0x245   :  { %p2451_p5 = scmp.ne.s32.totalorder %s5061_s5, %s2450_s3  ;;  %p2454_p6 = scmp.lt.u32.totalorder %s2450_s3, %s5061_s5 }
 0x247   :  { %p2456_p7 = pnand %p2454_p6, %p2451_p5 }
 0x249   :  { %2459 = shalt.err (!%p2456_p7)
}
 0x24a   :  { %2194 = dma.vmem_to_hbm [thread:$0]  %s2189_s17, 2048, %s5061_s5, [#allocation4], %s2472_s7, %s2472_s7, %s2473_s8  }
 0x24b   :  { %2468 = dma.done.wait [#allocation4], 2048  }
 0x24c   :  { %2469 = vsyncadd [#allocation4], 4294965248 }
 0x24d   :  { %2198 = vsyncpa [#allocation3], 1 }
 0x24e   :  { %2199 = vsyncpa [#allocation4], 1 }
 0x24f   :  { %2200 = vsyncpa [#allocation5], 1 }
 0x250   :  { %2201 = vsyncpa [#allocation8], 1 }
 0x251   :  { %2202 = vsyncpa [#allocation11], 1 }

</bundles_post_ra>
